<compile_context>
chip_gen: v6e
topology: v6e:2x2x1
jax: 0.10.0
libtpu: 0.0.40
codegen_flags: <defaults>
</compile_context>

<pallas_src>
import jax
import jax.numpy as jnp
from jax import lax
from jax.experimental import pallas as pl
from jax.experimental.pallas import tpu as pltpu

# ---------------- config ----------------
IMG = 16
PATCH = 4
IN_CHANS = 3
EMBED = 64
DEPTH = 2
NUM_HEADS = 4
HEAD_DIM = EMBED // NUM_HEADS
MLP_HIDDEN = int(EMBED * 4.0)
NUM_CLASSES = 16
GRID_HW = IMG // PATCH
NUM_PATCHES = GRID_HW * GRID_HW
SEQ = NUM_PATCHES + 1                  # +1 cls token
CPP = IN_CHANS * PATCH * PATCH         # flattened patch length
LN_EPS = 1e-5
INV_SQRT2 = 0.7071067811865476
ATTN_SCALE = HEAD_DIM ** (-0.5)


# ---------------- in-kernel helpers ----------------
def _layernorm(x, g, b):
    """LayerNorm over the last dim, f32 math. x: (M, D); g, b: (1, D) f32."""
    xf = x.astype(jnp.float32)
    mean = jnp.mean(xf, axis=-1, keepdims=True)
    xc = xf - mean
    var = jnp.mean(xc * xc, axis=-1, keepdims=True)
    return xc * lax.rsqrt(var + LN_EPS) * g + b


def _bf16(x):
    return x.astype(jnp.bfloat16)


# ---------------- fully fused ViT kernel (whole batch, single invocation) ---
def _vit_kernel(patches_ref, patch_w_ref, patch_b_ref, pe_g_ref, pe_b_ref,
                cls_ref, pos_ref,
                n1_g_ref, n1_b_ref, qkv_w_ref, qkv_b_ref,
                proj_w_ref, proj_b_ref,
                n2_g_ref, n2_b_ref, fc1_w_ref, fc1_b_ref,
                fc2_w_ref, fc2_b_ref,
                ln_g_ref, ln_b_ref, head_w_ref, head_b_ref,
                logits_ref, seq_ref):
    B = logits_ref.shape[0]

    # --- PatchEmbed: one stacked (B*P, CPP) @ (CPP, E) matmul + LayerNorm ---
    patches = _bf16(patches_ref[...])                                # (B*P, CPP)
    tok = jnp.dot(patches, patch_w_ref[...],
                  preferred_element_type=jnp.float32) + patch_b_ref[...]
    tok = _layernorm(tok, pe_g_ref[...], pe_b_ref[...])              # (B*P, E)

    # --- cls token + positional embedding, written straight into VMEM scratch
    #     (dropouts are p=0 -> identity) ---
    for b in range(B):
        base = b * SEQ
        seq_ref[base:base + 1, :] = cls_ref[...] + pos_ref[0:1, :]
        seq_ref[base + 1:base + SEQ, :] = (
            tok[b * NUM_PATCHES:(b + 1) * NUM_PATCHES, :] + pos_ref[1:SEQ, :])

    # --- transformer encoder (static unrolled depth loop; weights in VMEM) ---
    for d in range(DEPTH):
        # ---- attention branch ----
        seq = seq_ref[...]                                           # (B*SEQ, E) f32
        h = _layernorm(seq, n1_g_ref[d], n1_b_ref[d])
        qkv = jnp.dot(_bf16(h), qkv_w_ref[d],
                      preferred_element_type=jnp.float32) + qkv_b_ref[d]  # (B*SEQ, 3E)
        pw = proj_w_ref[d]                                           # (E, E) bf16

        for b in range(B):
            base = b * SEQ
            acc = jnp.zeros((SEQ, EMBED), jnp.float32)
            for hh in range(NUM_HEADS):
                lo = hh * HEAD_DIM
                hi = lo + HEAD_DIM
                qh = qkv[base:base + SEQ, lo:hi]
                kh = qkv[base:base + SEQ, EMBED + lo:EMBED + hi]
                vh = qkv[base:base + SEQ, 2 * EMBED + lo:2 * EMBED + hi]
                # q @ k^T without materializing the transpose
                s = lax.dot_general(
                    _bf16(qh), _bf16(kh),
                    dimension_numbers=(((1,), (1,)), ((), ())),
                    preferred_element_type=jnp.float32) * ATTN_SCALE  # (SEQ, SEQ)
                s = s - jnp.max(s, axis=-1, keepdims=True)
                p = jnp.exp(s)
                p = p / jnp.sum(p, axis=-1, keepdims=True)            # exact divide
                av = jnp.dot(_bf16(p), _bf16(vh),
                             preferred_element_type=jnp.float32)      # (SEQ, HD)
                # fuse output projection: stay lane-dense (E wide), no concat
                acc = acc + jnp.dot(_bf16(av), pw[lo:hi, :],
                                    preferred_element_type=jnp.float32)
            seq_ref[base:base + SEQ, :] = (
                seq[base:base + SEQ, :] + acc + proj_b_ref[d])

        # ---- MLP branch (stacked over the whole batch) ----
        seq = seq_ref[...]
        h = _layernorm(seq, n2_g_ref[d], n2_b_ref[d])
        h = jnp.dot(_bf16(h), fc1_w_ref[d],
                    preferred_element_type=jnp.float32) + fc1_b_ref[d]
        # exact-erf GELU to match torch.nn.GELU() default
        h = 0.5 * h * (1.0 + lax.erf(h * INV_SQRT2))
        h = jnp.dot(_bf16(h), fc2_w_ref[d],
                    preferred_element_type=jnp.float32) + fc2_b_ref[d]
        seq_ref[...] = seq + h

    # --- final norm, cls rows, classification head, one block store ---
    out = _layernorm(seq_ref[...], ln_g_ref[...], ln_b_ref[...])     # (B*SEQ, E)
    cls_rows = jnp.concatenate(
        [out[b * SEQ:b * SEQ + 1, :] for b in range(B)], axis=0)     # (B, E)
    logits = jnp.dot(_bf16(cls_rows), head_w_ref[...],
                     preferred_element_type=jnp.float32) + head_b_ref[...]
    logits_ref[...] = logits.astype(logits_ref.dtype)


# ---------------- parameter init (deterministic, kernel-friendly layouts) ----
def init_params(key):
    keys = iter(jax.random.split(key, 64))

    def normal(shape, std=0.02, dtype=jnp.bfloat16):
        return (std * jax.random.normal(next(keys), shape)).astype(dtype)

    # PatchEmbed conv (kernel == stride): torch layout (E, C, p, p) reshaped to
    # the matmul layout (C*p*p, E) once, at init time.  Matmul weights live in
    # bf16 (MXU-native); biases / LN params / cls / pos stay f32.
    patch_w_conv = normal((EMBED, IN_CHANS, PATCH, PATCH), dtype=jnp.float32)
    params = {
        "patch_w": patch_w_conv.reshape(EMBED, CPP).T.astype(jnp.bfloat16),  # (CPP, E)
        "patch_b": jnp.zeros((1, EMBED), jnp.float32),
        "pe_norm_g": jnp.ones((1, EMBED), jnp.float32),
        "pe_norm_b": jnp.zeros((1, EMBED), jnp.float32),
        "cls_token": normal((1, EMBED), dtype=jnp.float32),
        "pos_embed": normal((SEQ, EMBED), dtype=jnp.float32),
        "norm_g": jnp.ones((1, EMBED), jnp.float32),
        "norm_b": jnp.zeros((1, EMBED), jnp.float32),
        "head_w": normal((EMBED, NUM_CLASSES)),
        "head_b": jnp.zeros((1, NUM_CLASSES), jnp.float32),
        # per-block weights stacked along a leading depth axis
        "n1_g": jnp.ones((DEPTH, 1, EMBED), jnp.float32),
        "n1_b": jnp.zeros((DEPTH, 1, EMBED), jnp.float32),
        "qkv_w": jnp.stack([normal((EMBED, 3 * EMBED)) for _ in range(DEPTH)]),
        "qkv_b": jnp.zeros((DEPTH, 1, 3 * EMBED), jnp.float32),      # qkv_bias=True
        "proj_w": jnp.stack([normal((EMBED, EMBED)) for _ in range(DEPTH)]),
        "proj_b": jnp.zeros((DEPTH, 1, EMBED), jnp.float32),
        "n2_g": jnp.ones((DEPTH, 1, EMBED), jnp.float32),
        "n2_b": jnp.zeros((DEPTH, 1, EMBED), jnp.float32),
        "fc1_w": jnp.stack([normal((EMBED, MLP_HIDDEN)) for _ in range(DEPTH)]),
        "fc1_b": jnp.zeros((DEPTH, 1, MLP_HIDDEN), jnp.float32),
        "fc2_w": jnp.stack([normal((MLP_HIDDEN, EMBED)) for _ in range(DEPTH)]),
        "fc2_b": jnp.zeros((DEPTH, 1, EMBED), jnp.float32),
    }
    return params


_WEIGHT_ORDER = [
    "patch_w", "patch_b", "pe_norm_g", "pe_norm_b", "cls_token", "pos_embed",
    "n1_g", "n1_b", "qkv_w", "qkv_b", "proj_w", "proj_b",
    "n2_g", "n2_b", "fc1_w", "fc1_b", "fc2_w", "fc2_b",
    "norm_g", "norm_b", "head_w", "head_b",
]


# ---------------- forward pass ----------------
def vit_forward(params, x):
    # x: (B, C, H, W) float32, NCHW like PyTorch
    B, C, H, W = x.shape
    gh, gw, p = H // PATCH, W // PATCH, PATCH

    # Patchify (pure layout; conv kernel == stride).  Everything else runs in
    # the single fused Pallas kernel below.  Batch is folded: (B*P, CPP).
    patches = (
        x.reshape(B, C, gh, p, gw, p)
        .transpose(0, 2, 4, 1, 3, 5)                      # (B, gh, gw, C, p, p)
        .reshape(B * gh * gw, C * p * p)                  # (B*P, CPP)
    )

    weights = [params[name] for name in _WEIGHT_ORDER]

    # No grid: one invocation, every operand is a whole-array, single-buffered
    # VMEM resident (total << 1 MiB on any generation).
    vmem = lambda: pl.BlockSpec(memory_space=pltpu.MemorySpace.VMEM)
    in_specs = [vmem() for _ in range(1 + len(weights))]

    return pl.pallas_call(
        _vit_kernel,
        out_shape=jax.ShapeDtypeStruct((B, NUM_CLASSES), jnp.float32),
        in_specs=in_specs,
        out_specs=vmem(),
        scratch_shapes=[pltpu.VMEM((B * SEQ, EMBED), jnp.float32)],  # residual stream
    )(patches, *weights)


if __name__ == "__main__":
    key = jax.random.PRNGKey(0)
    pkey, xkey = jax.random.split(key)
    params = init_params(pkey)
    x = jax.random.normal(xkey, (2, IN_CHANS, IMG, IMG), dtype=jnp.float32)

    logits = jax.jit(vit_forward)(params, x)
    jax.block_until_ready(logits)
    assert logits.shape == (2, NUM_CLASSES)
    assert bool(jnp.all(jnp.isfinite(logits)))
    print("KERNEL_OK")
</pallas_src>

<mosaic_0001>
module attributes {stable_mosaic.version = 11 : i64} {
  func.func @_vit_kernel(%arg0: memref<32x48xf32, #tpu.memory_space<vmem>>, %arg1: memref<48x64xbf16, #tpu.memory_space<vmem>>, %arg2: memref<1x64xf32, #tpu.memory_space<vmem>>, %arg3: memref<1x64xf32, #tpu.memory_space<vmem>>, %arg4: memref<1x64xf32, #tpu.memory_space<vmem>>, %arg5: memref<1x64xf32, #tpu.memory_space<vmem>>, %arg6: memref<17x64xf32, #tpu.memory_space<vmem>>, %arg7: memref<2x1x64xf32, #tpu.memory_space<vmem>>, %arg8: memref<2x1x64xf32, #tpu.memory_space<vmem>>, %arg9: memref<2x64x192xbf16, #tpu.memory_space<vmem>>, %arg10: memref<2x1x192xf32, #tpu.memory_space<vmem>>, %arg11: memref<2x64x64xbf16, #tpu.memory_space<vmem>>, %arg12: memref<2x1x64xf32, #tpu.memory_space<vmem>>, %arg13: memref<2x1x64xf32, #tpu.memory_space<vmem>>, %arg14: memref<2x1x64xf32, #tpu.memory_space<vmem>>, %arg15: memref<2x64x256xbf16, #tpu.memory_space<vmem>>, %arg16: memref<2x1x256xf32, #tpu.memory_space<vmem>>, %arg17: memref<2x256x64xbf16, #tpu.memory_space<vmem>>, %arg18: memref<2x1x64xf32, #tpu.memory_space<vmem>>, %arg19: memref<1x64xf32, #tpu.memory_space<vmem>>, %arg20: memref<1x64xf32, #tpu.memory_space<vmem>>, %arg21: memref<64x16xbf16, #tpu.memory_space<vmem>>, %arg22: memref<1x16xf32, #tpu.memory_space<vmem>>, %arg23: memref<2x16xf32, #tpu.memory_space<vmem>>, %arg24: memref<34x64xf32, #tpu.memory_space<vmem>>) attributes {dimension_semantics = [], scalar_prefetch = 0 : i64, scratch_operands = 1 : i64, tpu.core_type = #tpu.core_type<tc>} {
    %c0 = arith.constant 0 : index
    %c0_0 = arith.constant 0 : index
    %0 = vector.load %arg0[%c0, %c0_0] : memref<32x48xf32, #tpu.memory_space<vmem>>, vector<32x48xf32>
    %1 = arith.truncf %0 : vector<32x48xf32> to vector<32x48xbf16>
    %c0_1 = arith.constant 0 : index
    %c0_2 = arith.constant 0 : index
    %2 = vector.load %arg1[%c0_1, %c0_2] : memref<48x64xbf16, #tpu.memory_space<vmem>>, vector<48x64xbf16>
    %cst = arith.constant dense<0.000000e+00> : vector<32x64xf32>
    %3 = tpu.matmul %1, %2, %cst {dimension_numbers = #tpu.dot_dimension_numbers<[1], [0], [0], [1], [0, 0, 1, 1], [], []>} : vector<32x48xbf16>, vector<48x64xbf16>, vector<32x64xf32> -> vector<32x64xf32>
    %c0_3 = arith.constant 0 : index
    %c0_4 = arith.constant 0 : index
    %4 = vector.load %arg2[%c0_3, %c0_4] : memref<1x64xf32, #tpu.memory_space<vmem>>, vector<1x64xf32>
    %5 = vector.broadcast %4 : vector<1x64xf32> to vector<32x64xf32>
    %6 = arith.addf %3, %5 : vector<32x64xf32>
    %c0_5 = arith.constant 0 : index
    %c0_6 = arith.constant 0 : index
    %7 = vector.load %arg3[%c0_5, %c0_6] : memref<1x64xf32, #tpu.memory_space<vmem>>, vector<1x64xf32>
    %c0_7 = arith.constant 0 : index
    %c0_8 = arith.constant 0 : index
    %8 = vector.load %arg4[%c0_7, %c0_8] : memref<1x64xf32, #tpu.memory_space<vmem>>, vector<1x64xf32>
    %cst_9 = arith.constant dense<0.000000e+00> : vector<32xf32>
    %9 = vector.multi_reduction <add>, %6, %cst_9 [1] : vector<32x64xf32> to vector<32xf32>
    %10 = vector.shape_cast %9 : vector<32xf32> to vector<32x1xf32>
    %cst_10 = arith.constant 6.400000e+01 : f32
    %11 = vector.broadcast %cst_10 : f32 to vector<32x1xf32>
    %12 = arith.divf %10, %11 : vector<32x1xf32>
    %13 = vector.broadcast %12 : vector<32x1xf32> to vector<32x64xf32>
    %14 = arith.subf %6, %13 : vector<32x64xf32>
    %15 = arith.mulf %14, %14 : vector<32x64xf32>
    %cst_11 = arith.constant dense<0.000000e+00> : vector<32xf32>
    %16 = vector.multi_reduction <add>, %15, %cst_11 [1] : vector<32x64xf32> to vector<32xf32>
    %17 = vector.shape_cast %16 : vector<32xf32> to vector<32x1xf32>
    %cst_12 = arith.constant 6.400000e+01 : f32
    %18 = vector.broadcast %cst_12 : f32 to vector<32x1xf32>
    %19 = arith.divf %17, %18 : vector<32x1xf32>
    %cst_13 = arith.constant 9.99999974E-6 : f32
    %20 = vector.broadcast %cst_13 : f32 to vector<32x1xf32>
    %21 = arith.addf %19, %20 : vector<32x1xf32>
    %22 = math.rsqrt %21 : vector<32x1xf32>
    %23 = vector.broadcast %22 : vector<32x1xf32> to vector<32x64xf32>
    %24 = arith.mulf %14, %23 : vector<32x64xf32>
    %25 = vector.broadcast %7 : vector<1x64xf32> to vector<32x64xf32>
    %26 = arith.mulf %24, %25 : vector<32x64xf32>
    %27 = vector.broadcast %8 : vector<1x64xf32> to vector<32x64xf32>
    %28 = arith.addf %26, %27 : vector<32x64xf32>
    %c0_14 = arith.constant 0 : index
    %c0_15 = arith.constant 0 : index
    %29 = vector.load %arg5[%c0_14, %c0_15] : memref<1x64xf32, #tpu.memory_space<vmem>>, vector<1x64xf32>
    %c0_16 = arith.constant 0 : index
    %c0_17 = arith.constant 0 : index
    %30 = vector.load %arg6[%c0_16, %c0_17] : memref<17x64xf32, #tpu.memory_space<vmem>>, vector<1x64xf32>
    %31 = arith.addf %29, %30 : vector<1x64xf32>
    %c0_18 = arith.constant 0 : index
    %c0_19 = arith.constant 0 : index
    %32 = vector.load %arg24[%c0_18, %c0_19] : memref<34x64xf32, #tpu.memory_space<vmem>>, vector<1x64xf32>
    tpu.vector_store %arg24[%c0_18, %c0_19], %31 {strides = array<i32>} : memref<34x64xf32, #tpu.memory_space<vmem>>, vector<1x64xf32>,
    %33 = vector.extract_strided_slice %28 {offsets = [0, 0], sizes = [16, 64], strides = [1, 1]} : vector<32x64xf32> to vector<16x64xf32>
    %c1 = arith.constant 1 : index
    %c0_20 = arith.constant 0 : index
    %34 = vector.load %arg6[%c1, %c0_20] : memref<17x64xf32, #tpu.memory_space<vmem>>, vector<16x64xf32>
    %35 = arith.addf %33, %34 : vector<16x64xf32>
    %c1_21 = arith.constant 1 : index
    %c0_22 = arith.constant 0 : index
    %36 = vector.load %arg24[%c1_21, %c0_22] : memref<34x64xf32, #tpu.memory_space<vmem>>, vector<16x64xf32>
    tpu.vector_store %arg24[%c1_21, %c0_22], %35 {strides = array<i32>} : memref<34x64xf32, #tpu.memory_space<vmem>>, vector<16x64xf32>,
    %c0_23 = arith.constant 0 : index
    %c0_24 = arith.constant 0 : index
    %37 = vector.load %arg5[%c0_23, %c0_24] : memref<1x64xf32, #tpu.memory_space<vmem>>, vector<1x64xf32>
    %c0_25 = arith.constant 0 : index
    %c0_26 = arith.constant 0 : index
    %38 = vector.load %arg6[%c0_25, %c0_26] : memref<17x64xf32, #tpu.memory_space<vmem>>, vector<1x64xf32>
    %39 = arith.addf %37, %38 : vector<1x64xf32>
    %c17 = arith.constant 17 : index
    %c0_27 = arith.constant 0 : index
    %40 = vector.load %arg24[%c17, %c0_27] : memref<34x64xf32, #tpu.memory_space<vmem>>, vector<1x64xf32>
    tpu.vector_store %arg24[%c17, %c0_27], %39 {strides = array<i32>} : memref<34x64xf32, #tpu.memory_space<vmem>>, vector<1x64xf32>,
    %41 = vector.extract_strided_slice %28 {offsets = [16, 0], sizes = [16, 64], strides = [1, 1]} : vector<32x64xf32> to vector<16x64xf32>
    %c1_28 = arith.constant 1 : index
    %c0_29 = arith.constant 0 : index
    %42 = vector.load %arg6[%c1_28, %c0_29] : memref<17x64xf32, #tpu.memory_space<vmem>>, vector<16x64xf32>
    %43 = arith.addf %41, %42 : vector<16x64xf32>
    %c18 = arith.constant 18 : index
    %c0_30 = arith.constant 0 : index
    %44 = vector.load %arg24[%c18, %c0_30] : memref<34x64xf32, #tpu.memory_space<vmem>>, vector<16x64xf32>
    tpu.vector_store %arg24[%c18, %c0_30], %43 {strides = array<i32>} : memref<34x64xf32, #tpu.memory_space<vmem>>, vector<16x64xf32>,
    %c0_31 = arith.constant 0 : index
    %c0_32 = arith.constant 0 : index
    %45 = vector.load %arg24[%c0_31, %c0_32] : memref<34x64xf32, #tpu.memory_space<vmem>>, vector<34x64xf32>
    %c0_33 = arith.constant 0 : index
    %c0_34 = arith.constant 0 : index
    %c0_35 = arith.constant 0 : index
    %46 = vector.load %arg7[%c0_33, %c0_34, %c0_35] : memref<2x1x64xf32, #tpu.memory_space<vmem>>, vector<1x1x64xf32>
    %47 = vector.shape_cast %46 : vector<1x1x64xf32> to vector<1x64xf32>
    %c0_36 = arith.constant 0 : index
    %c0_37 = arith.constant 0 : index
    %c0_38 = arith.constant 0 : index
    %48 = vector.load %arg8[%c0_36, %c0_37, %c0_38] : memref<2x1x64xf32, #tpu.memory_space<vmem>>, vector<1x1x64xf32>
    %49 = vector.shape_cast %48 : vector<1x1x64xf32> to vector<1x64xf32>
    %cst_39 = arith.constant dense<0.000000e+00> : vector<34xf32>
    %50 = vector.multi_reduction <add>, %45, %cst_39 [1] : vector<34x64xf32> to vector<34xf32>
    %51 = vector.shape_cast %50 : vector<34xf32> to vector<34x1xf32>
    %cst_40 = arith.constant 6.400000e+01 : f32
    %52 = vector.broadcast %cst_40 : f32 to vector<34x1xf32>
    %53 = arith.divf %51, %52 : vector<34x1xf32>
    %54 = vector.broadcast %53 : vector<34x1xf32> to vector<34x64xf32>
    %55 = arith.subf %45, %54 : vector<34x64xf32>
    %56 = arith.mulf %55, %55 : vector<34x64xf32>
    %cst_41 = arith.constant dense<0.000000e+00> : vector<34xf32>
    %57 = vector.multi_reduction <add>, %56, %cst_41 [1] : vector<34x64xf32> to vector<34xf32>
    %58 = vector.shape_cast %57 : vector<34xf32> to vector<34x1xf32>
    %cst_42 = arith.constant 6.400000e+01 : f32
    %59 = vector.broadcast %cst_42 : f32 to vector<34x1xf32>
    %60 = arith.divf %58, %59 : vector<34x1xf32>
    %cst_43 = arith.constant 9.99999974E-6 : f32
    %61 = vector.broadcast %cst_43 : f32 to vector<34x1xf32>
    %62 = arith.addf %60, %61 : vector<34x1xf32>
    %63 = math.rsqrt %62 : vector<34x1xf32>
    %64 = vector.broadcast %63 : vector<34x1xf32> to vector<34x64xf32>
    %65 = arith.mulf %55, %64 : vector<34x64xf32>
    %66 = vector.broadcast %47 : vector<1x64xf32> to vector<34x64xf32>
    %67 = arith.mulf %65, %66 : vector<34x64xf32>
    %68 = vector.broadcast %49 : vector<1x64xf32> to vector<34x64xf32>
    %69 = arith.addf %67, %68 : vector<34x64xf32>
    %70 = arith.truncf %69 : vector<34x64xf32> to vector<34x64xbf16>
    %c0_44 = arith.constant 0 : index
    %c0_45 = arith.constant 0 : index
    %c0_46 = arith.constant 0 : index
    %71 = vector.load %arg9[%c0_44, %c0_45, %c0_46] : memref<2x64x192xbf16, #tpu.memory_space<vmem>>, vector<1x64x192xbf16>
    %72 = vector.shape_cast %71 : vector<1x64x192xbf16> to vector<64x192xbf16>
    %cst_47 = arith.constant dense<0.000000e+00> : vector<34x192xf32>
    %73 = tpu.matmul %70, %72, %cst_47 {dimension_numbers = #tpu.dot_dimension_numbers<[1], [0], [0], [1], [0, 0, 1, 1], [], []>} : vector<34x64xbf16>, vector<64x192xbf16>, vector<34x192xf32> -> vector<34x192xf32>
    %c0_48 = arith.constant 0 : index
    %c0_49 = arith.constant 0 : index
    %c0_50 = arith.constant 0 : index
    %74 = vector.load %arg10[%c0_48, %c0_49, %c0_50] : memref<2x1x192xf32, #tpu.memory_space<vmem>>, vector<1x1x192xf32>
    %75 = vector.shape_cast %74 : vector<1x1x192xf32> to vector<1x192xf32>
    %76 = vector.broadcast %75 : vector<1x192xf32> to vector<34x192xf32>
    %77 = arith.addf %73, %76 : vector<34x192xf32>
    %c0_51 = arith.constant 0 : index
    %c0_52 = arith.constant 0 : index
    %c0_53 = arith.constant 0 : index
    %78 = vector.load %arg11[%c0_51, %c0_52, %c0_53] : memref<2x64x64xbf16, #tpu.memory_space<vmem>>, vector<1x64x64xbf16>
    %79 = vector.shape_cast %78 : vector<1x64x64xbf16> to vector<64x64xbf16>
    %cst_54 = arith.constant 0.000000e+00 : f32
    %80 = vector.broadcast %cst_54 : f32 to vector<17x64xf32>
    %81 = vector.extract_strided_slice %77 {offsets = [0, 0], sizes = [17, 16], strides = [1, 1]} : vector<34x192xf32> to vector<17x16xf32>
    %82 = vector.extract_strided_slice %77 {offsets = [0, 64], sizes = [17, 16], strides = [1, 1]} : vector<34x192xf32> to vector<17x16xf32>
    %83 = vector.extract_strided_slice %77 {offsets = [0, 128], sizes = [17, 16], strides = [1, 1]} : vector<34x192xf32> to vector<17x16xf32>
    %84 = arith.truncf %81 : vector<17x16xf32> to vector<17x16xbf16>
    %85 = arith.truncf %82 : vector<17x16xf32> to vector<17x16xbf16>
    %cst_55 = arith.constant dense<0.000000e+00> : vector<17x17xf32>
    %86 = tpu.matmul %84, %85, %cst_55 {dimension_numbers = #tpu.dot_dimension_numbers<[1], [1], [0], [0], [0, 0, 1, 0], [], []>} : vector<17x16xbf16>, vector<17x16xbf16>, vector<17x17xf32> -> vector<17x17xf32>
    %cst_56 = arith.constant 2.500000e-01 : f32
    %87 = vector.broadcast %cst_56 : f32 to vector<17x17xf32>
    %88 = arith.mulf %86, %87 : vector<17x17xf32>
    %cst_57 = arith.constant dense<0xFF800000> : vector<17xf32>
    %89 = vector.multi_reduction <maximumf>, %88, %cst_57 [1] : vector<17x17xf32> to vector<17xf32>
    %90 = vector.shape_cast %89 : vector<17xf32> to vector<17x1xf32>
    %91 = vector.broadcast %90 : vector<17x1xf32> to vector<17x17xf32>
    %92 = arith.subf %88, %91 : vector<17x17xf32>
    %93 = math.exp %92 : vector<17x17xf32>
    %cst_58 = arith.constant dense<0.000000e+00> : vector<17xf32>
    %94 = vector.multi_reduction <add>, %93, %cst_58 [1] : vector<17x17xf32> to vector<17xf32>
    %95 = vector.shape_cast %94 : vector<17xf32> to vector<17x1xf32>
    %96 = vector.broadcast %95 : vector<17x1xf32> to vector<17x17xf32>
    %97 = arith.divf %93, %96 : vector<17x17xf32>
    %98 = arith.truncf %97 : vector<17x17xf32> to vector<17x17xbf16>
    %99 = arith.truncf %83 : vector<17x16xf32> to vector<17x16xbf16>
    %cst_59 = arith.constant dense<0.000000e+00> : vector<17x16xf32>
    %100 = tpu.matmul %98, %99, %cst_59 {dimension_numbers = #tpu.dot_dimension_numbers<[1], [0], [0], [1], [0, 0, 1, 1], [], []>} : vector<17x17xbf16>, vector<17x16xbf16>, vector<17x16xf32> -> vector<17x16xf32>
    %101 = arith.truncf %100 : vector<17x16xf32> to vector<17x16xbf16>
    %102 = vector.extract_strided_slice %79 {offsets = [0, 0], sizes = [16, 64], strides = [1, 1]} : vector<64x64xbf16> to vector<16x64xbf16>
    %cst_60 = arith.constant dense<0.000000e+00> : vector<17x64xf32>
    %103 = tpu.matmul %101, %102, %cst_60 {dimension_numbers = #tpu.dot_dimension_numbers<[1], [0], [0], [1], [0, 0, 1, 1], [], []>} : vector<17x16xbf16>, vector<16x64xbf16>, vector<17x64xf32> -> vector<17x64xf32>
    %104 = arith.addf %80, %103 : vector<17x64xf32>
    %105 = vector.extract_strided_slice %77 {offsets = [0, 16], sizes = [17, 16], strides = [1, 1]} : vector<34x192xf32> to vector<17x16xf32>
    %106 = vector.extract_strided_slice %77 {offsets = [0, 80], sizes = [17, 16], strides = [1, 1]} : vector<34x192xf32> to vector<17x16xf32>
    %107 = vector.extract_strided_slice %77 {offsets = [0, 144], sizes = [17, 16], strides = [1, 1]} : vector<34x192xf32> to vector<17x16xf32>
    %108 = arith.truncf %105 : vector<17x16xf32> to vector<17x16xbf16>
    %109 = arith.truncf %106 : vector<17x16xf32> to vector<17x16xbf16>
    %cst_61 = arith.constant dense<0.000000e+00> : vector<17x17xf32>
    %110 = tpu.matmul %108, %109, %cst_61 {dimension_numbers = #tpu.dot_dimension_numbers<[1], [1], [0], [0], [0, 0, 1, 0], [], []>} : vector<17x16xbf16>, vector<17x16xbf16>, vector<17x17xf32> -> vector<17x17xf32>
    %cst_62 = arith.constant 2.500000e-01 : f32
    %111 = vector.broadcast %cst_62 : f32 to vector<17x17xf32>
    %112 = arith.mulf %110, %111 : vector<17x17xf32>
    %cst_63 = arith.constant dense<0xFF800000> : vector<17xf32>
    %113 = vector.multi_reduction <maximumf>, %112, %cst_63 [1] : vector<17x17xf32> to vector<17xf32>
    %114 = vector.shape_cast %113 : vector<17xf32> to vector<17x1xf32>
    %115 = vector.broadcast %114 : vector<17x1xf32> to vector<17x17xf32>
    %116 = arith.subf %112, %115 : vector<17x17xf32>
    %117 = math.exp %116 : vector<17x17xf32>
    %cst_64 = arith.constant dense<0.000000e+00> : vector<17xf32>
    %118 = vector.multi_reduction <add>, %117, %cst_64 [1] : vector<17x17xf32> to vector<17xf32>
    %119 = vector.shape_cast %118 : vector<17xf32> to vector<17x1xf32>
    %120 = vector.broadcast %119 : vector<17x1xf32> to vector<17x17xf32>
    %121 = arith.divf %117, %120 : vector<17x17xf32>
    %122 = arith.truncf %121 : vector<17x17xf32> to vector<17x17xbf16>
    %123 = arith.truncf %107 : vector<17x16xf32> to vector<17x16xbf16>
    %cst_65 = arith.constant dense<0.000000e+00> : vector<17x16xf32>
    %124 = tpu.matmul %122, %123, %cst_65 {dimension_numbers = #tpu.dot_dimension_numbers<[1], [0], [0], [1], [0, 0, 1, 1], [], []>} : vector<17x17xbf16>, vector<17x16xbf16>, vector<17x16xf32> -> vector<17x16xf32>
    %125 = arith.truncf %124 : vector<17x16xf32> to vector<17x16xbf16>
    %126 = vector.extract_strided_slice %79 {offsets = [16, 0], sizes = [16, 64], strides = [1, 1]} : vector<64x64xbf16> to vector<16x64xbf16>
    %cst_66 = arith.constant dense<0.000000e+00> : vector<17x64xf32>
    %127 = tpu.matmul %125, %126, %cst_66 {dimension_numbers = #tpu.dot_dimension_numbers<[1], [0], [0], [1], [0, 0, 1, 1], [], []>} : vector<17x16xbf16>, vector<16x64xbf16>, vector<17x64xf32> -> vector<17x64xf32>
    %128 = arith.addf %104, %127 : vector<17x64xf32>
    %129 = vector.extract_strided_slice %77 {offsets = [0, 32], sizes = [17, 16], strides = [1, 1]} : vector<34x192xf32> to vector<17x16xf32>
    %130 = vector.extract_strided_slice %77 {offsets = [0, 96], sizes = [17, 16], strides = [1, 1]} : vector<34x192xf32> to vector<17x16xf32>
    %131 = vector.extract_strided_slice %77 {offsets = [0, 160], sizes = [17, 16], strides = [1, 1]} : vector<34x192xf32> to vector<17x16xf32>
    %132 = arith.truncf %129 : vector<17x16xf32> to vector<17x16xbf16>
    %133 = arith.truncf %130 : vector<17x16xf32> to vector<17x16xbf16>
    %cst_67 = arith.constant dense<0.000000e+00> : vector<17x17xf32>
    %134 = tpu.matmul %132, %133, %cst_67 {dimension_numbers = #tpu.dot_dimension_numbers<[1], [1], [0], [0], [0, 0, 1, 0], [], []>} : vector<17x16xbf16>, vector<17x16xbf16>, vector<17x17xf32> -> vector<17x17xf32>
    %cst_68 = arith.constant 2.500000e-01 : f32
    %135 = vector.broadcast %cst_68 : f32 to vector<17x17xf32>
    %136 = arith.mulf %134, %135 : vector<17x17xf32>
    %cst_69 = arith.constant dense<0xFF800000> : vector<17xf32>
    %137 = vector.multi_reduction <maximumf>, %136, %cst_69 [1] : vector<17x17xf32> to vector<17xf32>
    %138 = vector.shape_cast %137 : vector<17xf32> to vector<17x1xf32>
    %139 = vector.broadcast %138 : vector<17x1xf32> to vector<17x17xf32>
    %140 = arith.subf %136, %139 : vector<17x17xf32>
    %141 = math.exp %140 : vector<17x17xf32>
    %cst_70 = arith.constant dense<0.000000e+00> : vector<17xf32>
    %142 = vector.multi_reduction <add>, %141, %cst_70 [1] : vector<17x17xf32> to vector<17xf32>
    %143 = vector.shape_cast %142 : vector<17xf32> to vector<17x1xf32>
    %144 = vector.broadcast %143 : vector<17x1xf32> to vector<17x17xf32>
    %145 = arith.divf %141, %144 : vector<17x17xf32>
    %146 = arith.truncf %145 : vector<17x17xf32> to vector<17x17xbf16>
    %147 = arith.truncf %131 : vector<17x16xf32> to vector<17x16xbf16>
    %cst_71 = arith.constant dense<0.000000e+00> : vector<17x16xf32>
    %148 = tpu.matmul %146, %147, %cst_71 {dimension_numbers = #tpu.dot_dimension_numbers<[1], [0], [0], [1], [0, 0, 1, 1], [], []>} : vector<17x17xbf16>, vector<17x16xbf16>, vector<17x16xf32> -> vector<17x16xf32>
    %149 = arith.truncf %148 : vector<17x16xf32> to vector<17x16xbf16>
    %150 = vector.extract_strided_slice %79 {offsets = [32, 0], sizes = [16, 64], strides = [1, 1]} : vector<64x64xbf16> to vector<16x64xbf16>
    %cst_72 = arith.constant dense<0.000000e+00> : vector<17x64xf32>
    %151 = tpu.matmul %149, %150, %cst_72 {dimension_numbers = #tpu.dot_dimension_numbers<[1], [0], [0], [1], [0, 0, 1, 1], [], []>} : vector<17x16xbf16>, vector<16x64xbf16>, vector<17x64xf32> -> vector<17x64xf32>
    %152 = arith.addf %128, %151 : vector<17x64xf32>
    %153 = vector.extract_strided_slice %77 {offsets = [0, 48], sizes = [17, 16], strides = [1, 1]} : vector<34x192xf32> to vector<17x16xf32>
    %154 = vector.extract_strided_slice %77 {offsets = [0, 112], sizes = [17, 16], strides = [1, 1]} : vector<34x192xf32> to vector<17x16xf32>
    %155 = vector.extract_strided_slice %77 {offsets = [0, 176], sizes = [17, 16], strides = [1, 1]} : vector<34x192xf32> to vector<17x16xf32>
    %156 = arith.truncf %153 : vector<17x16xf32> to vector<17x16xbf16>
    %157 = arith.truncf %154 : vector<17x16xf32> to vector<17x16xbf16>
    %cst_73 = arith.constant dense<0.000000e+00> : vector<17x17xf32>
    %158 = tpu.matmul %156, %157, %cst_73 {dimension_numbers = #tpu.dot_dimension_numbers<[1], [1], [0], [0], [0, 0, 1, 0], [], []>} : vector<17x16xbf16>, vector<17x16xbf16>, vector<17x17xf32> -> vector<17x17xf32>
    %cst_74 = arith.constant 2.500000e-01 : f32
    %159 = vector.broadcast %cst_74 : f32 to vector<17x17xf32>
    %160 = arith.mulf %158, %159 : vector<17x17xf32>
    %cst_75 = arith.constant dense<0xFF800000> : vector<17xf32>
    %161 = vector.multi_reduction <maximumf>, %160, %cst_75 [1] : vector<17x17xf32> to vector<17xf32>
    %162 = vector.shape_cast %161 : vector<17xf32> to vector<17x1xf32>
    %163 = vector.broadcast %162 : vector<17x1xf32> to vector<17x17xf32>
    %164 = arith.subf %160, %163 : vector<17x17xf32>
    %165 = math.exp %164 : vector<17x17xf32>
    %cst_76 = arith.constant dense<0.000000e+00> : vector<17xf32>
    %166 = vector.multi_reduction <add>, %165, %cst_76 [1] : vector<17x17xf32> to vector<17xf32>
    %167 = vector.shape_cast %166 : vector<17xf32> to vector<17x1xf32>
    %168 = vector.broadcast %167 : vector<17x1xf32> to vector<17x17xf32>
    %169 = arith.divf %165, %168 : vector<17x17xf32>
    %170 = arith.truncf %169 : vector<17x17xf32> to vector<17x17xbf16>
    %171 = arith.truncf %155 : vector<17x16xf32> to vector<17x16xbf16>
    %cst_77 = arith.constant dense<0.000000e+00> : vector<17x16xf32>
    %172 = tpu.matmul %170, %171, %cst_77 {dimension_numbers = #tpu.dot_dimension_numbers<[1], [0], [0], [1], [0, 0, 1, 1], [], []>} : vector<17x17xbf16>, vector<17x16xbf16>, vector<17x16xf32> -> vector<17x16xf32>
    %173 = arith.truncf %172 : vector<17x16xf32> to vector<17x16xbf16>
    %174 = vector.extract_strided_slice %79 {offsets = [48, 0], sizes = [16, 64], strides = [1, 1]} : vector<64x64xbf16> to vector<16x64xbf16>
    %cst_78 = arith.constant dense<0.000000e+00> : vector<17x64xf32>
    %175 = tpu.matmul %173, %174, %cst_78 {dimension_numbers = #tpu.dot_dimension_numbers<[1], [0], [0], [1], [0, 0, 1, 1], [], []>} : vector<17x16xbf16>, vector<16x64xbf16>, vector<17x64xf32> -> vector<17x64xf32>
    %176 = arith.addf %152, %175 : vector<17x64xf32>
    %177 = vector.extract_strided_slice %45 {offsets = [0, 0], sizes = [17, 64], strides = [1, 1]} : vector<34x64xf32> to vector<17x64xf32>
    %178 = arith.addf %177, %176 : vector<17x64xf32>
    %c0_79 = arith.constant 0 : index
    %c0_80 = arith.constant 0 : index
    %c0_81 = arith.constant 0 : index
    %179 = vector.load %arg12[%c0_79, %c0_80, %c0_81] : memref<2x1x64xf32, #tpu.memory_space<vmem>>, vector<1x1x64xf32>
    %180 = vector.shape_cast %179 : vector<1x1x64xf32> to vector<1x64xf32>
    %181 = vector.broadcast %180 : vector<1x64xf32> to vector<17x64xf32>
    %182 = arith.addf %178, %181 : vector<17x64xf32>
    %c0_82 = arith.constant 0 : index
    %c0_83 = arith.constant 0 : index
    %183 = vector.load %arg24[%c0_82, %c0_83] : memref<34x64xf32, #tpu.memory_space<vmem>>, vector<17x64xf32>
    tpu.vector_store %arg24[%c0_82, %c0_83], %182 {strides = array<i32>} : memref<34x64xf32, #tpu.memory_space<vmem>>, vector<17x64xf32>,
    %cst_84 = arith.constant 0.000000e+00 : f32
    %184 = vector.broadcast %cst_84 : f32 to vector<17x64xf32>
    %185 = vector.extract_strided_slice %77 {offsets = [17, 0], sizes = [17, 16], strides = [1, 1]} : vector<34x192xf32> to vector<17x16xf32>
    %186 = vector.extract_strided_slice %77 {offsets = [17, 64], sizes = [17, 16], strides = [1, 1]} : vector<34x192xf32> to vector<17x16xf32>
    %187 = vector.extract_strided_slice %77 {offsets = [17, 128], sizes = [17, 16], strides = [1, 1]} : vector<34x192xf32> to vector<17x16xf32>
    %188 = arith.truncf %185 : vector<17x16xf32> to vector<17x16xbf16>
    %189 = arith.truncf %186 : vector<17x16xf32> to vector<17x16xbf16>
    %cst_85 = arith.constant dense<0.000000e+00> : vector<17x17xf32>
    %190 = tpu.matmul %188, %189, %cst_85 {dimension_numbers = #tpu.dot_dimension_numbers<[1], [1], [0], [0], [0, 0, 1, 0], [], []>} : vector<17x16xbf16>, vector<17x16xbf16>, vector<17x17xf32> -> vector<17x17xf32>
    %cst_86 = arith.constant 2.500000e-01 : f32
    %191 = vector.broadcast %cst_86 : f32 to vector<17x17xf32>
    %192 = arith.mulf %190, %191 : vector<17x17xf32>
    %cst_87 = arith.constant dense<0xFF800000> : vector<17xf32>
    %193 = vector.multi_reduction <maximumf>, %192, %cst_87 [1] : vector<17x17xf32> to vector<17xf32>
    %194 = vector.shape_cast %193 : vector<17xf32> to vector<17x1xf32>
    %195 = vector.broadcast %194 : vector<17x1xf32> to vector<17x17xf32>
    %196 = arith.subf %192, %195 : vector<17x17xf32>
    %197 = math.exp %196 : vector<17x17xf32>
    %cst_88 = arith.constant dense<0.000000e+00> : vector<17xf32>
    %198 = vector.multi_reduction <add>, %197, %cst_88 [1] : vector<17x17xf32> to vector<17xf32>
    %199 = vector.shape_cast %198 : vector<17xf32> to vector<17x1xf32>
    %200 = vector.broadcast %199 : vector<17x1xf32> to vector<17x17xf32>
    %201 = arith.divf %197, %200 : vector<17x17xf32>
    %202 = arith.truncf %201 : vector<17x17xf32> to vector<17x17xbf16>
    %203 = arith.truncf %187 : vector<17x16xf32> to vector<17x16xbf16>
    %cst_89 = arith.constant dense<0.000000e+00> : vector<17x16xf32>
    %204 = tpu.matmul %202, %203, %cst_89 {dimension_numbers = #tpu.dot_dimension_numbers<[1], [0], [0], [1], [0, 0, 1, 1], [], []>} : vector<17x17xbf16>, vector<17x16xbf16>, vector<17x16xf32> -> vector<17x16xf32>
    %205 = arith.truncf %204 : vector<17x16xf32> to vector<17x16xbf16>
    %206 = vector.extract_strided_slice %79 {offsets = [0, 0], sizes = [16, 64], strides = [1, 1]} : vector<64x64xbf16> to vector<16x64xbf16>
    %cst_90 = arith.constant dense<0.000000e+00> : vector<17x64xf32>
    %207 = tpu.matmul %205, %206, %cst_90 {dimension_numbers = #tpu.dot_dimension_numbers<[1], [0], [0], [1], [0, 0, 1, 1], [], []>} : vector<17x16xbf16>, vector<16x64xbf16>, vector<17x64xf32> -> vector<17x64xf32>
    %208 = arith.addf %184, %207 : vector<17x64xf32>
    %209 = vector.extract_strided_slice %77 {offsets = [17, 16], sizes = [17, 16], strides = [1, 1]} : vector<34x192xf32> to vector<17x16xf32>
    %210 = vector.extract_strided_slice %77 {offsets = [17, 80], sizes = [17, 16], strides = [1, 1]} : vector<34x192xf32> to vector<17x16xf32>
    %211 = vector.extract_strided_slice %77 {offsets = [17, 144], sizes = [17, 16], strides = [1, 1]} : vector<34x192xf32> to vector<17x16xf32>
    %212 = arith.truncf %209 : vector<17x16xf32> to vector<17x16xbf16>
    %213 = arith.truncf %210 : vector<17x16xf32> to vector<17x16xbf16>
    %cst_91 = arith.constant dense<0.000000e+00> : vector<17x17xf32>
    %214 = tpu.matmul %212, %213, %cst_91 {dimension_numbers = #tpu.dot_dimension_numbers<[1], [1], [0], [0], [0, 0, 1, 0], [], []>} : vector<17x16xbf16>, vector<17x16xbf16>, vector<17x17xf32> -> vector<17x17xf32>
    %cst_92 = arith.constant 2.500000e-01 : f32
    %215 = vector.broadcast %cst_92 : f32 to vector<17x17xf32>
    %216 = arith.mulf %214, %215 : vector<17x17xf32>
    %cst_93 = arith.constant dense<0xFF800000> : vector<17xf32>
    %217 = vector.multi_reduction <maximumf>, %216, %cst_93 [1] : vector<17x17xf32> to vector<17xf32>
    %218 = vector.shape_cast %217 : vector<17xf32> to vector<17x1xf32>
    %219 = vector.broadcast %218 : vector<17x1xf32> to vector<17x17xf32>
    %220 = arith.subf %216, %219 : vector<17x17xf32>
    %221 = math.exp %220 : vector<17x17xf32>
    %cst_94 = arith.constant dense<0.000000e+00> : vector<17xf32>
    %222 = vector.multi_reduction <add>, %221, %cst_94 [1] : vector<17x17xf32> to vector<17xf32>
    %223 = vector.shape_cast %222 : vector<17xf32> to vector<17x1xf32>
    %224 = vector.broadcast %223 : vector<17x1xf32> to vector<17x17xf32>
    %225 = arith.divf %221, %224 : vector<17x17xf32>
    %226 = arith.truncf %225 : vector<17x17xf32> to vector<17x17xbf16>
    %227 = arith.truncf %211 : vector<17x16xf32> to vector<17x16xbf16>
    %cst_95 = arith.constant dense<0.000000e+00> : vector<17x16xf32>
    %228 = tpu.matmul %226, %227, %cst_95 {dimension_numbers = #tpu.dot_dimension_numbers<[1], [0], [0], [1], [0, 0, 1, 1], [], []>} : vector<17x17xbf16>, vector<17x16xbf16>, vector<17x16xf32> -> vector<17x16xf32>
    %229 = arith.truncf %228 : vector<17x16xf32> to vector<17x16xbf16>
    %230 = vector.extract_strided_slice %79 {offsets = [16, 0], sizes = [16, 64], strides = [1, 1]} : vector<64x64xbf16> to vector<16x64xbf16>
    %cst_96 = arith.constant dense<0.000000e+00> : vector<17x64xf32>
    %231 = tpu.matmul %229, %230, %cst_96 {dimension_numbers = #tpu.dot_dimension_numbers<[1], [0], [0], [1], [0, 0, 1, 1], [], []>} : vector<17x16xbf16>, vector<16x64xbf16>, vector<17x64xf32> -> vector<17x64xf32>
    %232 = arith.addf %208, %231 : vector<17x64xf32>
    %233 = vector.extract_strided_slice %77 {offsets = [17, 32], sizes = [17, 16], strides = [1, 1]} : vector<34x192xf32> to vector<17x16xf32>
    %234 = vector.extract_strided_slice %77 {offsets = [17, 96], sizes = [17, 16], strides = [1, 1]} : vector<34x192xf32> to vector<17x16xf32>
    %235 = vector.extract_strided_slice %77 {offsets = [17, 160], sizes = [17, 16], strides = [1, 1]} : vector<34x192xf32> to vector<17x16xf32>
    %236 = arith.truncf %233 : vector<17x16xf32> to vector<17x16xbf16>
    %237 = arith.truncf %234 : vector<17x16xf32> to vector<17x16xbf16>
    %cst_97 = arith.constant dense<0.000000e+00> : vector<17x17xf32>
    %238 = tpu.matmul %236, %237, %cst_97 {dimension_numbers = #tpu.dot_dimension_numbers<[1], [1], [0], [0], [0, 0, 1, 0], [], []>} : vector<17x16xbf16>, vector<17x16xbf16>, vector<17x17xf32> -> vector<17x17xf32>
    %cst_98 = arith.constant 2.500000e-01 : f32
    %239 = vector.broadcast %cst_98 : f32 to vector<17x17xf32>
    %240 = arith.mulf %238, %239 : vector<17x17xf32>
    %cst_99 = arith.constant dense<0xFF800000> : vector<17xf32>
    %241 = vector.multi_reduction <maximumf>, %240, %cst_99 [1] : vector<17x17xf32> to vector<17xf32>
    %242 = vector.shape_cast %241 : vector<17xf32> to vector<17x1xf32>
    %243 = vector.broadcast %242 : vector<17x1xf32> to vector<17x17xf32>
    %244 = arith.subf %240, %243 : vector<17x17xf32>
    %245 = math.exp %244 : vector<17x17xf32>
    %cst_100 = arith.constant dense<0.000000e+00> : vector<17xf32>
    %246 = vector.multi_reduction <add>, %245, %cst_100 [1] : vector<17x17xf32> to vector<17xf32>
    %247 = vector.shape_cast %246 : vector<17xf32> to vector<17x1xf32>
    %248 = vector.broadcast %247 : vector<17x1xf32> to vector<17x17xf32>
    %249 = arith.divf %245, %248 : vector<17x17xf32>
    %250 = arith.truncf %249 : vector<17x17xf32> to vector<17x17xbf16>
    %251 = arith.truncf %235 : vector<17x16xf32> to vector<17x16xbf16>
    %cst_101 = arith.constant dense<0.000000e+00> : vector<17x16xf32>
    %252 = tpu.matmul %250, %251, %cst_101 {dimension_numbers = #tpu.dot_dimension_numbers<[1], [0], [0], [1], [0, 0, 1, 1], [], []>} : vector<17x17xbf16>, vector<17x16xbf16>, vector<17x16xf32> -> vector<17x16xf32>
    %253 = arith.truncf %252 : vector<17x16xf32> to vector<17x16xbf16>
    %254 = vector.extract_strided_slice %79 {offsets = [32, 0], sizes = [16, 64], strides = [1, 1]} : vector<64x64xbf16> to vector<16x64xbf16>
    %cst_102 = arith.constant dense<0.000000e+00> : vector<17x64xf32>
    %255 = tpu.matmul %253, %254, %cst_102 {dimension_numbers = #tpu.dot_dimension_numbers<[1], [0], [0], [1], [0, 0, 1, 1], [], []>} : vector<17x16xbf16>, vector<16x64xbf16>, vector<17x64xf32> -> vector<17x64xf32>
    %256 = arith.addf %232, %255 : vector<17x64xf32>
    %257 = vector.extract_strided_slice %77 {offsets = [17, 48], sizes = [17, 16], strides = [1, 1]} : vector<34x192xf32> to vector<17x16xf32>
    %258 = vector.extract_strided_slice %77 {offsets = [17, 112], sizes = [17, 16], strides = [1, 1]} : vector<34x192xf32> to vector<17x16xf32>
    %259 = vector.extract_strided_slice %77 {offsets = [17, 176], sizes = [17, 16], strides = [1, 1]} : vector<34x192xf32> to vector<17x16xf32>
    %260 = arith.truncf %257 : vector<17x16xf32> to vector<17x16xbf16>
    %261 = arith.truncf %258 : vector<17x16xf32> to vector<17x16xbf16>
    %cst_103 = arith.constant dense<0.000000e+00> : vector<17x17xf32>
    %262 = tpu.matmul %260, %261, %cst_103 {dimension_numbers = #tpu.dot_dimension_numbers<[1], [1], [0], [0], [0, 0, 1, 0], [], []>} : vector<17x16xbf16>, vector<17x16xbf16>, vector<17x17xf32> -> vector<17x17xf32>
    %cst_104 = arith.constant 2.500000e-01 : f32
    %263 = vector.broadcast %cst_104 : f32 to vector<17x17xf32>
    %264 = arith.mulf %262, %263 : vector<17x17xf32>
    %cst_105 = arith.constant dense<0xFF800000> : vector<17xf32>
    %265 = vector.multi_reduction <maximumf>, %264, %cst_105 [1] : vector<17x17xf32> to vector<17xf32>
    %266 = vector.shape_cast %265 : vector<17xf32> to vector<17x1xf32>
    %267 = vector.broadcast %266 : vector<17x1xf32> to vector<17x17xf32>
    %268 = arith.subf %264, %267 : vector<17x17xf32>
    %269 = math.exp %268 : vector<17x17xf32>
    %cst_106 = arith.constant dense<0.000000e+00> : vector<17xf32>
    %270 = vector.multi_reduction <add>, %269, %cst_106 [1] : vector<17x17xf32> to vector<17xf32>
    %271 = vector.shape_cast %270 : vector<17xf32> to vector<17x1xf32>
    %272 = vector.broadcast %271 : vector<17x1xf32> to vector<17x17xf32>
    %273 = arith.divf %269, %272 : vector<17x17xf32>
    %274 = arith.truncf %273 : vector<17x17xf32> to vector<17x17xbf16>
    %275 = arith.truncf %259 : vector<17x16xf32> to vector<17x16xbf16>
    %cst_107 = arith.constant dense<0.000000e+00> : vector<17x16xf32>
    %276 = tpu.matmul %274, %275, %cst_107 {dimension_numbers = #tpu.dot_dimension_numbers<[1], [0], [0], [1], [0, 0, 1, 1], [], []>} : vector<17x17xbf16>, vector<17x16xbf16>, vector<17x16xf32> -> vector<17x16xf32>
    %277 = arith.truncf %276 : vector<17x16xf32> to vector<17x16xbf16>
    %278 = vector.extract_strided_slice %79 {offsets = [48, 0], sizes = [16, 64], strides = [1, 1]} : vector<64x64xbf16> to vector<16x64xbf16>
    %cst_108 = arith.constant dense<0.000000e+00> : vector<17x64xf32>
    %279 = tpu.matmul %277, %278, %cst_108 {dimension_numbers = #tpu.dot_dimension_numbers<[1], [0], [0], [1], [0, 0, 1, 1], [], []>} : vector<17x16xbf16>, vector<16x64xbf16>, vector<17x64xf32> -> vector<17x64xf32>
    %280 = arith.addf %256, %279 : vector<17x64xf32>
    %281 = vector.extract_strided_slice %45 {offsets = [17, 0], sizes = [17, 64], strides = [1, 1]} : vector<34x64xf32> to vector<17x64xf32>
    %282 = arith.addf %281, %280 : vector<17x64xf32>
    %c0_109 = arith.constant 0 : index
    %c0_110 = arith.constant 0 : index
    %c0_111 = arith.constant 0 : index
    %283 = vector.load %arg12[%c0_109, %c0_110, %c0_111] : memref<2x1x64xf32, #tpu.memory_space<vmem>>, vector<1x1x64xf32>
    %284 = vector.shape_cast %283 : vector<1x1x64xf32> to vector<1x64xf32>
    %285 = vector.broadcast %284 : vector<1x64xf32> to vector<17x64xf32>
    %286 = arith.addf %282, %285 : vector<17x64xf32>
    %c17_112 = arith.constant 17 : index
    %c0_113 = arith.constant 0 : index
    %287 = vector.load %arg24[%c17_112, %c0_113] : memref<34x64xf32, #tpu.memory_space<vmem>>, vector<17x64xf32>
    tpu.vector_store %arg24[%c17_112, %c0_113], %286 {strides = array<i32>} : memref<34x64xf32, #tpu.memory_space<vmem>>, vector<17x64xf32>,
    %c0_114 = arith.constant 0 : index
    %c0_115 = arith.constant 0 : index
    %288 = vector.load %arg24[%c0_114, %c0_115] : memref<34x64xf32, #tpu.memory_space<vmem>>, vector<34x64xf32>
    %c0_116 = arith.constant 0 : index
    %c0_117 = arith.constant 0 : index
    %c0_118 = arith.constant 0 : index
    %289 = vector.load %arg13[%c0_116, %c0_117, %c0_118] : memref<2x1x64xf32, #tpu.memory_space<vmem>>, vector<1x1x64xf32>
    %290 = vector.shape_cast %289 : vector<1x1x64xf32> to vector<1x64xf32>
    %c0_119 = arith.constant 0 : index
    %c0_120 = arith.constant 0 : index
    %c0_121 = arith.constant 0 : index
    %291 = vector.load %arg14[%c0_119, %c0_120, %c0_121] : memref<2x1x64xf32, #tpu.memory_space<vmem>>, vector<1x1x64xf32>
    %292 = vector.shape_cast %291 : vector<1x1x64xf32> to vector<1x64xf32>
    %cst_122 = arith.constant dense<0.000000e+00> : vector<34xf32>
    %293 = vector.multi_reduction <add>, %288, %cst_122 [1] : vector<34x64xf32> to vector<34xf32>
    %294 = vector.shape_cast %293 : vector<34xf32> to vector<34x1xf32>
    %cst_123 = arith.constant 6.400000e+01 : f32
    %295 = vector.broadcast %cst_123 : f32 to vector<34x1xf32>
    %296 = arith.divf %294, %295 : vector<34x1xf32>
    %297 = vector.broadcast %296 : vector<34x1xf32> to vector<34x64xf32>
    %298 = arith.subf %288, %297 : vector<34x64xf32>
    %299 = arith.mulf %298, %298 : vector<34x64xf32>
    %cst_124 = arith.constant dense<0.000000e+00> : vector<34xf32>
    %300 = vector.multi_reduction <add>, %299, %cst_124 [1] : vector<34x64xf32> to vector<34xf32>
    %301 = vector.shape_cast %300 : vector<34xf32> to vector<34x1xf32>
    %cst_125 = arith.constant 6.400000e+01 : f32
    %302 = vector.broadcast %cst_125 : f32 to vector<34x1xf32>
    %303 = arith.divf %301, %302 : vector<34x1xf32>
    %cst_126 = arith.constant 9.99999974E-6 : f32
    %304 = vector.broadcast %cst_126 : f32 to vector<34x1xf32>
    %305 = arith.addf %303, %304 : vector<34x1xf32>
    %306 = math.rsqrt %305 : vector<34x1xf32>
    %307 = vector.broadcast %306 : vector<34x1xf32> to vector<34x64xf32>
    %308 = arith.mulf %298, %307 : vector<34x64xf32>
    %309 = vector.broadcast %290 : vector<1x64xf32> to vector<34x64xf32>
    %310 = arith.mulf %308, %309 : vector<34x64xf32>
    %311 = vector.broadcast %292 : vector<1x64xf32> to vector<34x64xf32>
    %312 = arith.addf %310, %311 : vector<34x64xf32>
    %313 = arith.truncf %312 : vector<34x64xf32> to vector<34x64xbf16>
    %c0_127 = arith.constant 0 : index
    %c0_128 = arith.constant 0 : index
    %c0_129 = arith.constant 0 : index
    %314 = vector.load %arg15[%c0_127, %c0_128, %c0_129] : memref<2x64x256xbf16, #tpu.memory_space<vmem>>, vector<1x64x256xbf16>
    %315 = vector.shape_cast %314 : vector<1x64x256xbf16> to vector<64x256xbf16>
    %cst_130 = arith.constant dense<0.000000e+00> : vector<34x256xf32>
    %316 = tpu.matmul %313, %315, %cst_130 {dimension_numbers = #tpu.dot_dimension_numbers<[1], [0], [0], [1], [0, 0, 1, 1], [], []>} : vector<34x64xbf16>, vector<64x256xbf16>, vector<34x256xf32> -> vector<34x256xf32>
    %c0_131 = arith.constant 0 : index
    %c0_132 = arith.constant 0 : index
    %c0_133 = arith.constant 0 : index
    %317 = vector.load %arg16[%c0_131, %c0_132, %c0_133] : memref<2x1x256xf32, #tpu.memory_space<vmem>>, vector<1x1x256xf32>
    %318 = vector.shape_cast %317 : vector<1x1x256xf32> to vector<1x256xf32>
    %319 = vector.broadcast %318 : vector<1x256xf32> to vector<34x256xf32>
    %320 = arith.addf %316, %319 : vector<34x256xf32>
    %cst_134 = arith.constant 5.000000e-01 : f32
    %321 = vector.broadcast %cst_134 : f32 to vector<34x256xf32>
    %322 = arith.mulf %321, %320 : vector<34x256xf32>
    %cst_135 = arith.constant 0.707106769 : f32
    %323 = vector.broadcast %cst_135 : f32 to vector<34x256xf32>
    %324 = arith.mulf %320, %323 : vector<34x256xf32>
    %325 = math.erf %324 : vector<34x256xf32>
    %cst_136 = arith.constant 1.000000e+00 : f32
    %326 = vector.broadcast %cst_136 : f32 to vector<34x256xf32>
    %327 = arith.addf %326, %325 : vector<34x256xf32>
    %328 = arith.mulf %322, %327 : vector<34x256xf32>
    %329 = arith.truncf %328 : vector<34x256xf32> to vector<34x256xbf16>
    %c0_137 = arith.constant 0 : index
    %c0_138 = arith.constant 0 : index
    %c0_139 = arith.constant 0 : index
    %330 = vector.load %arg17[%c0_137, %c0_138, %c0_139] : memref<2x256x64xbf16, #tpu.memory_space<vmem>>, vector<1x256x64xbf16>
    %331 = vector.shape_cast %330 : vector<1x256x64xbf16> to vector<256x64xbf16>
    %cst_140 = arith.constant dense<0.000000e+00> : vector<34x64xf32>
    %332 = tpu.matmul %329, %331, %cst_140 {dimension_numbers = #tpu.dot_dimension_numbers<[1], [0], [0], [1], [0, 0, 1, 1], [], []>} : vector<34x256xbf16>, vector<256x64xbf16>, vector<34x64xf32> -> vector<34x64xf32>
    %c0_141 = arith.constant 0 : index
    %c0_142 = arith.constant 0 : index
    %c0_143 = arith.constant 0 : index
    %333 = vector.load %arg18[%c0_141, %c0_142, %c0_143] : memref<2x1x64xf32, #tpu.memory_space<vmem>>, vector<1x1x64xf32>
    %334 = vector.shape_cast %333 : vector<1x1x64xf32> to vector<1x64xf32>
    %335 = vector.broadcast %334 : vector<1x64xf32> to vector<34x64xf32>
    %336 = arith.addf %332, %335 : vector<34x64xf32>
    %337 = arith.addf %288, %336 : vector<34x64xf32>
    %c0_144 = arith.constant 0 : index
    %c0_145 = arith.constant 0 : index
    %338 = vector.load %arg24[%c0_144, %c0_145] : memref<34x64xf32, #tpu.memory_space<vmem>>, vector<34x64xf32>
    tpu.vector_store %arg24[%c0_144, %c0_145], %337 {strides = array<i32>} : memref<34x64xf32, #tpu.memory_space<vmem>>, vector<34x64xf32>,
    %c0_146 = arith.constant 0 : index
    %c0_147 = arith.constant 0 : index
    %339 = vector.load %arg24[%c0_146, %c0_147] : memref<34x64xf32, #tpu.memory_space<vmem>>, vector<34x64xf32>
    %c1_148 = arith.constant 1 : index
    %c0_149 = arith.constant 0 : index
    %c0_150 = arith.constant 0 : index
    %340 = vector.load %arg7[%c1_148, %c0_149, %c0_150] : memref<2x1x64xf32, #tpu.memory_space<vmem>>, vector<1x1x64xf32>
    %341 = vector.shape_cast %340 : vector<1x1x64xf32> to vector<1x64xf32>
    %c1_151 = arith.constant 1 : index
    %c0_152 = arith.constant 0 : index
    %c0_153 = arith.constant 0 : index
    %342 = vector.load %arg8[%c1_151, %c0_152, %c0_153] : memref<2x1x64xf32, #tpu.memory_space<vmem>>, vector<1x1x64xf32>
    %343 = vector.shape_cast %342 : vector<1x1x64xf32> to vector<1x64xf32>
    %cst_154 = arith.constant dense<0.000000e+00> : vector<34xf32>
    %344 = vector.multi_reduction <add>, %339, %cst_154 [1] : vector<34x64xf32> to vector<34xf32>
    %345 = vector.shape_cast %344 : vector<34xf32> to vector<34x1xf32>
    %cst_155 = arith.constant 6.400000e+01 : f32
    %346 = vector.broadcast %cst_155 : f32 to vector<34x1xf32>
    %347 = arith.divf %345, %346 : vector<34x1xf32>
    %348 = vector.broadcast %347 : vector<34x1xf32> to vector<34x64xf32>
    %349 = arith.subf %339, %348 : vector<34x64xf32>
    %350 = arith.mulf %349, %349 : vector<34x64xf32>
    %cst_156 = arith.constant dense<0.000000e+00> : vector<34xf32>
    %351 = vector.multi_reduction <add>, %350, %cst_156 [1] : vector<34x64xf32> to vector<34xf32>
    %352 = vector.shape_cast %351 : vector<34xf32> to vector<34x1xf32>
    %cst_157 = arith.constant 6.400000e+01 : f32
    %353 = vector.broadcast %cst_157 : f32 to vector<34x1xf32>
    %354 = arith.divf %352, %353 : vector<34x1xf32>
    %cst_158 = arith.constant 9.99999974E-6 : f32
    %355 = vector.broadcast %cst_158 : f32 to vector<34x1xf32>
    %356 = arith.addf %354, %355 : vector<34x1xf32>
    %357 = math.rsqrt %356 : vector<34x1xf32>
    %358 = vector.broadcast %357 : vector<34x1xf32> to vector<34x64xf32>
    %359 = arith.mulf %349, %358 : vector<34x64xf32>
    %360 = vector.broadcast %341 : vector<1x64xf32> to vector<34x64xf32>
    %361 = arith.mulf %359, %360 : vector<34x64xf32>
    %362 = vector.broadcast %343 : vector<1x64xf32> to vector<34x64xf32>
    %363 = arith.addf %361, %362 : vector<34x64xf32>
    %364 = arith.truncf %363 : vector<34x64xf32> to vector<34x64xbf16>
    %c1_159 = arith.constant 1 : index
    %c0_160 = arith.constant 0 : index
    %c0_161 = arith.constant 0 : index
    %365 = vector.load %arg9[%c1_159, %c0_160, %c0_161] : memref<2x64x192xbf16, #tpu.memory_space<vmem>>, vector<1x64x192xbf16>
    %366 = vector.shape_cast %365 : vector<1x64x192xbf16> to vector<64x192xbf16>
    %cst_162 = arith.constant dense<0.000000e+00> : vector<34x192xf32>
    %367 = tpu.matmul %364, %366, %cst_162 {dimension_numbers = #tpu.dot_dimension_numbers<[1], [0], [0], [1], [0, 0, 1, 1], [], []>} : vector<34x64xbf16>, vector<64x192xbf16>, vector<34x192xf32> -> vector<34x192xf32>
    %c1_163 = arith.constant 1 : index
    %c0_164 = arith.constant 0 : index
    %c0_165 = arith.constant 0 : index
    %368 = vector.load %arg10[%c1_163, %c0_164, %c0_165] : memref<2x1x192xf32, #tpu.memory_space<vmem>>, vector<1x1x192xf32>
    %369 = vector.shape_cast %368 : vector<1x1x192xf32> to vector<1x192xf32>
    %370 = vector.broadcast %369 : vector<1x192xf32> to vector<34x192xf32>
    %371 = arith.addf %367, %370 : vector<34x192xf32>
    %c1_166 = arith.constant 1 : index
    %c0_167 = arith.constant 0 : index
    %c0_168 = arith.constant 0 : index
    %372 = vector.load %arg11[%c1_166, %c0_167, %c0_168] : memref<2x64x64xbf16, #tpu.memory_space<vmem>>, vector<1x64x64xbf16>
    %373 = vector.shape_cast %372 : vector<1x64x64xbf16> to vector<64x64xbf16>
    %cst_169 = arith.constant 0.000000e+00 : f32
    %374 = vector.broadcast %cst_169 : f32 to vector<17x64xf32>
    %375 = vector.extract_strided_slice %371 {offsets = [0, 0], sizes = [17, 16], strides = [1, 1]} : vector<34x192xf32> to vector<17x16xf32>
    %376 = vector.extract_strided_slice %371 {offsets = [0, 64], sizes = [17, 16], strides = [1, 1]} : vector<34x192xf32> to vector<17x16xf32>
    %377 = vector.extract_strided_slice %371 {offsets = [0, 128], sizes = [17, 16], strides = [1, 1]} : vector<34x192xf32> to vector<17x16xf32>
    %378 = arith.truncf %375 : vector<17x16xf32> to vector<17x16xbf16>
    %379 = arith.truncf %376 : vector<17x16xf32> to vector<17x16xbf16>
    %cst_170 = arith.constant dense<0.000000e+00> : vector<17x17xf32>
    %380 = tpu.matmul %378, %379, %cst_170 {dimension_numbers = #tpu.dot_dimension_numbers<[1], [1], [0], [0], [0, 0, 1, 0], [], []>} : vector<17x16xbf16>, vector<17x16xbf16>, vector<17x17xf32> -> vector<17x17xf32>
    %cst_171 = arith.constant 2.500000e-01 : f32
    %381 = vector.broadcast %cst_171 : f32 to vector<17x17xf32>
    %382 = arith.mulf %380, %381 : vector<17x17xf32>
    %cst_172 = arith.constant dense<0xFF800000> : vector<17xf32>
    %383 = vector.multi_reduction <maximumf>, %382, %cst_172 [1] : vector<17x17xf32> to vector<17xf32>
    %384 = vector.shape_cast %383 : vector<17xf32> to vector<17x1xf32>
    %385 = vector.broadcast %384 : vector<17x1xf32> to vector<17x17xf32>
    %386 = arith.subf %382, %385 : vector<17x17xf32>
    %387 = math.exp %386 : vector<17x17xf32>
    %cst_173 = arith.constant dense<0.000000e+00> : vector<17xf32>
    %388 = vector.multi_reduction <add>, %387, %cst_173 [1] : vector<17x17xf32> to vector<17xf32>
    %389 = vector.shape_cast %388 : vector<17xf32> to vector<17x1xf32>
    %390 = vector.broadcast %389 : vector<17x1xf32> to vector<17x17xf32>
    %391 = arith.divf %387, %390 : vector<17x17xf32>
    %392 = arith.truncf %391 : vector<17x17xf32> to vector<17x17xbf16>
    %393 = arith.truncf %377 : vector<17x16xf32> to vector<17x16xbf16>
    %cst_174 = arith.constant dense<0.000000e+00> : vector<17x16xf32>
    %394 = tpu.matmul %392, %393, %cst_174 {dimension_numbers = #tpu.dot_dimension_numbers<[1], [0], [0], [1], [0, 0, 1, 1], [], []>} : vector<17x17xbf16>, vector<17x16xbf16>, vector<17x16xf32> -> vector<17x16xf32>
    %395 = arith.truncf %394 : vector<17x16xf32> to vector<17x16xbf16>
    %396 = vector.extract_strided_slice %373 {offsets = [0, 0], sizes = [16, 64], strides = [1, 1]} : vector<64x64xbf16> to vector<16x64xbf16>
    %cst_175 = arith.constant dense<0.000000e+00> : vector<17x64xf32>
    %397 = tpu.matmul %395, %396, %cst_175 {dimension_numbers = #tpu.dot_dimension_numbers<[1], [0], [0], [1], [0, 0, 1, 1], [], []>} : vector<17x16xbf16>, vector<16x64xbf16>, vector<17x64xf32> -> vector<17x64xf32>
    %398 = arith.addf %374, %397 : vector<17x64xf32>
    %399 = vector.extract_strided_slice %371 {offsets = [0, 16], sizes = [17, 16], strides = [1, 1]} : vector<34x192xf32> to vector<17x16xf32>
    %400 = vector.extract_strided_slice %371 {offsets = [0, 80], sizes = [17, 16], strides = [1, 1]} : vector<34x192xf32> to vector<17x16xf32>
    %401 = vector.extract_strided_slice %371 {offsets = [0, 144], sizes = [17, 16], strides = [1, 1]} : vector<34x192xf32> to vector<17x16xf32>
    %402 = arith.truncf %399 : vector<17x16xf32> to vector<17x16xbf16>
    %403 = arith.truncf %400 : vector<17x16xf32> to vector<17x16xbf16>
    %cst_176 = arith.constant dense<0.000000e+00> : vector<17x17xf32>
    %404 = tpu.matmul %402, %403, %cst_176 {dimension_numbers = #tpu.dot_dimension_numbers<[1], [1], [0], [0], [0, 0, 1, 0], [], []>} : vector<17x16xbf16>, vector<17x16xbf16>, vector<17x17xf32> -> vector<17x17xf32>
    %cst_177 = arith.constant 2.500000e-01 : f32
    %405 = vector.broadcast %cst_177 : f32 to vector<17x17xf32>
    %406 = arith.mulf %404, %405 : vector<17x17xf32>
    %cst_178 = arith.constant dense<0xFF800000> : vector<17xf32>
    %407 = vector.multi_reduction <maximumf>, %406, %cst_178 [1] : vector<17x17xf32> to vector<17xf32>
    %408 = vector.shape_cast %407 : vector<17xf32> to vector<17x1xf32>
    %409 = vector.broadcast %408 : vector<17x1xf32> to vector<17x17xf32>
    %410 = arith.subf %406, %409 : vector<17x17xf32>
    %411 = math.exp %410 : vector<17x17xf32>
    %cst_179 = arith.constant dense<0.000000e+00> : vector<17xf32>
    %412 = vector.multi_reduction <add>, %411, %cst_179 [1] : vector<17x17xf32> to vector<17xf32>
    %413 = vector.shape_cast %412 : vector<17xf32> to vector<17x1xf32>
    %414 = vector.broadcast %413 : vector<17x1xf32> to vector<17x17xf32>
    %415 = arith.divf %411, %414 : vector<17x17xf32>
    %416 = arith.truncf %415 : vector<17x17xf32> to vector<17x17xbf16>
    %417 = arith.truncf %401 : vector<17x16xf32> to vector<17x16xbf16>
    %cst_180 = arith.constant dense<0.000000e+00> : vector<17x16xf32>
    %418 = tpu.matmul %416, %417, %cst_180 {dimension_numbers = #tpu.dot_dimension_numbers<[1], [0], [0], [1], [0, 0, 1, 1], [], []>} : vector<17x17xbf16>, vector<17x16xbf16>, vector<17x16xf32> -> vector<17x16xf32>
    %419 = arith.truncf %418 : vector<17x16xf32> to vector<17x16xbf16>
    %420 = vector.extract_strided_slice %373 {offsets = [16, 0], sizes = [16, 64], strides = [1, 1]} : vector<64x64xbf16> to vector<16x64xbf16>
    %cst_181 = arith.constant dense<0.000000e+00> : vector<17x64xf32>
    %421 = tpu.matmul %419, %420, %cst_181 {dimension_numbers = #tpu.dot_dimension_numbers<[1], [0], [0], [1], [0, 0, 1, 1], [], []>} : vector<17x16xbf16>, vector<16x64xbf16>, vector<17x64xf32> -> vector<17x64xf32>
    %422 = arith.addf %398, %421 : vector<17x64xf32>
    %423 = vector.extract_strided_slice %371 {offsets = [0, 32], sizes = [17, 16], strides = [1, 1]} : vector<34x192xf32> to vector<17x16xf32>
    %424 = vector.extract_strided_slice %371 {offsets = [0, 96], sizes = [17, 16], strides = [1, 1]} : vector<34x192xf32> to vector<17x16xf32>
    %425 = vector.extract_strided_slice %371 {offsets = [0, 160], sizes = [17, 16], strides = [1, 1]} : vector<34x192xf32> to vector<17x16xf32>
    %426 = arith.truncf %423 : vector<17x16xf32> to vector<17x16xbf16>
    %427 = arith.truncf %424 : vector<17x16xf32> to vector<17x16xbf16>
    %cst_182 = arith.constant dense<0.000000e+00> : vector<17x17xf32>
    %428 = tpu.matmul %426, %427, %cst_182 {dimension_numbers = #tpu.dot_dimension_numbers<[1], [1], [0], [0], [0, 0, 1, 0], [], []>} : vector<17x16xbf16>, vector<17x16xbf16>, vector<17x17xf32> -> vector<17x17xf32>
    %cst_183 = arith.constant 2.500000e-01 : f32
    %429 = vector.broadcast %cst_183 : f32 to vector<17x17xf32>
    %430 = arith.mulf %428, %429 : vector<17x17xf32>
    %cst_184 = arith.constant dense<0xFF800000> : vector<17xf32>
    %431 = vector.multi_reduction <maximumf>, %430, %cst_184 [1] : vector<17x17xf32> to vector<17xf32>
    %432 = vector.shape_cast %431 : vector<17xf32> to vector<17x1xf32>
    %433 = vector.broadcast %432 : vector<17x1xf32> to vector<17x17xf32>
    %434 = arith.subf %430, %433 : vector<17x17xf32>
    %435 = math.exp %434 : vector<17x17xf32>
    %cst_185 = arith.constant dense<0.000000e+00> : vector<17xf32>
    %436 = vector.multi_reduction <add>, %435, %cst_185 [1] : vector<17x17xf32> to vector<17xf32>
    %437 = vector.shape_cast %436 : vector<17xf32> to vector<17x1xf32>
    %438 = vector.broadcast %437 : vector<17x1xf32> to vector<17x17xf32>
    %439 = arith.divf %435, %438 : vector<17x17xf32>
    %440 = arith.truncf %439 : vector<17x17xf32> to vector<17x17xbf16>
    %441 = arith.truncf %425 : vector<17x16xf32> to vector<17x16xbf16>
    %cst_186 = arith.constant dense<0.000000e+00> : vector<17x16xf32>
    %442 = tpu.matmul %440, %441, %cst_186 {dimension_numbers = #tpu.dot_dimension_numbers<[1], [0], [0], [1], [0, 0, 1, 1], [], []>} : vector<17x17xbf16>, vector<17x16xbf16>, vector<17x16xf32> -> vector<17x16xf32>
    %443 = arith.truncf %442 : vector<17x16xf32> to vector<17x16xbf16>
    %444 = vector.extract_strided_slice %373 {offsets = [32, 0], sizes = [16, 64], strides = [1, 1]} : vector<64x64xbf16> to vector<16x64xbf16>
    %cst_187 = arith.constant dense<0.000000e+00> : vector<17x64xf32>
    %445 = tpu.matmul %443, %444, %cst_187 {dimension_numbers = #tpu.dot_dimension_numbers<[1], [0], [0], [1], [0, 0, 1, 1], [], []>} : vector<17x16xbf16>, vector<16x64xbf16>, vector<17x64xf32> -> vector<17x64xf32>
    %446 = arith.addf %422, %445 : vector<17x64xf32>
    %447 = vector.extract_strided_slice %371 {offsets = [0, 48], sizes = [17, 16], strides = [1, 1]} : vector<34x192xf32> to vector<17x16xf32>
    %448 = vector.extract_strided_slice %371 {offsets = [0, 112], sizes = [17, 16], strides = [1, 1]} : vector<34x192xf32> to vector<17x16xf32>
    %449 = vector.extract_strided_slice %371 {offsets = [0, 176], sizes = [17, 16], strides = [1, 1]} : vector<34x192xf32> to vector<17x16xf32>
    %450 = arith.truncf %447 : vector<17x16xf32> to vector<17x16xbf16>
    %451 = arith.truncf %448 : vector<17x16xf32> to vector<17x16xbf16>
    %cst_188 = arith.constant dense<0.000000e+00> : vector<17x17xf32>
    %452 = tpu.matmul %450, %451, %cst_188 {dimension_numbers = #tpu.dot_dimension_numbers<[1], [1], [0], [0], [0, 0, 1, 0], [], []>} : vector<17x16xbf16>, vector<17x16xbf16>, vector<17x17xf32> -> vector<17x17xf32>
    %cst_189 = arith.constant 2.500000e-01 : f32
    %453 = vector.broadcast %cst_189 : f32 to vector<17x17xf32>
    %454 = arith.mulf %452, %453 : vector<17x17xf32>
    %cst_190 = arith.constant dense<0xFF800000> : vector<17xf32>
    %455 = vector.multi_reduction <maximumf>, %454, %cst_190 [1] : vector<17x17xf32> to vector<17xf32>
    %456 = vector.shape_cast %455 : vector<17xf32> to vector<17x1xf32>
    %457 = vector.broadcast %456 : vector<17x1xf32> to vector<17x17xf32>
    %458 = arith.subf %454, %457 : vector<17x17xf32>
    %459 = math.exp %458 : vector<17x17xf32>
    %cst_191 = arith.constant dense<0.000000e+00> : vector<17xf32>
    %460 = vector.multi_reduction <add>, %459, %cst_191 [1] : vector<17x17xf32> to vector<17xf32>
    %461 = vector.shape_cast %460 : vector<17xf32> to vector<17x1xf32>
    %462 = vector.broadcast %461 : vector<17x1xf32> to vector<17x17xf32>
    %463 = arith.divf %459, %462 : vector<17x17xf32>
    %464 = arith.truncf %463 : vector<17x17xf32> to vector<17x17xbf16>
    %465 = arith.truncf %449 : vector<17x16xf32> to vector<17x16xbf16>
    %cst_192 = arith.constant dense<0.000000e+00> : vector<17x16xf32>
    %466 = tpu.matmul %464, %465, %cst_192 {dimension_numbers = #tpu.dot_dimension_numbers<[1], [0], [0], [1], [0, 0, 1, 1], [], []>} : vector<17x17xbf16>, vector<17x16xbf16>, vector<17x16xf32> -> vector<17x16xf32>
    %467 = arith.truncf %466 : vector<17x16xf32> to vector<17x16xbf16>
    %468 = vector.extract_strided_slice %373 {offsets = [48, 0], sizes = [16, 64], strides = [1, 1]} : vector<64x64xbf16> to vector<16x64xbf16>
    %cst_193 = arith.constant dense<0.000000e+00> : vector<17x64xf32>
    %469 = tpu.matmul %467, %468, %cst_193 {dimension_numbers = #tpu.dot_dimension_numbers<[1], [0], [0], [1], [0, 0, 1, 1], [], []>} : vector<17x16xbf16>, vector<16x64xbf16>, vector<17x64xf32> -> vector<17x64xf32>
    %470 = arith.addf %446, %469 : vector<17x64xf32>
    %471 = vector.extract_strided_slice %339 {offsets = [0, 0], sizes = [17, 64], strides = [1, 1]} : vector<34x64xf32> to vector<17x64xf32>
    %472 = arith.addf %471, %470 : vector<17x64xf32>
    %c1_194 = arith.constant 1 : index
    %c0_195 = arith.constant 0 : index
    %c0_196 = arith.constant 0 : index
    %473 = vector.load %arg12[%c1_194, %c0_195, %c0_196] : memref<2x1x64xf32, #tpu.memory_space<vmem>>, vector<1x1x64xf32>
    %474 = vector.shape_cast %473 : vector<1x1x64xf32> to vector<1x64xf32>
    %475 = vector.broadcast %474 : vector<1x64xf32> to vector<17x64xf32>
    %476 = arith.addf %472, %475 : vector<17x64xf32>
    %c0_197 = arith.constant 0 : index
    %c0_198 = arith.constant 0 : index
    %477 = vector.load %arg24[%c0_197, %c0_198] : memref<34x64xf32, #tpu.memory_space<vmem>>, vector<17x64xf32>
    tpu.vector_store %arg24[%c0_197, %c0_198], %476 {strides = array<i32>} : memref<34x64xf32, #tpu.memory_space<vmem>>, vector<17x64xf32>,
    %cst_199 = arith.constant 0.000000e+00 : f32
    %478 = vector.broadcast %cst_199 : f32 to vector<17x64xf32>
    %479 = vector.extract_strided_slice %371 {offsets = [17, 0], sizes = [17, 16], strides = [1, 1]} : vector<34x192xf32> to vector<17x16xf32>
    %480 = vector.extract_strided_slice %371 {offsets = [17, 64], sizes = [17, 16], strides = [1, 1]} : vector<34x192xf32> to vector<17x16xf32>
    %481 = vector.extract_strided_slice %371 {offsets = [17, 128], sizes = [17, 16], strides = [1, 1]} : vector<34x192xf32> to vector<17x16xf32>
    %482 = arith.truncf %479 : vector<17x16xf32> to vector<17x16xbf16>
    %483 = arith.truncf %480 : vector<17x16xf32> to vector<17x16xbf16>
    %cst_200 = arith.constant dense<0.000000e+00> : vector<17x17xf32>
    %484 = tpu.matmul %482, %483, %cst_200 {dimension_numbers = #tpu.dot_dimension_numbers<[1], [1], [0], [0], [0, 0, 1, 0], [], []>} : vector<17x16xbf16>, vector<17x16xbf16>, vector<17x17xf32> -> vector<17x17xf32>
    %cst_201 = arith.constant 2.500000e-01 : f32
    %485 = vector.broadcast %cst_201 : f32 to vector<17x17xf32>
    %486 = arith.mulf %484, %485 : vector<17x17xf32>
    %cst_202 = arith.constant dense<0xFF800000> : vector<17xf32>
    %487 = vector.multi_reduction <maximumf>, %486, %cst_202 [1] : vector<17x17xf32> to vector<17xf32>
    %488 = vector.shape_cast %487 : vector<17xf32> to vector<17x1xf32>
    %489 = vector.broadcast %488 : vector<17x1xf32> to vector<17x17xf32>
    %490 = arith.subf %486, %489 : vector<17x17xf32>
    %491 = math.exp %490 : vector<17x17xf32>
    %cst_203 = arith.constant dense<0.000000e+00> : vector<17xf32>
    %492 = vector.multi_reduction <add>, %491, %cst_203 [1] : vector<17x17xf32> to vector<17xf32>
    %493 = vector.shape_cast %492 : vector<17xf32> to vector<17x1xf32>
    %494 = vector.broadcast %493 : vector<17x1xf32> to vector<17x17xf32>
    %495 = arith.divf %491, %494 : vector<17x17xf32>
    %496 = arith.truncf %495 : vector<17x17xf32> to vector<17x17xbf16>
    %497 = arith.truncf %481 : vector<17x16xf32> to vector<17x16xbf16>
    %cst_204 = arith.constant dense<0.000000e+00> : vector<17x16xf32>
    %498 = tpu.matmul %496, %497, %cst_204 {dimension_numbers = #tpu.dot_dimension_numbers<[1], [0], [0], [1], [0, 0, 1, 1], [], []>} : vector<17x17xbf16>, vector<17x16xbf16>, vector<17x16xf32> -> vector<17x16xf32>
    %499 = arith.truncf %498 : vector<17x16xf32> to vector<17x16xbf16>
    %500 = vector.extract_strided_slice %373 {offsets = [0, 0], sizes = [16, 64], strides = [1, 1]} : vector<64x64xbf16> to vector<16x64xbf16>
    %cst_205 = arith.constant dense<0.000000e+00> : vector<17x64xf32>
    %501 = tpu.matmul %499, %500, %cst_205 {dimension_numbers = #tpu.dot_dimension_numbers<[1], [0], [0], [1], [0, 0, 1, 1], [], []>} : vector<17x16xbf16>, vector<16x64xbf16>, vector<17x64xf32> -> vector<17x64xf32>
    %502 = arith.addf %478, %501 : vector<17x64xf32>
    %503 = vector.extract_strided_slice %371 {offsets = [17, 16], sizes = [17, 16], strides = [1, 1]} : vector<34x192xf32> to vector<17x16xf32>
    %504 = vector.extract_strided_slice %371 {offsets = [17, 80], sizes = [17, 16], strides = [1, 1]} : vector<34x192xf32> to vector<17x16xf32>
    %505 = vector.extract_strided_slice %371 {offsets = [17, 144], sizes = [17, 16], strides = [1, 1]} : vector<34x192xf32> to vector<17x16xf32>
    %506 = arith.truncf %503 : vector<17x16xf32> to vector<17x16xbf16>
    %507 = arith.truncf %504 : vector<17x16xf32> to vector<17x16xbf16>
    %cst_206 = arith.constant dense<0.000000e+00> : vector<17x17xf32>
    %508 = tpu.matmul %506, %507, %cst_206 {dimension_numbers = #tpu.dot_dimension_numbers<[1], [1], [0], [0], [0, 0, 1, 0], [], []>} : vector<17x16xbf16>, vector<17x16xbf16>, vector<17x17xf32> -> vector<17x17xf32>
    %cst_207 = arith.constant 2.500000e-01 : f32
    %509 = vector.broadcast %cst_207 : f32 to vector<17x17xf32>
    %510 = arith.mulf %508, %509 : vector<17x17xf32>
    %cst_208 = arith.constant dense<0xFF800000> : vector<17xf32>
    %511 = vector.multi_reduction <maximumf>, %510, %cst_208 [1] : vector<17x17xf32> to vector<17xf32>
    %512 = vector.shape_cast %511 : vector<17xf32> to vector<17x1xf32>
    %513 = vector.broadcast %512 : vector<17x1xf32> to vector<17x17xf32>
    %514 = arith.subf %510, %513 : vector<17x17xf32>
    %515 = math.exp %514 : vector<17x17xf32>
    %cst_209 = arith.constant dense<0.000000e+00> : vector<17xf32>
    %516 = vector.multi_reduction <add>, %515, %cst_209 [1] : vector<17x17xf32> to vector<17xf32>
    %517 = vector.shape_cast %516 : vector<17xf32> to vector<17x1xf32>
    %518 = vector.broadcast %517 : vector<17x1xf32> to vector<17x17xf32>
    %519 = arith.divf %515, %518 : vector<17x17xf32>
    %520 = arith.truncf %519 : vector<17x17xf32> to vector<17x17xbf16>
    %521 = arith.truncf %505 : vector<17x16xf32> to vector<17x16xbf16>
    %cst_210 = arith.constant dense<0.000000e+00> : vector<17x16xf32>
    %522 = tpu.matmul %520, %521, %cst_210 {dimension_numbers = #tpu.dot_dimension_numbers<[1], [0], [0], [1], [0, 0, 1, 1], [], []>} : vector<17x17xbf16>, vector<17x16xbf16>, vector<17x16xf32> -> vector<17x16xf32>
    %523 = arith.truncf %522 : vector<17x16xf32> to vector<17x16xbf16>
    %524 = vector.extract_strided_slice %373 {offsets = [16, 0], sizes = [16, 64], strides = [1, 1]} : vector<64x64xbf16> to vector<16x64xbf16>
    %cst_211 = arith.constant dense<0.000000e+00> : vector<17x64xf32>
    %525 = tpu.matmul %523, %524, %cst_211 {dimension_numbers = #tpu.dot_dimension_numbers<[1], [0], [0], [1], [0, 0, 1, 1], [], []>} : vector<17x16xbf16>, vector<16x64xbf16>, vector<17x64xf32> -> vector<17x64xf32>
    %526 = arith.addf %502, %525 : vector<17x64xf32>
    %527 = vector.extract_strided_slice %371 {offsets = [17, 32], sizes = [17, 16], strides = [1, 1]} : vector<34x192xf32> to vector<17x16xf32>
    %528 = vector.extract_strided_slice %371 {offsets = [17, 96], sizes = [17, 16], strides = [1, 1]} : vector<34x192xf32> to vector<17x16xf32>
    %529 = vector.extract_strided_slice %371 {offsets = [17, 160], sizes = [17, 16], strides = [1, 1]} : vector<34x192xf32> to vector<17x16xf32>
    %530 = arith.truncf %527 : vector<17x16xf32> to vector<17x16xbf16>
    %531 = arith.truncf %528 : vector<17x16xf32> to vector<17x16xbf16>
    %cst_212 = arith.constant dense<0.000000e+00> : vector<17x17xf32>
    %532 = tpu.matmul %530, %531, %cst_212 {dimension_numbers = #tpu.dot_dimension_numbers<[1], [1], [0], [0], [0, 0, 1, 0], [], []>} : vector<17x16xbf16>, vector<17x16xbf16>, vector<17x17xf32> -> vector<17x17xf32>
    %cst_213 = arith.constant 2.500000e-01 : f32
    %533 = vector.broadcast %cst_213 : f32 to vector<17x17xf32>
    %534 = arith.mulf %532, %533 : vector<17x17xf32>
    %cst_214 = arith.constant dense<0xFF800000> : vector<17xf32>
    %535 = vector.multi_reduction <maximumf>, %534, %cst_214 [1] : vector<17x17xf32> to vector<17xf32>
    %536 = vector.shape_cast %535 : vector<17xf32> to vector<17x1xf32>
    %537 = vector.broadcast %536 : vector<17x1xf32> to vector<17x17xf32>
    %538 = arith.subf %534, %537 : vector<17x17xf32>
    %539 = math.exp %538 : vector<17x17xf32>
    %cst_215 = arith.constant dense<0.000000e+00> : vector<17xf32>
    %540 = vector.multi_reduction <add>, %539, %cst_215 [1] : vector<17x17xf32> to vector<17xf32>
    %541 = vector.shape_cast %540 : vector<17xf32> to vector<17x1xf32>
    %542 = vector.broadcast %541 : vector<17x1xf32> to vector<17x17xf32>
    %543 = arith.divf %539, %542 : vector<17x17xf32>
    %544 = arith.truncf %543 : vector<17x17xf32> to vector<17x17xbf16>
    %545 = arith.truncf %529 : vector<17x16xf32> to vector<17x16xbf16>
    %cst_216 = arith.constant dense<0.000000e+00> : vector<17x16xf32>
    %546 = tpu.matmul %544, %545, %cst_216 {dimension_numbers = #tpu.dot_dimension_numbers<[1], [0], [0], [1], [0, 0, 1, 1], [], []>} : vector<17x17xbf16>, vector<17x16xbf16>, vector<17x16xf32> -> vector<17x16xf32>
    %547 = arith.truncf %546 : vector<17x16xf32> to vector<17x16xbf16>
    %548 = vector.extract_strided_slice %373 {offsets = [32, 0], sizes = [16, 64], strides = [1, 1]} : vector<64x64xbf16> to vector<16x64xbf16>
    %cst_217 = arith.constant dense<0.000000e+00> : vector<17x64xf32>
    %549 = tpu.matmul %547, %548, %cst_217 {dimension_numbers = #tpu.dot_dimension_numbers<[1], [0], [0], [1], [0, 0, 1, 1], [], []>} : vector<17x16xbf16>, vector<16x64xbf16>, vector<17x64xf32> -> vector<17x64xf32>
    %550 = arith.addf %526, %549 : vector<17x64xf32>
    %551 = vector.extract_strided_slice %371 {offsets = [17, 48], sizes = [17, 16], strides = [1, 1]} : vector<34x192xf32> to vector<17x16xf32>
    %552 = vector.extract_strided_slice %371 {offsets = [17, 112], sizes = [17, 16], strides = [1, 1]} : vector<34x192xf32> to vector<17x16xf32>
    %553 = vector.extract_strided_slice %371 {offsets = [17, 176], sizes = [17, 16], strides = [1, 1]} : vector<34x192xf32> to vector<17x16xf32>
    %554 = arith.truncf %551 : vector<17x16xf32> to vector<17x16xbf16>
    %555 = arith.truncf %552 : vector<17x16xf32> to vector<17x16xbf16>
    %cst_218 = arith.constant dense<0.000000e+00> : vector<17x17xf32>
    %556 = tpu.matmul %554, %555, %cst_218 {dimension_numbers = #tpu.dot_dimension_numbers<[1], [1], [0], [0], [0, 0, 1, 0], [], []>} : vector<17x16xbf16>, vector<17x16xbf16>, vector<17x17xf32> -> vector<17x17xf32>
    %cst_219 = arith.constant 2.500000e-01 : f32
    %557 = vector.broadcast %cst_219 : f32 to vector<17x17xf32>
    %558 = arith.mulf %556, %557 : vector<17x17xf32>
    %cst_220 = arith.constant dense<0xFF800000> : vector<17xf32>
    %559 = vector.multi_reduction <maximumf>, %558, %cst_220 [1] : vector<17x17xf32> to vector<17xf32>
    %560 = vector.shape_cast %559 : vector<17xf32> to vector<17x1xf32>
    %561 = vector.broadcast %560 : vector<17x1xf32> to vector<17x17xf32>
    %562 = arith.subf %558, %561 : vector<17x17xf32>
    %563 = math.exp %562 : vector<17x17xf32>
    %cst_221 = arith.constant dense<0.000000e+00> : vector<17xf32>
    %564 = vector.multi_reduction <add>, %563, %cst_221 [1] : vector<17x17xf32> to vector<17xf32>
    %565 = vector.shape_cast %564 : vector<17xf32> to vector<17x1xf32>
    %566 = vector.broadcast %565 : vector<17x1xf32> to vector<17x17xf32>
    %567 = arith.divf %563, %566 : vector<17x17xf32>
    %568 = arith.truncf %567 : vector<17x17xf32> to vector<17x17xbf16>
    %569 = arith.truncf %553 : vector<17x16xf32> to vector<17x16xbf16>
    %cst_222 = arith.constant dense<0.000000e+00> : vector<17x16xf32>
    %570 = tpu.matmul %568, %569, %cst_222 {dimension_numbers = #tpu.dot_dimension_numbers<[1], [0], [0], [1], [0, 0, 1, 1], [], []>} : vector<17x17xbf16>, vector<17x16xbf16>, vector<17x16xf32> -> vector<17x16xf32>
    %571 = arith.truncf %570 : vector<17x16xf32> to vector<17x16xbf16>
    %572 = vector.extract_strided_slice %373 {offsets = [48, 0], sizes = [16, 64], strides = [1, 1]} : vector<64x64xbf16> to vector<16x64xbf16>
    %cst_223 = arith.constant dense<0.000000e+00> : vector<17x64xf32>
    %573 = tpu.matmul %571, %572, %cst_223 {dimension_numbers = #tpu.dot_dimension_numbers<[1], [0], [0], [1], [0, 0, 1, 1], [], []>} : vector<17x16xbf16>, vector<16x64xbf16>, vector<17x64xf32> -> vector<17x64xf32>
    %574 = arith.addf %550, %573 : vector<17x64xf32>
    %575 = vector.extract_strided_slice %339 {offsets = [17, 0], sizes = [17, 64], strides = [1, 1]} : vector<34x64xf32> to vector<17x64xf32>
    %576 = arith.addf %575, %574 : vector<17x64xf32>
    %c1_224 = arith.constant 1 : index
    %c0_225 = arith.constant 0 : index
    %c0_226 = arith.constant 0 : index
    %577 = vector.load %arg12[%c1_224, %c0_225, %c0_226] : memref<2x1x64xf32, #tpu.memory_space<vmem>>, vector<1x1x64xf32>
    %578 = vector.shape_cast %577 : vector<1x1x64xf32> to vector<1x64xf32>
    %579 = vector.broadcast %578 : vector<1x64xf32> to vector<17x64xf32>
    %580 = arith.addf %576, %579 : vector<17x64xf32>
    %c17_227 = arith.constant 17 : index
    %c0_228 = arith.constant 0 : index
    %581 = vector.load %arg24[%c17_227, %c0_228] : memref<34x64xf32, #tpu.memory_space<vmem>>, vector<17x64xf32>
    tpu.vector_store %arg24[%c17_227, %c0_228], %580 {strides = array<i32>} : memref<34x64xf32, #tpu.memory_space<vmem>>, vector<17x64xf32>,
    %c0_229 = arith.constant 0 : index
    %c0_230 = arith.constant 0 : index
    %582 = vector.load %arg24[%c0_229, %c0_230] : memref<34x64xf32, #tpu.memory_space<vmem>>, vector<34x64xf32>
    %c1_231 = arith.constant 1 : index
    %c0_232 = arith.constant 0 : index
    %c0_233 = arith.constant 0 : index
    %583 = vector.load %arg13[%c1_231, %c0_232, %c0_233] : memref<2x1x64xf32, #tpu.memory_space<vmem>>, vector<1x1x64xf32>
    %584 = vector.shape_cast %583 : vector<1x1x64xf32> to vector<1x64xf32>
    %c1_234 = arith.constant 1 : index
    %c0_235 = arith.constant 0 : index
    %c0_236 = arith.constant 0 : index
    %585 = vector.load %arg14[%c1_234, %c0_235, %c0_236] : memref<2x1x64xf32, #tpu.memory_space<vmem>>, vector<1x1x64xf32>
    %586 = vector.shape_cast %585 : vector<1x1x64xf32> to vector<1x64xf32>
    %cst_237 = arith.constant dense<0.000000e+00> : vector<34xf32>
    %587 = vector.multi_reduction <add>, %582, %cst_237 [1] : vector<34x64xf32> to vector<34xf32>
    %588 = vector.shape_cast %587 : vector<34xf32> to vector<34x1xf32>
    %cst_238 = arith.constant 6.400000e+01 : f32
    %589 = vector.broadcast %cst_238 : f32 to vector<34x1xf32>
    %590 = arith.divf %588, %589 : vector<34x1xf32>
    %591 = vector.broadcast %590 : vector<34x1xf32> to vector<34x64xf32>
    %592 = arith.subf %582, %591 : vector<34x64xf32>
    %593 = arith.mulf %592, %592 : vector<34x64xf32>
    %cst_239 = arith.constant dense<0.000000e+00> : vector<34xf32>
    %594 = vector.multi_reduction <add>, %593, %cst_239 [1] : vector<34x64xf32> to vector<34xf32>
    %595 = vector.shape_cast %594 : vector<34xf32> to vector<34x1xf32>
    %cst_240 = arith.constant 6.400000e+01 : f32
    %596 = vector.broadcast %cst_240 : f32 to vector<34x1xf32>
    %597 = arith.divf %595, %596 : vector<34x1xf32>
    %cst_241 = arith.constant 9.99999974E-6 : f32
    %598 = vector.broadcast %cst_241 : f32 to vector<34x1xf32>
    %599 = arith.addf %597, %598 : vector<34x1xf32>
    %600 = math.rsqrt %599 : vector<34x1xf32>
    %601 = vector.broadcast %600 : vector<34x1xf32> to vector<34x64xf32>
    %602 = arith.mulf %592, %601 : vector<34x64xf32>
    %603 = vector.broadcast %584 : vector<1x64xf32> to vector<34x64xf32>
    %604 = arith.mulf %602, %603 : vector<34x64xf32>
    %605 = vector.broadcast %586 : vector<1x64xf32> to vector<34x64xf32>
    %606 = arith.addf %604, %605 : vector<34x64xf32>
    %607 = arith.truncf %606 : vector<34x64xf32> to vector<34x64xbf16>
    %c1_242 = arith.constant 1 : index
    %c0_243 = arith.constant 0 : index
    %c0_244 = arith.constant 0 : index
    %608 = vector.load %arg15[%c1_242, %c0_243, %c0_244] : memref<2x64x256xbf16, #tpu.memory_space<vmem>>, vector<1x64x256xbf16>
    %609 = vector.shape_cast %608 : vector<1x64x256xbf16> to vector<64x256xbf16>
    %cst_245 = arith.constant dense<0.000000e+00> : vector<34x256xf32>
    %610 = tpu.matmul %607, %609, %cst_245 {dimension_numbers = #tpu.dot_dimension_numbers<[1], [0], [0], [1], [0, 0, 1, 1], [], []>} : vector<34x64xbf16>, vector<64x256xbf16>, vector<34x256xf32> -> vector<34x256xf32>
    %c1_246 = arith.constant 1 : index
    %c0_247 = arith.constant 0 : index
    %c0_248 = arith.constant 0 : index
    %611 = vector.load %arg16[%c1_246, %c0_247, %c0_248] : memref<2x1x256xf32, #tpu.memory_space<vmem>>, vector<1x1x256xf32>
    %612 = vector.shape_cast %611 : vector<1x1x256xf32> to vector<1x256xf32>
    %613 = vector.broadcast %612 : vector<1x256xf32> to vector<34x256xf32>
    %614 = arith.addf %610, %613 : vector<34x256xf32>
    %cst_249 = arith.constant 5.000000e-01 : f32
    %615 = vector.broadcast %cst_249 : f32 to vector<34x256xf32>
    %616 = arith.mulf %615, %614 : vector<34x256xf32>
    %cst_250 = arith.constant 0.707106769 : f32
    %617 = vector.broadcast %cst_250 : f32 to vector<34x256xf32>
    %618 = arith.mulf %614, %617 : vector<34x256xf32>
    %619 = math.erf %618 : vector<34x256xf32>
    %cst_251 = arith.constant 1.000000e+00 : f32
    %620 = vector.broadcast %cst_251 : f32 to vector<34x256xf32>
    %621 = arith.addf %620, %619 : vector<34x256xf32>
    %622 = arith.mulf %616, %621 : vector<34x256xf32>
    %623 = arith.truncf %622 : vector<34x256xf32> to vector<34x256xbf16>
    %c1_252 = arith.constant 1 : index
    %c0_253 = arith.constant 0 : index
    %c0_254 = arith.constant 0 : index
    %624 = vector.load %arg17[%c1_252, %c0_253, %c0_254] : memref<2x256x64xbf16, #tpu.memory_space<vmem>>, vector<1x256x64xbf16>
    %625 = vector.shape_cast %624 : vector<1x256x64xbf16> to vector<256x64xbf16>
    %cst_255 = arith.constant dense<0.000000e+00> : vector<34x64xf32>
    %626 = tpu.matmul %623, %625, %cst_255 {dimension_numbers = #tpu.dot_dimension_numbers<[1], [0], [0], [1], [0, 0, 1, 1], [], []>} : vector<34x256xbf16>, vector<256x64xbf16>, vector<34x64xf32> -> vector<34x64xf32>
    %c1_256 = arith.constant 1 : index
    %c0_257 = arith.constant 0 : index
    %c0_258 = arith.constant 0 : index
    %627 = vector.load %arg18[%c1_256, %c0_257, %c0_258] : memref<2x1x64xf32, #tpu.memory_space<vmem>>, vector<1x1x64xf32>
    %628 = vector.shape_cast %627 : vector<1x1x64xf32> to vector<1x64xf32>
    %629 = vector.broadcast %628 : vector<1x64xf32> to vector<34x64xf32>
    %630 = arith.addf %626, %629 : vector<34x64xf32>
    %631 = arith.addf %582, %630 : vector<34x64xf32>
    %c0_259 = arith.constant 0 : index
    %c0_260 = arith.constant 0 : index
    %632 = vector.load %arg24[%c0_259, %c0_260] : memref<34x64xf32, #tpu.memory_space<vmem>>, vector<34x64xf32>
    tpu.vector_store %arg24[%c0_259, %c0_260], %631 {strides = array<i32>} : memref<34x64xf32, #tpu.memory_space<vmem>>, vector<34x64xf32>,
    %c0_261 = arith.constant 0 : index
    %c0_262 = arith.constant 0 : index
    %633 = vector.load %arg24[%c0_261, %c0_262] : memref<34x64xf32, #tpu.memory_space<vmem>>, vector<34x64xf32>
    %c0_263 = arith.constant 0 : index
    %c0_264 = arith.constant 0 : index
    %634 = vector.load %arg19[%c0_263, %c0_264] : memref<1x64xf32, #tpu.memory_space<vmem>>, vector<1x64xf32>
    %c0_265 = arith.constant 0 : index
    %c0_266 = arith.constant 0 : index
    %635 = vector.load %arg20[%c0_265, %c0_266] : memref<1x64xf32, #tpu.memory_space<vmem>>, vector<1x64xf32>
    %cst_267 = arith.constant dense<0.000000e+00> : vector<34xf32>
    %636 = vector.multi_reduction <add>, %633, %cst_267 [1] : vector<34x64xf32> to vector<34xf32>
    %637 = vector.shape_cast %636 : vector<34xf32> to vector<34x1xf32>
    %cst_268 = arith.constant 6.400000e+01 : f32
    %638 = vector.broadcast %cst_268 : f32 to vector<34x1xf32>
    %639 = arith.divf %637, %638 : vector<34x1xf32>
    %640 = vector.broadcast %639 : vector<34x1xf32> to vector<34x64xf32>
    %641 = arith.subf %633, %640 : vector<34x64xf32>
    %642 = arith.mulf %641, %641 : vector<34x64xf32>
    %cst_269 = arith.constant dense<0.000000e+00> : vector<34xf32>
    %643 = vector.multi_reduction <add>, %642, %cst_269 [1] : vector<34x64xf32> to vector<34xf32>
    %644 = vector.shape_cast %643 : vector<34xf32> to vector<34x1xf32>
    %cst_270 = arith.constant 6.400000e+01 : f32
    %645 = vector.broadcast %cst_270 : f32 to vector<34x1xf32>
    %646 = arith.divf %644, %645 : vector<34x1xf32>
    %cst_271 = arith.constant 9.99999974E-6 : f32
    %647 = vector.broadcast %cst_271 : f32 to vector<34x1xf32>
    %648 = arith.addf %646, %647 : vector<34x1xf32>
    %649 = math.rsqrt %648 : vector<34x1xf32>
    %650 = vector.broadcast %649 : vector<34x1xf32> to vector<34x64xf32>
    %651 = arith.mulf %641, %650 : vector<34x64xf32>
    %652 = vector.broadcast %634 : vector<1x64xf32> to vector<34x64xf32>
    %653 = arith.mulf %651, %652 : vector<34x64xf32>
    %654 = vector.broadcast %635 : vector<1x64xf32> to vector<34x64xf32>
    %655 = arith.addf %653, %654 : vector<34x64xf32>
    %656 = vector.extract_strided_slice %655 {offsets = [0, 0], sizes = [1, 64], strides = [1, 1]} : vector<34x64xf32> to vector<1x64xf32>
    %657 = vector.extract_strided_slice %655 {offsets = [17, 0], sizes = [1, 64], strides = [1, 1]} : vector<34x64xf32> to vector<1x64xf32>
    %658 = tpu.concatenate %656, %657 in 0 : vector<1x64xf32>, vector<1x64xf32> -> vector<2x64xf32>
    %659 = arith.truncf %658 : vector<2x64xf32> to vector<2x64xbf16>
    %c0_272 = arith.constant 0 : index
    %c0_273 = arith.constant 0 : index
    %660 = vector.load %arg21[%c0_272, %c0_273] : memref<64x16xbf16, #tpu.memory_space<vmem>>, vector<64x16xbf16>
    %cst_274 = arith.constant dense<0.000000e+00> : vector<2x16xf32>
    %661 = tpu.matmul %659, %660, %cst_274 {dimension_numbers = #tpu.dot_dimension_numbers<[1], [0], [0], [1], [0, 0, 1, 1], [], []>} : vector<2x64xbf16>, vector<64x16xbf16>, vector<2x16xf32> -> vector<2x16xf32>
    %c0_275 = arith.constant 0 : index
    %c0_276 = arith.constant 0 : index
    %662 = vector.load %arg22[%c0_275, %c0_276] : memref<1x16xf32, #tpu.memory_space<vmem>>, vector<1x16xf32>
    %663 = vector.broadcast %662 : vector<1x16xf32> to vector<2x16xf32>
    %664 = arith.addf %661, %663 : vector<2x16xf32>
    %c0_277 = arith.constant 0 : index
    %c0_278 = arith.constant 0 : index
    %665 = vector.load %arg23[%c0_277, %c0_278] : memref<2x16xf32, #tpu.memory_space<vmem>>, vector<2x16xf32>
    tpu.vector_store %arg23[%c0_277, %c0_278], %664 {strides = array<i32>} : memref<2x16xf32, #tpu.memory_space<vmem>>, vector<2x16xf32>,
    return
  }
}

</mosaic_0001>

<bundles_post_ra>
// kernel: vit_forward.1
= control target key start
LH: loop header
LB: loop body
LE: loop exit
PB: predicated region body
PF: predicated region fallthrough
CT: control target
= control target key end

     0   :  { %s8467_s0 = inlined_call_operand.vmem [shape: f32[32,48], index: 0, kind: input, shape index: {}]   ;;  %s8468_s1 = inlined_call_operand.vmem [shape: bf16[48,64], index: 1, kind: input, shape index: {}]   ;;  %s8469_s2 = inlined_call_operand.vmem [shape: f32[1,64], index: 2, kind: input, shape index: {}]   ;;  %s8470_s3 = inlined_call_operand.vmem [shape: f32[1,64], index: 3, kind: input, shape index: {}]   ;;  %s8471_s4 = inlined_call_operand.vmem [shape: f32[1,64], index: 4, kind: input, shape index: {}]   ;;  %s8472_s5 = inlined_call_operand.vmem [shape: f32[1,64], index: 5, kind: input, shape index: {}]   ;;  %s8473_s6 = inlined_call_operand.vmem [shape: f32[17,64], index: 6, kind: input, shape index: {}]   ;;  %s8474_s7 = inlined_call_operand.vmem [shape: f32[2,1,64], index: 7, kind: input, shape index: {}]   ;;  %s8475_s8 = inlined_call_operand.vmem [shape: f32[2,1,64], index: 8, kind: input, shape index: {}]   ;;  %s8476_s9 = inlined_call_operand.vmem [shape: bf16[2,64,192], index: 9, kind: input, shape index: {}]   ;;  %s8477_s10 = inlined_call_operand.vmem [shape: f32[2,1,192], index: 10, kind: input, shape index: {}]   ;;  %s8478_s11 = inlined_call_operand.vmem [shape: bf16[2,64,64], index: 11, kind: input, shape index: {}]   ;;  %s8479_s12 = inlined_call_operand.vmem [shape: f32[2,1,64], index: 12, kind: input, shape index: {}]   ;;  %s8480_s13 = inlined_call_operand.vmem [shape: f32[2,1,64], index: 13, kind: input, shape index: {}]   ;;  %s8481_s14 = inlined_call_operand.vmem [shape: f32[2,1,64], index: 14, kind: input, shape index: {}]   ;;  %s8482_s15 = inlined_call_operand.vmem [shape: bf16[2,64,256], index: 15, kind: input, shape index: {}]   ;;  %s8483_s16 = inlined_call_operand.vmem [shape: f32[2,1,256], index: 16, kind: input, shape index: {}]   ;;  %s8484_s17 = inlined_call_operand.vmem [shape: bf16[2,256,64], index: 17, kind: input, shape index: {}]   ;;  %s8485_s18 = inlined_call_operand.vmem [shape: f32[2,1,64], index: 18, kind: input, shape index: {}]   ;;  %s8486_s19 = inlined_call_operand.vmem [shape: f32[1,64], index: 19, kind: input, shape index: {}]   ;;  %s8487_s20 = inlined_call_operand.vmem [shape: f32[1,64], index: 20, kind: input, shape index: {}]   ;;  %s8488_s21 = inlined_call_operand.vmem [shape: bf16[64,16], index: 21, kind: input, shape index: {}]   ;;  %s8489_s22 = inlined_call_operand.vmem [shape: f32[1,16], index: 22, kind: input, shape index: {}]   ;;  %s8490_s23 = inlined_call_operand.hbm [shape: f32[2,16], index: 23, kind: output, shape index: {}]  }
   0x1   :  { %8502 = sst [smem:[#allocation6_spill]] %s8467_s0 }
   0x2   :  { %8503 = sst [smem:[#allocation7_spill]] %s8468_s1 }
   0x3   :  { %8504 = sst [smem:[#allocation8_spill]] %s8469_s2 }
   0x4   :  { %8505 = sst [smem:[#allocation9_spill]] %s8470_s3 }
   0x5   :  { %8506 = sst [smem:[#allocation10_spill]] %s8471_s4 }
   0x6   :  { %8507 = sst [smem:[#allocation11_spill]] %s8472_s5 }
   0x7   :  { %8508 = sst [smem:[#allocation12_spill]] %s8473_s6 }
   0x8   :  { %8509 = sst [smem:[#allocation13_spill]] %s8474_s7 }
   0x9   :  { %s8510_s24 = sld [smem:[#allocation7_spill]]  ;;  %vm113_vm0 = vcmask 392192  }
   0xa   :  { %s8511_s2 = sld [smem:[#allocation6_spill]] }
   0xf   :  { %v6605_v0 = vld [vmem:[%s8510_s24 + $0x10] sm:$0xff]   ;;  %v6606_v1 = vld [vmem:[%s8510_s24 + $0x8] sm:$0xff]   ;;  %v6607_v4 = vld [vmem:[%s8510_s24] sm:$0xff]  }
  0x10   :  { %6188 = vmatprep.subr.bf16.mxu0 %v6605_v0  ;;  %v76_v2 = vld [vmem:[%s8511_s2] sm:$0xff]  ;;  %v77_v3 = vld [vmem:[%s8511_s2 + $0x8] sm:$0xff]  ;;  %v78_v6 = vld [vmem:[%s8511_s2 + $0x10] sm:$0xff] }
  0x11   :  { %6189 = vmatpush3.bf16.msra.mxu0 %v6605_v0  ;;  %v80_v5 = vpack.c.bf16 %v77_v3, %v76_v2  ;;  %v79_v7 = vld [vmem:[%s8511_s2 + $0x18] sm:$0xff] }
  0x12   :  { %6190 = vmatprep.subr.bf16.mxu0 %v6606_v1  ;;  %v81_v8 = vpack.c.bf16 %v79_v7, %v78_v6 }
  0x13   :  { %6194 = vmatprep.mubr.msk.bf16.mxu0 %vm113_vm0, %v80_v5 }
  0x15   :  { %6191 = vmatpush3.bf16.msra.mxu0 %v6606_v1 }
  0x16   :  { %6192 = vmatprep.subr.bf16.mxu0 %v6607_v4 }
  0x19   :  { %6193 = vmatpush3.bf16.msra.mxu0 %v6607_v4 }
  0x1c   :  { %6195 = vmatmul.mubr.msk.bf16.vlgmr.msra.gmra.mxu0 %vm113_vm0, %v81_v8 }
  0x1d   :  { %28 = vsyncpa [#allocation4], 0  ;;  %s8512_s5 = sld [smem:[#allocation8_spill]]  ;;  %vm171_vm1 = vcmask 523264   ;;  %vm248_vm2 = vcmask 516096   ;;  %vm285_vm3 = vcmask 517120  }
  0x1e   :  { %s8513_s26 = sld [smem:[#allocation11_spill]]  ;;  %vm510_vm4 = vcmask 130048   ;;  %s7017_s25 = smov 48   ;;  %vm1451_vm5 = vsmask.f32 7424  ;;  %vm574_vm6 = vcmask 138240  }
  0x1f   :  { %s8514_s27 = sld [smem:[#allocation12_spill]]  ;;  %vm581_vm7 = vcmask 131072   ;;  %s7020_s1 = smov 32   ;;  %vm619_vm8 = vcmask 1040384   ;;  %vm2400_vm9 = vcmask 523265   ;;  %vm7025_vm10 = vmmov 0  }
  0x20   :  { %s8515_s30 = sld [smem:[#allocation9_spill]]  ;;  %s8496_s7 = smov 80   ;;  %vm5643_vm11 = vcmask 123904  }
  0x21   :  { %s8516_s24 = sld [smem:[#allocation10_spill]]  ;;  %s8519_s6 = smov 16  }
  0x22   :  { %s8517_s29 = sld [smem:[#allocation13_spill]] }
  0x23   :  { %v5659_v9 = vld [vmem:[%s8512_s5] ss:$0 sm:$0xff]  ;;  %s7018_s5 = smov 112  }
  0x24   :  { %v245_v42 = vld [vmem:[%s8513_s26] sm:$0x1] }
  0x25   :  { %v246_v43 = vld [vmem:[%s8514_s27] sm:$0x1]  ;;  %v250_v2 = vld [vmem:[%s8514_s27 + $0x1] sm:$0xff] }
  0x26   :  { %v247_v44 = vadd.f32 %v246_v43, %v245_v42  ;;  %v256_v45 = vld [vmem:[%s8513_s26] sm:$0x1]  ;;  %s8500_s26 = smov 96  }
  0x27   :  { %v257_v46 = vld [vmem:[%s8514_s27] sm:$0x1] }
  0x28   :  { %249 = vst.msk [vmem:[#allocation2] sm:$0x1] %vm248_vm2, %v247_v44  ;;  %v258_v47 = vadd.f32 %v257_v46, %v256_v45  ;;  %v5665_v61 = vld [vmem:[%s8515_s30] ss:$0 sm:$0xff] }
  0x29   :  { %v5666_v63 = vld [vmem:[%s8516_s24] ss:$0 sm:$0xff]  ;;  %s7019_s24 = smov 64  }
  0x2a   :  { %259 = vst.msk [vmem:[#allocation2 + $0x11] sm:$0x1] %vm248_vm2, %v258_v47 }
  0xdc   :  { %v6196_v10 = vpop.f32.mrf.mxu0 }
  0xdd   :  { %v163_v11 = vadd.f32 %v6196_v10, %v5659_v9  ;;  %v251_v10 = vld [vmem:[%s8514_s27 + $0x9] sm:$0xff]  ;;  %s8498_s27 = smov 16  }
  0xde   :  { %v154_v12 = vpop.f32.mrf.mxu0 }
  0xdf   :  { %v155_v13 = vadd.f32 %v5659_v9, %v154_v12  ;;  %v178_v14 = vsel %vm171_vm1, %v163_v11, 0.0 }
  0xe0   :  { %179 = vadd.xlane.f32.xlu1 %v178_v14  ;;  %v6197_v15 = vpop.f32.mrf.mxu0 }
  0xe1   :  { %v166_v16 = vadd.f32 %v6197_v15, %v5659_v9  ;;  %v172_v17 = vsel %vm171_vm1, %v155_v13, 0.0 }
  0xe2   :  { %v157_v18 = vpop.f32.mrf.mxu0  ;;  %173 = vadd.xlane.f32.xlu0 %v172_v17 }
  0xe3   :  { %v158_v19 = vadd.f32 %v5659_v9, %v157_v18  ;;  %v181_v20 = vsel %vm171_vm1, %v166_v16, 0.0 }
  0xe4   :  { %182 = vadd.xlane.f32.xlu1 %v181_v20 }
  0xe5   :  { %v175_v21 = vsel %vm171_vm1, %v158_v19, 0.0 }
  0xe6   :  { %176 = vadd.xlane.f32.xlu0 %v175_v21 }
 0x169   :  { %v180_v22 = vpop.xlane.xlu1 %179 }
 0x16a   :  { %v187_v23 = vmul.f32 0.015625, %v180_v22 }
 0x16b   :  { %v174_v24 = vpop.xlane.xlu0 %173 }
 0x16c   :  { %v185_v25 = vmul.f32 0.015625, %v174_v24  ;;  %v191_v27 = vsub.f32 %v163_v11, %v187_v23 }
 0x16d   :  { %v183_v26 = vpop.xlane.xlu1 %182 }
 0x16e   :  { %v189_v28 = vsub.f32 %v155_v13, %v185_v25  ;;  %v188_v29 = vmul.f32 0.015625, %v183_v26  ;;  %v195_v36 = vmul.f32 %v191_v27, %v191_v27 }
 0x16f   :  { %v177_v30 = vpop.xlane.xlu0 %176 }
 0x170   :  { %v186_v31 = vmul.f32 0.015625, %v177_v30  ;;  %v193_v32 = vmul.f32 %v189_v28, %v189_v28  ;;  %v192_v33 = vsub.f32 %v166_v16, %v188_v29  ;;  %v203_v38 = vsel %vm171_vm1, %v195_v36, 0.0 }
 0x172   :  { %v190_v34 = vsub.f32 %v158_v19, %v186_v31  ;;  %v197_v35 = vsel %vm171_vm1, %v193_v32, 0.0  ;;  %v196_v40 = vmul.f32 %v192_v33, %v192_v33 }
 0x173   :  { %198 = vadd.xlane.f32.xlu0 %v197_v35 }
 0x174   :  { %v194_v37 = vmul.f32 %v190_v34, %v190_v34  ;;  %v206_v41 = vsel %vm171_vm1, %v196_v40, 0.0 }
 0x176   :  { %v200_v39 = vsel %vm171_vm1, %v194_v37, 0.0 }
 0x177   :  { %204 = vadd.xlane.f32.xlu0 %v203_v38  ;;  %201 = vadd.xlane.f32.xlu1 %v200_v39 }
 0x17b   :  { %207 = vadd.xlane.f32.xlu1 %v206_v41 }
 0x1fc   :  { %v199_v48 = vpop.xlane.xlu0 %198 }
 0x1fd   :  { %v209_v49 = vmul.f32 0.015625, %v199_v48 }
 0x1ff   :  { %v213_v50 = vadd.f32 1e-05, %v209_v49 }
 0x200   :  { %v202_v51 = vpop.xlane.xlu1 %201  ;;  %v205_v52 = vpop.xlane.xlu0 %204 }
 0x201   :  { %6700 = vrsqrt.f32 %v213_v50  ;;  %v210_v53 = vmul.f32 0.015625, %v202_v51  ;;  %v211_v54 = vmul.f32 0.015625, %v205_v52  ;;  %v6608_v50 = vld [vmem:[%s8476_s9 + $0x34] ss:$8 sps:$4 sm:$0xff]   ;;  %v6610_v51 = vld [vmem:[%s8476_s9 + $0x30] ss:$8 sps:$4 sm:$0xff]  }
 0x202   :  { %441 = vmatprep.subr.bf16.mxu1 %v6608_v50  ;;  %v6611_v52 = vld [vmem:[%s8476_s9 + $0x24] ss:$8 sps:$4 sm:$0xff]  }
 0x203   :  { %v214_v55 = vadd.f32 1e-05, %v210_v53  ;;  %v215_v56 = vadd.f32 1e-05, %v211_v54  ;;  %442 = vmatpush1.bf16.msra.mxu1 %v6610_v51  ;;  %v6613_v53 = vld [vmem:[%s8476_s9 + $0x20] ss:$8 sps:$4 sm:$0xff]  }
 0x204   :  { %v208_v57 = vpop.xlane.xlu1 %207  ;;  %v6614_v54 = vld [vmem:[%s8476_s9 + $0x14] ss:$8 sps:$4 sm:$0xff]   ;;  %443 = vmatprep.subr.bf16.mxu1 %v6611_v52 }
 0x205   :  { %6702 = vrsqrt.f32 %v214_v55  ;;  %v212_v58 = vmul.f32 0.015625, %v208_v57  ;;  %v6616_v55 = vld [vmem:[%s8476_s9 + $0x10] ss:$8 sps:$4 sm:$0xff]   ;;  %v6617_v57 = vld [vmem:[%s8476_s9 + $0x4] ss:$8 sps:$4 sm:$0xff]  }
 0x206   :  { %6704 = vrsqrt.f32 %v215_v56  ;;  %v7016_v56 = vmov 0  }
 0x207   :  { %v216_v59 = vadd.f32 1e-05, %v212_v58  ;;  %444 = vmatpush1.bf16.msra.mxu1 %v6613_v53  ;;  %465 = vmatprep.mubr.bf16.mxu1 %v7016_v56  ;;  %v6619_v58 = vld [vmem:[%s8476_s9] ss:$8 sps:$4 sm:$0xff]  }
 0x208   :  { %445 = vmatprep.subr.bf16.mxu1 %v6614_v54 }
 0x209   :  { %6706 = vrsqrt.f32 %v216_v59 }
 0x20b   :  { %446 = vmatpush1.bf16.msra.mxu1 %v6616_v55 }
 0x20c   :  { %447 = vmatprep.subr.bf16.mxu1 %v6617_v57 }
 0x20e   :  { %v6701_v60 = vpop.eup %6700 }
 0x20f   :  { %v221_v62 = vmul.f32 %v6701_v60, %v189_v28  ;;  %448 = vmatpush1.bf16.msra.mxu1 %v6619_v58 }
 0x211   :  { %v231_v0 = vmul.f32 %v5665_v61, %v221_v62 }
 0x212   :  { %v6703_v1 = vpop.eup %6702 }
 0x213   :  { %v6705_v3 = vpop.eup %6704  ;;  %v241_v4 = vadd.f32 %v5666_v63, %v231_v0  ;;  %v222_v5 = vmul.f32 %v6703_v1, %v190_v34 }
 0x214   :  { %v223_v6 = vmul.f32 %v6705_v3, %v191_v27 }
 0x215   :  { %v252_v7 = vadd.f32 %v250_v2, %v241_v4  ;;  %v232_v8 = vmul.f32 %v5665_v61, %v222_v5 }
 0x216   :  { %v6707_v9 = vpop.eup %6706  ;;  %v233_v11 = vmul.f32 %v5665_v61, %v223_v6 }
 0x217   :  { %254 = vst.msk [vmem:[#allocation2 + $0x1] sm:$0xff] %vm171_vm1, %v252_v7  ;;  %v242_v12 = vadd.f32 %v5666_v63, %v232_v8  ;;  %v224_v13 = vmul.f32 %v6707_v9, %v192_v33 }
 0x218   :  { %v243_v14 = vadd.f32 %v5666_v63, %v233_v11 }
 0x219   :  { %v253_v15 = vadd.f32 %v251_v10, %v242_v12  ;;  %v234_v16 = vmul.f32 %v5665_v61, %v224_v13 }
 0x21a   :  { %v262_v17 = vadd.f32 %v250_v2, %v243_v14  ;;  %v5667_v14 = vld [vmem:[%s8517_s29] ss:$0 sm:$0xff] }
 0x21b   :  { %255 = vst.msk [vmem:[#allocation2 + $0x9] sm:$0xff] %vm171_vm1, %v253_v15  ;;  %v244_v18 = vadd.f32 %v5666_v63, %v234_v16 }
 0x21c   :  { %264 = vst.msk [vmem:[#allocation2 + $0x12] sm:$0xff] %vm171_vm1, %v262_v17 }
 0x21d   :  { %v263_v19 = vadd.f32 %v251_v10, %v244_v18 }
 0x21e   :  { %v266_v20 = vld [vmem:[#allocation2] sm:$0xff] }
 0x21f   :  { %265 = vst.msk [vmem:[#allocation2 + $0x1a] sm:$0xff] %vm171_vm1, %v263_v19  ;;  %v273_v21 = vsel %vm171_vm1, %v266_v20, 0.0  ;;  %v5668_v19 = vld [vmem:[%s8475_s8] ss:$0 sm:$0xff] }
 0x220   :  { %274 = vadd.xlane.f32.xlu0 %v273_v21 }
 0x222   :  { %v267_v22 = vld [vmem:[#allocation2 + $0x8] sm:$0xff] }
 0x223   :  { %v276_v23 = vsel %vm171_vm1, %v267_v22, 0.0  ;;  %v268_v24 = vld [vmem:[#allocation2 + $0x10] sm:$0xff] }
 0x224   :  { %277 = vadd.xlane.f32.xlu1 %v276_v23  ;;  %v279_v25 = vsel %vm171_vm1, %v268_v24, 0.0 }
 0x225   :  { %280 = vadd.xlane.f32.xlu0 %v279_v25 }
 0x226   :  { %v269_v26 = vld [vmem:[#allocation2 + $0x18] sm:$0xff]  ;;  %v270_v47 = vld [vmem:[#allocation2 + $0x20] sm:$0x3] }
 0x227   :  { %v282_v27 = vsel %vm171_vm1, %v269_v26, 0.0  ;;  %v286_v49 = vsel %vm285_vm3, %v270_v47, 0.0 }
 0x228   :  { %283 = vadd.xlane.f32.xlu1 %v282_v27 }
 0x2a9   :  { %v275_v28 = vpop.xlane.xlu0 %274 }
 0x2aa   :  { %v289_v29 = vmul.f32 0.015625, %v275_v28 }
 0x2ac   :  { %v7213_v30 = vsub.f32 %v266_v20, %v289_v29 }
 0x2ad   :  { %v278_v31 = vpop.xlane.xlu1 %277 }
 0x2ae   :  { %v290_v32 = vmul.f32 0.015625, %v278_v31  ;;  %v281_v33 = vpop.xlane.xlu0 %280  ;;  %v299_v34 = vmul.f32 %v7213_v30, %v7213_v30 }
 0x2af   :  { %v291_v35 = vmul.f32 0.015625, %v281_v33 }
 0x2b0   :  { %v7217_v36 = vsub.f32 %v267_v22, %v290_v32  ;;  %v304_v37 = vsel %vm171_vm1, %v299_v34, 0.0 }
 0x2b1   :  { %v7220_v38 = vsub.f32 %v268_v24, %v291_v35  ;;  %v284_v39 = vpop.xlane.xlu1 %283  ;;  %305 = vadd.xlane.f32.xlu0 %v304_v37 }
 0x2b2   :  { %v292_v40 = vmul.f32 0.015625, %v284_v39  ;;  %v300_v41 = vmul.f32 %v7217_v36, %v7217_v36 }
 0x2b3   :  { %v301_v42 = vmul.f32 %v7220_v38, %v7220_v38 }
 0x2b4   :  { %v7226_v43 = vsub.f32 %v269_v26, %v292_v40  ;;  %v307_v44 = vsel %vm171_vm1, %v300_v41, 0.0  ;;  %v374_v40 = vlaneseq }
 0x2b5   :  { %308 = vadd.xlane.f32.xlu1 %v307_v44  ;;  %v310_v45 = vsel %vm171_vm1, %v301_v42, 0.0 }
 0x2b6   :  { %311 = vadd.xlane.f32.xlu0 %v310_v45  ;;  %v302_v46 = vmul.f32 %v7226_v43, %v7226_v43  ;;  %v375_v41 = vshrl.u32 %v374_v40, 7 }
 0x2b8   :  { %v313_v48 = vsel %vm171_vm1, %v302_v46, 0.0  ;;  %v7275_v42 = vsub.s32 0, %v375_v41 }
 0x2b9   :  { %314 = vadd.xlane.f32.xlu1 %v313_v48 }
 0x2ba   :  { %287 = vadd.xlane.f32.xlu0 %v286_v49 }
 0x33a   :  { %v306_v59 = vpop.xlane.xlu0 %305 }
 0x33b   :  { %v319_v60 = vmul.f32 0.015625, %v306_v59 }
 0x33d   :  { %v324_v61 = vadd.f32 1e-05, %v319_v60 }
 0x33e   :  { %v309_v62 = vpop.xlane.xlu1 %308 }
 0x33f   :  { %6708 = vrsqrt.f32 %v324_v61  ;;  %v320_v63 = vmul.f32 0.015625, %v309_v62  ;;  %v312_v0 = vpop.xlane.xlu0 %311 }
 0x340   :  { %v321_v1 = vmul.f32 0.015625, %v312_v0 }
 0x341   :  { %v325_v2 = vadd.f32 1e-05, %v320_v63 }
 0x342   :  { %v326_v3 = vadd.f32 1e-05, %v321_v1  ;;  %v315_v4 = vpop.xlane.xlu1 %314  ;;  %v7304_v1 = vsub.s32 1, %v375_v41 }
 0x343   :  { %6710 = vrsqrt.f32 %v325_v2  ;;  %v322_v5 = vmul.f32 0.015625, %v315_v4  ;;  %v288_v6 = vpop.xlane.xlu0 %287 }
 0x344   :  { %v293_v7 = vmul.f32 0.015625, %v288_v6  ;;  %6712 = vrsqrt.f32 %v326_v3 }
 0x345   :  { %v327_v8 = vadd.f32 1e-05, %v322_v5 }
 0x346   :  { %v298_v9 = vsub.f32 %v270_v47, %v293_v7 }
 0x347   :  { %6714 = vrsqrt.f32 %v327_v8 }
 0x348   :  { %v303_v10 = vmul.f32 %v298_v9, %v298_v9 }
 0x34a   :  { %v316_v11 = vsel %vm285_vm3, %v303_v10, 0.0 }
 0x34b   :  { %317 = vadd.xlane.f32.xlu1 %v316_v11 }
 0x34c   :  { %v6709_v12 = vpop.eup %6708 }
 0x34d   :  { %v334_v13 = vmul.f32 %v6709_v12, %v7213_v30 }
 0x34f   :  { %v345_v17 = vmul.f32 %v5667_v14, %v334_v13 }
 0x350   :  { %v6711_v15 = vpop.eup %6710 }
 0x351   :  { %v335_v16 = vmul.f32 %v6711_v15, %v7217_v36  ;;  %v6713_v18 = vpop.eup %6712  ;;  %v356_v22 = vadd.f32 %v5668_v19, %v345_v17 }
 0x352   :  { %v336_v24 = vmul.f32 %v6713_v18, %v7220_v38 }
 0x353   :  { %v346_v20 = vmul.f32 %v5667_v14, %v335_v16 }
 0x354   :  { %v6715_v21 = vpop.eup %6714  ;;  %v347_v28 = vmul.f32 %v5667_v14, %v336_v24 }
 0x355   :  { %v357_v23 = vadd.f32 %v5668_v19, %v346_v20  ;;  %v337_v25 = vmul.f32 %v6715_v21, %v7226_v43  ;;  %v372_v43 = vld [vmem:[%s8477_s10] sm:$0x3] }
 0x356   :  { %v358_v30 = vadd.f32 %v5668_v19, %v347_v28  ;;  %v377_v45 = vrot.slane %v372_v43, %v7275_v42  ;;  %v7307_v3 = vrot.slane %v372_v43, %v7304_v1 }
 0x357   :  { %v361_v26 = vpack.c.bf16 %v357_v23, %v356_v22  ;;  %v348_v27 = vmul.f32 %v5667_v14, %v337_v25 }
 0x359   :  { %5677 = vmatmul.mubr.msk.bf16.vlgmr.msra.gmra.mxu1 %vm171_vm1, %v361_v26  ;;  %v359_v29 = vadd.f32 %v5668_v19, %v348_v27 }
 0x35a   :  { %475 = vmatprep.mubr.bf16.mxu1 %v7016_v56 }
 0x35b   :  { %v362_v31 = vpack.c.bf16 %v359_v29, %v358_v30 }
 0x361   :  { %5678 = vmatmul.mubr.msk.bf16.gmra.mxu1 %vm171_vm1, %v362_v31 }
 0x362   :  { %485 = vmatprep.mubr.bf16.mxu1 %v7016_v56 }
 0x3d4   :  { %v318_v32 = vpop.xlane.xlu1 %317 }
 0x3d5   :  { %v323_v33 = vmul.f32 0.015625, %v318_v32 }
 0x3d7   :  { %v328_v34 = vadd.f32 1e-05, %v323_v33 }
 0x3d9   :  { %6716 = vrsqrt.f32 %v328_v34 }
 0x3e6   :  { %v6717_v35 = vpop.eup %6716 }
 0x3e7   :  { %v338_v36 = vmul.f32 %v6717_v35, %v298_v9 }
 0x3e9   :  { %v349_v37 = vmul.f32 %v5667_v14, %v338_v36 }
 0x3eb   :  { %v360_v38 = vadd.f32 %v5668_v19, %v349_v37 }
 0x3ed   :  { %v363_v39 = vpack.c.bf16 %v360_v38, %v360_v38 }
 0x3ef   :  { %5679 = vmatmul.mubr.msk.bf16.gmra.mxu1 %vm171_vm1, %v363_v39 }
 0x419   :  { %v467_v44 = vpop.f32.mrf.mxu1 }
 0x41a   :  { %v468_v48 = vadd.f32 %v467_v44, %v377_v45 }
 0x41b   :  { %v7281_v46 = vpop.f32.mrf.mxu1 }
 0x41d   :  { %v471_v47 = vpop.f32.mrf.mxu1 }
 0x41e   :  { %v472_v49 = vadd.f32 %v471_v47, %v377_v45 }
 0x41f   :  { %v7283_v50 = vpop.f32.mrf.mxu1 }
 0x420   :  { %v7285_v51 = vpack.c.bf16 %v472_v49, %v468_v48 }
 0x421   :  { %v477_v52 = vpop.f32.mrf.mxu1 }
 0x422   :  { %v478_v53 = vadd.f32 %v477_v52, %v377_v45  ;;  %6202 = vmatprep.mubr.msk.bf16.mxu0 %vm510_vm4, %v7285_v51  ;;  %679 = vrot.lane.b32.xlu1 %v7285_v51, %s7017_s25 }
 0x423   :  { %v479_v54 = vpop.f32.mrf.mxu1 }
 0x424   :  { %v7291_v55 = vpack.c.bf16 %v478_v53, %v478_v53  ;;  %v7312_v6 = vadd.f32 %v479_v54, %v7307_v3 }
 0x425   :  { %v481_v57 = vpop.f32.mrf.mxu1 }
 0x426   :  { %v482_v58 = vadd.f32 %v481_v57, %v377_v45  ;;  %681 = vrot.lane.b32.xlu0 %v7291_v55, %s7017_s25  ;;  %675 = vrot.lane.b32.xlu1 %v7285_v51, %s7018_s5 }
 0x427   :  { %v483_v2 = vpop.f32.mrf.mxu1 }
 0x428   :  { %v1449_v59 = vpack.c.bf16 %v482_v58, %v478_v53  ;;  %v484_v4 = vadd.f32 %v483_v2, %v7307_v3 }
 0x42a   :  { %677 = vrot.lane.b32.xlu1 %v7291_v55, %s7018_s5  ;;  %v1568_v7 = vpack.c.bf16 %v484_v4, %v7312_v6  ;;  %v1455_v8 = vshll.u32 %v1449_v59, 16  ;;  %v1453_v17 = vshrl.u32 %v1449_v59, 16  ;;  %v7362_v4 = vsel %vm619_vm8, 65535, %v7016_v56 }
 0x42c   :  { %v1573_v10 = vshll.u32 %v1568_v7, 16  ;;  %v1457_v13 = vrot.slane %v1455_v8, 1  ;;  %v1571_v23 = vshrl.u32 %v1568_v7, 16 }
 0x42e   :  { %v1575_v18 = vrot.slane %v1573_v10, 1  ;;  %v1458_v22 = vor.u32 %v1457_v13, %v1453_v17 }
 0x430   :  { %v1576_v26 = vor.u32 %v1575_v18, %v1571_v23 }
 0x494   :  { %v680_v60 = vpop.permute.xlu1 %679 }
 0x495   :  { %v690_v0 = vsel %vm510_vm4, %v680_v60, 0 }
 0x498   :  { %v676_v61 = vpop.permute.xlu1 %675  ;;  %v682_v62 = vpop.permute.xlu0 %681 }
 0x499   :  { %6564 = vmatprep.subr.msk.bf16.mxu1 %vm510_vm4, %v682_v62  ;;  %6218 = vmatprep.mubr.msk.bf16.mxu1 %vm510_vm4, %v676_v61  ;;  %v693_v63 = vsel %vm510_vm4, %v682_v62, 0  ;;  %v474_v61 = vadd.f32 %v7283_v50, %v7307_v3  ;;  %v470_v62 = vadd.f32 %v7281_v46, %v7307_v3 }
 0x49a   :  { %6215 = vmatpush3.bf16.xpose.msra.mxu1 %v693_v63 }
 0x49b   :  { %6565 = vmatprep.subr.msk.bf16.mxu1 %vm510_vm4, %v680_v60  ;;  %v7340_v63 = vpack.c.bf16 %v474_v61, %v470_v62 }
 0x49c   :  { %v678_v5 = vpop.permute.xlu1 %677 }
 0x4a2   :  { %6217 = vmatpush3.bf16.xpose.msra.mxu1 %v690_v0  ;;  %v7344_v0 = vpack.c.bf16 %v7312_v6, %v7312_v6 }
 0x4a4   :  { %v623_v13 = vand.u32 %v7362_v4, %v7344_v0 }
 0x4a9   :  { %6219 = vmatmul.mubr.msk.bf16.vlgmr.msra.gmra.mxu1 %vm510_vm4, %v678_v5 }
 0x4af   :  { %v487_v9 = vpop.f32.mrf.mxu1 }
 0x4b0   :  { %v488_v11 = vadd.f32 %v487_v9, %v377_v45  ;;  %v7370_v9 = vld [vmem:[%s8478_s11 + $0x8] sm:$0xff]  }
 0x4b1   :  { %v489_v12 = vpop.f32.mrf.mxu1 }
 0x4b2   :  { %v7315_v14 = vpack.c.bf16 %v488_v11, %v488_v11  ;;  %v490_v15 = vadd.f32 %v489_v12, %v7307_v3 }
 0x4b3   :  { %v491_v16 = vpop.f32.mrf.mxu1 }
 0x4b4   :  { %v1460_v19 = vshll.u32 %v7315_v14, 16  ;;  %v7319_v20 = vpack.c.bf16 %v490_v15, %v490_v15 }
 0x4b5   :  { %v492_v21 = vpop.f32.mrf.mxu1 }
 0x4b6   :  { %v1462_v24 = vrot.slane %v1460_v19, 1  ;;  %v1578_v25 = vshll.u32 %v7319_v20, 16 }
 0x4b8   :  { %v7323_v27 = vsel %vm1451_vm5, %v1458_v22, %v1462_v24  ;;  %v1580_v28 = vrot.slane %v1578_v25, 1 }
 0x4ba   :  { %v7326_v29 = vsel %vm1451_vm5, %v1576_v26, %v1580_v28 }
 0x569   :  { %v6220_v30 = vpop.f32.mrf.mxu1 }
 0x56a   :  { %v745_v34 = vmul.f32 0.25, %v6220_v30 }
 0x56b   :  { %v729_v31 = vpop.f32.mrf.mxu1 }
 0x56c   :  { %v743_v32 = vmul.f32 0.25, %v729_v31  ;;  %v752_v38 = vsel %vm581_vm7, %v745_v34, -inf }
 0x56d   :  { %v6221_v33 = vpop.f32.mrf.mxu1 }
 0x56e   :  { %v746_v35 = vsel %vm574_vm6, %v743_v32, -inf }
 0x56f   :  { %747 = vmax.xlane.f32.xlu0 %v746_v35  ;;  %v732_v36 = vpop.f32.mrf.mxu1 }
 0x570   :  { %v744_v37 = vmul.f32 0.25, %v732_v36 }
 0x572   :  { %v749_v39 = vsel %vm574_vm6, %v744_v37, -inf }
 0x573   :  { %753 = vmax.xlane.f32.xlu0 %v752_v38  ;;  %750 = vmax.xlane.f32.xlu1 %v749_v39 }
 0x5f8   :  { %v748_v40 = vpop.xlane.xlu0 %747 }
 0x5f9   :  { %v755_v41 = vsub.f32 %v743_v32, %v748_v40 }
 0x5fb   :  { %v758_v43 = vmul.f32 1.442695, %v755_v41 }
 0x5fc   :  { %v754_v44 = vpop.xlane.xlu0 %753  ;;  %v751_v45 = vpop.xlane.xlu1 %750 }
 0x5fd   :  { %6718 = vpow2.f32 %v758_v43  ;;  %v757_v47 = vsub.f32 %v745_v34, %v754_v44  ;;  %v756_v48 = vsub.f32 %v744_v37, %v751_v45 }
 0x5ff   :  { %v762_v49 = vmul.f32 1.442695, %v757_v47  ;;  %v760_v52 = vmul.f32 1.442695, %v756_v48 }
 0x601   :  { %6720 = vpow2.f32 %v762_v49 }
 0x602   :  { %6722 = vpow2.f32 %v760_v52 }
 0x60a   :  { %v6719_v53 = vpop.eup %6718 }
 0x60b   :  { %v764_v54 = vsel %vm574_vm6, %v6719_v53, 0.0 }
 0x60c   :  { %765 = vadd.xlane.f32.xlu0 %v764_v54 }
 0x60e   :  { %v6721_v57 = vpop.eup %6720 }
 0x60f   :  { %v6723_v58 = vpop.eup %6722  ;;  %v770_v59 = vsel %vm581_vm7, %v6721_v57, 0.0 }
 0x610   :  { %771 = vadd.xlane.f32.xlu1 %v770_v59  ;;  %v767_v60 = vsel %vm574_vm6, %v6723_v58, 0.0 }
 0x611   :  { %768 = vadd.xlane.f32.xlu0 %v767_v60 }
 0x621   :  { %508 = vrot.lane.b32.xlu1 %v7291_v55, %s7019_s24 }
 0x625   :  { %783 = vrot.lane.b32.xlu1 %v7340_v63, %s7018_s5 }
 0x627   :  { %785 = vrot.lane.b32.xlu0 %v7344_v0, %s7018_s5 }
 0x629   :  { %506 = vrot.lane.b32.xlu1 %v7285_v51, %s7019_s24 }
 0x62b   :  { %973 = vrot.lane.b32.xlu0 %v7291_v55, %s7020_s1 }
 0x62d   :  { %971 = vrot.lane.b32.xlu1 %v7285_v51, %s7020_s1 }
 0x62f   :  { %967 = vrot.lane.b32.xlu0 %v7285_v51, %s8500_s26 }
 0x631   :  { %969 = vrot.lane.b32.xlu1 %v7291_v55, %s8500_s26 }
 0x695   :  { %v766_v46 = vpop.xlane.xlu0 %765 }
 0x696   :  { %6724 = vrcp.f32 %v766_v46 }
 0x699   :  { %v772_v50 = vpop.xlane.xlu1 %771 }
 0x69a   :  { %v769_v2 = vpop.xlane.xlu0 %768  ;;  %6726 = vrcp.f32 %v772_v50 }
 0x69b   :  { %6728 = vrcp.f32 %v769_v2 }
 0x69d   :  { %v509_v3 = vpop.permute.xlu1 %508 }
 0x69e   :  { %v786_v5 = vpop.permute.xlu0 %785  ;;  %6562 = vmatprep.subr.msk.bf16.mxu0 %vm510_vm4, %v509_v3  ;;  %v521_v6 = vsel %vm510_vm4, %v509_v3, 0 }
 0x69f   :  { %v795_v7 = vand.u32 %v786_v5, %v7362_v4  ;;  %6199 = vmatpush3.bf16.xpose.msra.mxu0 %v521_v6 }
 0x6a1   :  { %6222 = vmatprep.subr.bf16.mxu1 %v795_v7  ;;  %v784_v8 = vpop.permute.xlu1 %783 }
 0x6a2   :  { %6223 = vmatpush3.bf16.msra.mxu1 %v795_v7  ;;  %v974_v23 = vpop.permute.xlu0 %973 }
 0x6a3   :  { %6224 = vmatprep.subr.bf16.mxu1 %v784_v8  ;;  %v6725_v11 = vpop.eup %6724  ;;  %v985_v44 = vsel %vm510_vm4, %v974_v23, 0 }
 0x6a4   :  { %v774_v18 = vmul.f32 %v6725_v11, %v6719_v53 }
 0x6a5   :  { %v507_v10 = vpop.permute.xlu1 %506 }
 0x6a6   :  { %6225 = vmatpush3.bf16.msra.mxu1 %v784_v8  ;;  %6563 = vmatprep.subr.msk.bf16.mxu0 %vm510_vm4, %v507_v10  ;;  %v518_v12 = vsel %vm510_vm4, %v507_v10, 0  ;;  %v968_v43 = vpop.permute.xlu0 %967 }
 0x6a7   :  { %v6727_v15 = vpop.eup %6726  ;;  %6201 = vmatpush3.bf16.xpose.msra.mxu0 %v518_v12  ;;  %6230 = vmatprep.subr.bf16.mxu1 %v7370_v9 }
 0x6a8   :  { %v6729_v16 = vpop.eup %6728  ;;  %6206 = vmatprep.subr.bf16.mxu0 %v623_v13  ;;  %v778_v17 = vmul.f32 %v6727_v15, %v6721_v57 }
 0x6a9   :  { %v776_v19 = vmul.f32 %v6729_v16, %v6723_v58  ;;  %v972_v45 = vpop.permute.xlu1 %971 }
 0x6aa   :  { %v780_v21 = vpack.c.bf16 %v778_v17, %v778_v17  ;;  %v982_v47 = vsel %vm510_vm4, %v972_v45, 0 }
 0x6ab   :  { %v779_v22 = vpack.c.bf16 %v776_v19, %v774_v18 }
 0x6ad   :  { %6226 = vmatprep.mubr.msk.bf16.mxu1 %vm574_vm6, %v779_v22  ;;  %v970_v48 = vpop.permute.xlu1 %969 }
 0x6ae   :  { %6227 = vmatmul.mubr.msk.bf16.vlgmr.msra.gmra.mxu1 %vm574_vm6, %v780_v21  ;;  %6203 = vmatmul.mubr.msk.bf16.vlgmr.msra.gmra.mxu0 %vm510_vm4, %v7291_v55 }
 0x6af   :  { %6231 = vmatpush3.bf16.msra.mxu1 %v7370_v9  ;;  %6207 = vmatpush3.bf16.msra.mxu0 %v623_v13 }
 0x6b0   :  { %6566 = vmatprep.subr.msk.bf16.mxu1 %vm510_vm4, %v974_v23  ;;  %6208 = vmatprep.subr.bf16.mxu0 %v7340_v63 }
 0x6b3   :  { %6209 = vmatpush3.bf16.msra.mxu0 %v7340_v63 }
 0x76e   :  { %v6228_v24 = vpop.f32.mrf.mxu1  ;;  %v6204_v25 = vpop.f32.mrf.mxu0 }
 0x76f   :  { %v573_v33 = vmul.f32 0.25, %v6204_v25  ;;  %v846_v39 = vpack.c.bf16 %v6228_v24, %v6228_v24 }
 0x770   :  { %v831_v26 = vpop.f32.mrf.mxu1  ;;  %v557_v28 = vpop.f32.mrf.mxu0 }
 0x771   :  { %v571_v30 = vmul.f32 0.25, %v557_v28  ;;  %v582_v40 = vsel %vm581_vm7, %v573_v33, -inf }
 0x772   :  { %v6229_v31 = vpop.f32.mrf.mxu1  ;;  %v6205_v32 = vpop.f32.mrf.mxu0 }
 0x773   :  { %v575_v34 = vsel %vm574_vm6, %v571_v30, -inf }
 0x774   :  { %v834_v35 = vpop.f32.mrf.mxu1  ;;  %576 = vmax.xlane.f32.xlu0 %v575_v34  ;;  %v560_v36 = vpop.f32.mrf.mxu0 }
 0x775   :  { %v845_v37 = vpack.c.bf16 %v834_v35, %v831_v26  ;;  %v572_v38 = vmul.f32 0.25, %v560_v36 }
 0x777   :  { %6232 = vmatprep.mubr.msk.bf16.mxu1 %vm510_vm4, %v845_v37  ;;  %v578_v41 = vsel %vm574_vm6, %v572_v38, -inf }
 0x778   :  { %6233 = vmatmul.mubr.msk.bf16.vlgmr.msra.gmra.mxu1 %vm510_vm4, %v846_v39  ;;  %583 = vmax.xlane.f32.xlu0 %v582_v40 }
 0x779   :  { %6243 = vmatpush3.bf16.xpose.msra.mxu1 %v985_v44  ;;  %6246 = vmatprep.mubr.msk.bf16.mxu1 %vm510_vm4, %v968_v43 }
 0x77a   :  { %579 = vmax.xlane.f32.xlu1 %v578_v41  ;;  %6567 = vmatprep.subr.msk.bf16.mxu1 %vm510_vm4, %v972_v45 }
 0x781   :  { %6245 = vmatpush3.bf16.xpose.msra.mxu1 %v982_v47 }
 0x788   :  { %6247 = vmatmul.mubr.msk.bf16.vlgmr.msra.gmra.mxu1 %vm510_vm4, %v970_v48 }
 0x7fd   :  { %v577_v49 = vpop.xlane.xlu0 %576 }
 0x7fe   :  { %v585_v52 = vsub.f32 %v571_v30, %v577_v49 }
 0x800   :  { %v588_v53 = vmul.f32 1.442695, %v585_v52 }
 0x801   :  { %v584_v54 = vpop.xlane.xlu0 %583 }
 0x802   :  { %6730 = vpow2.f32 %v588_v53  ;;  %v587_v57 = vsub.f32 %v573_v33, %v584_v54 }
 0x803   :  { %v580_v58 = vpop.xlane.xlu1 %579 }
 0x804   :  { %v592_v59 = vmul.f32 1.442695, %v587_v57  ;;  %v586_v60 = vsub.f32 %v572_v38, %v580_v58 }
 0x806   :  { %6732 = vpow2.f32 %v592_v59  ;;  %v590_v61 = vmul.f32 1.442695, %v586_v60 }
 0x808   :  { %6734 = vpow2.f32 %v590_v61  ;;  %v7431_v61 = vld [vmem:[%s8478_s11] sm:$0xff]  }
 0x809   :  { %6236 = vmatprep.subr.bf16.mxu0 %v7431_v61 }
 0x80f   :  { %v6731_v62 = vpop.eup %6730 }
 0x810   :  { %v594_v46 = vsel %vm574_vm6, %v6731_v62, 0.0 }
 0x811   :  { %595 = vadd.xlane.f32.xlu0 %v594_v46 }
 0x813   :  { %v6733_v50 = vpop.eup %6732 }
 0x814   :  { %v600_v2 = vsel %vm581_vm7, %v6733_v50, 0.0 }
 0x815   :  { %v6735_v3 = vpop.eup %6734  ;;  %601 = vadd.xlane.f32.xlu1 %v600_v2 }
 0x816   :  { %v597_v5 = vsel %vm574_vm6, %v6735_v3, 0.0 }
 0x817   :  { %598 = vadd.xlane.f32.xlu0 %v597_v5 }
 0x826   :  { %1204 = vrot.lane.b32.xlu1 %v7285_v51, %s8498_s27 }
 0x82a   :  { %1200 = vrot.lane.b32.xlu1 %v7285_v51, %s8496_s7 }
 0x82d   :  { %1206 = vrot.lane.b32.xlu0 %v7291_v55, %s8498_s27 }
 0x82e   :  { %1202 = vrot.lane.b32.xlu1 %v7291_v55, %s8496_s7 }
 0x838   :  { %v7406_v6 = vpop.f32.mrf.mxu1 }
 0x83a   :  { %v7408_v7 = vpop.f32.mrf.mxu1 }
 0x83c   :  { %v6235_v8 = vpop.f32.mrf.mxu1 }
 0x83e   :  { %v7410_v10 = vpop.f32.mrf.mxu1 }
 0x848   :  { %v6248_v11 = vpop.f32.mrf.mxu1 }
 0x849   :  { %v1037_v16 = vmul.f32 0.25, %v6248_v11 }
 0x84a   :  { %v1021_v12 = vpop.f32.mrf.mxu1 }
 0x84b   :  { %v1035_v13 = vmul.f32 0.25, %v1021_v12  ;;  %v1044_v19 = vsel %vm581_vm7, %v1037_v16, -inf }
 0x84c   :  { %v6249_v15 = vpop.f32.mrf.mxu1 }
 0x84d   :  { %v1038_v51 = vsel %vm574_vm6, %v1035_v13, -inf }
 0x84e   :  { %v1024_v17 = vpop.f32.mrf.mxu1  ;;  %1039 = vmax.xlane.f32.xlu0 %v1038_v51 }
 0x84f   :  { %v1036_v18 = vmul.f32 0.25, %v1024_v17 }
 0x851   :  { %v1041_v55 = vsel %vm574_vm6, %v1036_v18, -inf }
 0x852   :  { %1045 = vmax.xlane.f32.xlu0 %v1044_v19  ;;  %1042 = vmax.xlane.f32.xlu1 %v1041_v55 }
 0x89a   :  { %v596_v21 = vpop.xlane.xlu0 %595 }
 0x89b   :  { %6736 = vrcp.f32 %v596_v21 }
 0x89e   :  { %v602_v22 = vpop.xlane.xlu1 %601 }
 0x89f   :  { %6738 = vrcp.f32 %v602_v22 }
 0x8a0   :  { %v599_v23 = vpop.xlane.xlu0 %598 }
 0x8a1   :  { %6740 = vrcp.f32 %v599_v23 }
 0x8a2   :  { %v1205_v24 = vpop.permute.xlu1 %1204 }
 0x8a3   :  { %v1215_v32 = vsel %vm510_vm4, %v1205_v24, 0 }
 0x8a4   :  { %v1207_v25 = vpop.permute.xlu0 %1206 }
 0x8a5   :  { %6568 = vmatprep.subr.msk.bf16.mxu1 %vm510_vm4, %v1207_v25  ;;  %v1218_v26 = vsel %vm510_vm4, %v1207_v25, 0 }
 0x8a6   :  { %6265 = vmatpush3.bf16.xpose.msra.mxu1 %v1218_v26  ;;  %v1201_v28 = vpop.permute.xlu1 %1200 }
 0x8a7   :  { %6569 = vmatprep.subr.msk.bf16.mxu1 %vm510_vm4, %v1205_v24  ;;  %6268 = vmatprep.mubr.msk.bf16.mxu1 %vm510_vm4, %v1201_v28 }
 0x8a8   :  { %v6737_v30 = vpop.eup %6736 }
 0x8a9   :  { %v604_v35 = vmul.f32 %v6737_v30, %v6731_v62  ;;  %v7438_v62 = vshrl.u32 %v7315_v14, 16 }
 0x8aa   :  { %v1203_v39 = vpop.permute.xlu1 %1202 }
 0x8ac   :  { %v6739_v31 = vpop.eup %6738 }
 0x8ad   :  { %v608_v33 = vmul.f32 %v6739_v31, %v6733_v50 }
 0x8ae   :  { %v6741_v34 = vpop.eup %6740  ;;  %6267 = vmatpush3.bf16.xpose.msra.mxu1 %v1215_v32 }
 0x8af   :  { %v606_v36 = vmul.f32 %v6741_v34, %v6735_v3  ;;  %v610_v37 = vpack.c.bf16 %v608_v33, %v608_v33 }
 0x8b1   :  { %v609_v38 = vpack.c.bf16 %v606_v36, %v604_v35 }
 0x8b3   :  { %6210 = vmatprep.mubr.msk.bf16.mxu0 %vm574_vm6, %v609_v38 }
 0x8b4   :  { %6211 = vmatmul.mubr.msk.bf16.vlgmr.msra.gmra.mxu0 %vm574_vm6, %v610_v37 }
 0x8b5   :  { %6269 = vmatmul.mubr.msk.bf16.vlgmr.msra.gmra.mxu1 %vm510_vm4, %v1203_v39  ;;  %6237 = vmatpush3.bf16.msra.mxu0 %v7431_v61 }
 0x8b6   :  { %6290 = vmatprep.mubr.msk.bf16.mxu1 %vm510_vm4, %v7323_v27 }
 0x8d7   :  { %v1040_v40 = vpop.xlane.xlu0 %1039 }
 0x8d8   :  { %v1047_v41 = vsub.f32 %v1035_v13, %v1040_v40  ;;  %v7463_v40 = vld [vmem:[%s8478_s11 + $0x10] sm:$0xff]  }
 0x8da   :  { %v1050_v43 = vmul.f32 1.442695, %v1047_v41 }
 0x8db   :  { %v1046_v44 = vpop.xlane.xlu0 %1045  ;;  %v1043_v45 = vpop.xlane.xlu1 %1042 }
 0x8dc   :  { %6742 = vpow2.f32 %v1050_v43  ;;  %v1049_v47 = vsub.f32 %v1037_v16, %v1046_v44  ;;  %v1048_v48 = vsub.f32 %v1036_v18, %v1043_v45 }
 0x8de   :  { %v1054_v49 = vmul.f32 1.442695, %v1049_v47  ;;  %v1052_v52 = vmul.f32 1.442695, %v1048_v48 }
 0x8e0   :  { %6744 = vpow2.f32 %v1054_v49 }
 0x8e1   :  { %6746 = vpow2.f32 %v1052_v52 }
 0x8e9   :  { %v6743_v53 = vpop.eup %6742 }
 0x8ea   :  { %v1056_v54 = vsel %vm574_vm6, %v6743_v53, 0.0 }
 0x8eb   :  { %1057 = vadd.xlane.f32.xlu0 %v1056_v54 }
 0x8ed   :  { %v6745_v57 = vpop.eup %6744 }
 0x8ee   :  { %v6747_v58 = vpop.eup %6746  ;;  %v1062_v59 = vsel %vm581_vm7, %v6745_v57, 0.0 }
 0x8ef   :  { %1063 = vadd.xlane.f32.xlu1 %v1062_v59  ;;  %v1059_v60 = vsel %vm574_vm6, %v6747_v58, 0.0 }
 0x8f0   :  { %1060 = vadd.xlane.f32.xlu0 %v1059_v60 }
 0x900   :  { %1073 = vrot.lane.b32.xlu1 %v7340_v63, %s8500_s26 }
 0x904   :  { %1468 = vrot.lane.b32.xlu1 %v7438_v62, %s7019_s24 }
 0x906   :  { %1075 = vrot.lane.b32.xlu0 %v7344_v0, %s8500_s26 }
 0x908   :  { %1466 = vrot.lane.b32.xlu1 %v7323_v27, %s7019_s24 }
 0x974   :  { %v6212_v46 = vpop.f32.mrf.mxu0  ;;  %v1058_v50 = vpop.xlane.xlu0 %1057 }
 0x975   :  { %v6270_v2 = vpop.f32.mrf.mxu1  ;;  %6748 = vrcp.f32 %v1058_v50  ;;  %v674_v19 = vpack.c.bf16 %v6212_v46, %v6212_v46 }
 0x976   :  { %v659_v3 = vpop.f32.mrf.mxu0  ;;  %v1270_v15 = vmul.f32 0.25, %v6270_v2 }
 0x977   :  { %v1254_v5 = vpop.f32.mrf.mxu1 }
 0x978   :  { %v1268_v8 = vmul.f32 0.25, %v1254_v5  ;;  %v6213_v11 = vpop.f32.mrf.mxu0  ;;  %v1064_v12 = vpop.xlane.xlu1 %1063  ;;  %v1277_v25 = vsel %vm581_vm7, %v1270_v15, -inf }
 0x979   :  { %6750 = vrcp.f32 %v1064_v12  ;;  %v6271_v14 = vpop.f32.mrf.mxu1  ;;  %v1061_v13 = vpop.xlane.xlu0 %1060 }
 0x97a   :  { %v662_v16 = vpop.f32.mrf.mxu0  ;;  %6752 = vrcp.f32 %v1061_v13  ;;  %v1271_v51 = vsel %vm574_vm6, %v1268_v8, -inf }
 0x97b   :  { %v673_v17 = vpack.c.bf16 %v662_v16, %v659_v3  ;;  %v1257_v18 = vpop.f32.mrf.mxu1  ;;  %1272 = vmax.xlane.f32.xlu0 %v1271_v51 }
 0x97c   :  { %v1269_v55 = vmul.f32 0.25, %v1257_v18  ;;  %v1074_v21 = vpop.permute.xlu1 %1073 }
 0x97d   :  { %6238 = vmatprep.mubr.msk.bf16.mxu0 %vm510_vm4, %v673_v17  ;;  %v1076_v22 = vpop.permute.xlu0 %1075 }
 0x97e   :  { %6239 = vmatmul.mubr.msk.bf16.vlgmr.msra.gmra.mxu0 %vm510_vm4, %v674_v19  ;;  %v1085_v23 = vand.u32 %v1076_v22, %v7362_v4  ;;  %v1274_v24 = vsel %vm574_vm6, %v1269_v55, -inf }
 0x97f   :  { %1275 = vmax.xlane.f32.xlu1 %v1274_v24  ;;  %1278 = vmax.xlane.f32.xlu0 %v1277_v25 }
 0x980   :  { %v1469_v26 = vpop.permute.xlu1 %1468  ;;  %6250 = vmatprep.subr.bf16.mxu0 %v1085_v23 }
 0x981   :  { %6570 = vmatprep.subr.msk.bf16.mxu1 %vm510_vm4, %v1469_v26  ;;  %6251 = vmatpush3.bf16.msra.mxu0 %v1085_v23  ;;  %v1480_v28 = vsel %vm510_vm4, %v1469_v26, 0 }
 0x982   :  { %6287 = vmatpush3.bf16.xpose.msra.mxu1 %v1480_v28  ;;  %6252 = vmatprep.subr.bf16.mxu0 %v1074_v21  ;;  %v6749_v31 = vpop.eup %6748 }
 0x983   :  { %v1066_v35 = vmul.f32 %v6749_v31, %v6743_v53  ;;  %v7489_v31 = vld [vmem:[%s8478_s11 + $0x18] sm:$0xff]  }
 0x984   :  { %v1467_v30 = vpop.permute.xlu1 %1466 }
 0x985   :  { %6571 = vmatprep.subr.msk.bf16.mxu1 %vm510_vm4, %v1467_v30  ;;  %6253 = vmatpush3.bf16.msra.mxu0 %v1074_v21  ;;  %v1477_v37 = vsel %vm510_vm4, %v1467_v30, 0 }
 0x986   :  { %v6751_v32 = vpop.eup %6750  ;;  %6258 = vmatprep.subr.bf16.mxu0 %v7463_v40 }
 0x987   :  { %v6753_v33 = vpop.eup %6752  ;;  %v1070_v34 = vmul.f32 %v6751_v32, %v6745_v57 }
 0x988   :  { %v1068_v36 = vmul.f32 %v6753_v33, %v6747_v58 }
 0x989   :  { %v1072_v39 = vpack.c.bf16 %v1070_v34, %v1070_v34 }
 0x98a   :  { %6289 = vmatpush3.bf16.xpose.msra.mxu1 %v1477_v37  ;;  %v1071_v38 = vpack.c.bf16 %v1068_v36, %v1066_v35 }
 0x98c   :  { %6254 = vmatprep.mubr.msk.bf16.mxu0 %vm574_vm6, %v1071_v38  ;;  %v7493_v38 = vshrl.u32 %v7319_v20, 16 }
 0x98d   :  { %6255 = vmatmul.mubr.msk.bf16.vlgmr.msra.gmra.mxu0 %vm574_vm6, %v1072_v39 }
 0x98e   :  { %6259 = vmatpush3.bf16.msra.mxu0 %v7463_v40 }
 0x991   :  { %6291 = vmatmul.mubr.msk.bf16.vlgmr.msra.gmra.mxu1 %vm510_vm4, %v7438_v62 }
 0xa04   :  { %v1273_v41 = vpop.xlane.xlu0 %1272 }
 0xa05   :  { %v1280_v43 = vsub.f32 %v1268_v8, %v1273_v41 }
 0xa07   :  { %v1283_v44 = vmul.f32 1.442695, %v1280_v43  ;;  %v1592_v43 = vand.u32 %v7493_v38, %v7362_v4 }
 0xa08   :  { %v1279_v45 = vpop.xlane.xlu0 %1278  ;;  %v1276_v47 = vpop.xlane.xlu1 %1275 }
 0xa09   :  { %6754 = vpow2.f32 %v1283_v44  ;;  %v1282_v48 = vsub.f32 %v1270_v15, %v1279_v45  ;;  %v1281_v49 = vsub.f32 %v1269_v55, %v1276_v47 }
 0xa0b   :  { %v1287_v52 = vmul.f32 1.442695, %v1282_v48  ;;  %v1285_v53 = vmul.f32 1.442695, %v1281_v49 }
 0xa0d   :  { %6756 = vpow2.f32 %v1287_v52 }
 0xa0e   :  { %6758 = vpow2.f32 %v1285_v53 }
 0xa16   :  { %v6755_v54 = vpop.eup %6754 }
 0xa17   :  { %v1289_v57 = vsel %vm574_vm6, %v6755_v54, 0.0 }
 0xa18   :  { %1290 = vadd.xlane.f32.xlu0 %v1289_v57 }
 0xa1a   :  { %v6757_v58 = vpop.eup %6756 }
 0xa1b   :  { %v6759_v59 = vpop.eup %6758  ;;  %v1295_v60 = vsel %vm581_vm7, %v6757_v58, 0.0 }
 0xa1c   :  { %1296 = vadd.xlane.f32.xlu1 %v1295_v60  ;;  %v1292_v46 = vsel %vm574_vm6, %v6759_v59, 0.0 }
 0xa1d   :  { %1293 = vadd.xlane.f32.xlu0 %v1292_v46 }
 0xa2d   :  { %1306 = vrot.lane.b32.xlu1 %v7340_v63, %s8496_s7 }
 0xa33   :  { %1308 = vrot.lane.b32.xlu0 %v7344_v0, %s8496_s7 }
 0xa3e   :  { %v7474_v50 = vpop.f32.mrf.mxu0 }
 0xa40   :  { %v7476_v2 = vpop.f32.mrf.mxu0 }
 0xa42   :  { %v6241_v3 = vpop.f32.mrf.mxu0 }
 0xa44   :  { %v7478_v5 = vpop.f32.mrf.mxu0 }
 0xa4d   :  { %v6256_v8 = vpop.f32.mrf.mxu0 }
 0xa4e   :  { %v1136_v17 = vpack.c.bf16 %v6256_v8, %v6256_v8  ;;  %v962_v8 = vadd.f32 %v7474_v50, %v7406_v6 }
 0xa4f   :  { %v1121_v11 = vpop.f32.mrf.mxu0 }
 0xa51   :  { %v6292_v12 = vpop.f32.mrf.mxu1  ;;  %v6257_v14 = vpop.f32.mrf.mxu0 }
 0xa52   :  { %v1532_v55 = vmul.f32 0.25, %v6292_v12  ;;  %v954_v12 = vadd.f32 %v7476_v2, %v7408_v7 }
 0xa53   :  { %v1516_v13 = vpop.f32.mrf.mxu1  ;;  %v1124_v15 = vpop.f32.mrf.mxu0 }
 0xa54   :  { %v1530_v16 = vmul.f32 0.25, %v1516_v13  ;;  %v1135_v51 = vpack.c.bf16 %v1124_v15, %v1121_v11  ;;  %v1539_v22 = vsel %vm581_vm7, %v1532_v55, -inf }
 0xa55   :  { %v6293_v63 = vpop.f32.mrf.mxu1 }
 0xa56   :  { %6260 = vmatprep.mubr.msk.bf16.mxu0 %vm510_vm4, %v1135_v51  ;;  %v1533_v0 = vsel %vm574_vm6, %v1530_v16, -inf }
 0xa57   :  { %1534 = vmax.xlane.f32.xlu1 %v1533_v0  ;;  %v1519_v18 = vpop.f32.mrf.mxu1  ;;  %6261 = vmatmul.mubr.msk.bf16.vlgmr.msra.gmra.mxu0 %vm510_vm4, %v1136_v17 }
 0xa58   :  { %v1531_v19 = vmul.f32 0.25, %v1519_v18 }
 0xa5a   :  { %v1536_v21 = vsel %vm574_vm6, %v1531_v19, -inf }
 0xa5b   :  { %1537 = vmax.xlane.f32.xlu0 %v1536_v21 }
 0xa5f   :  { %1540 = vmax.xlane.f32.xlu0 %v1539_v22 }
 0xaa1   :  { %v1291_v23 = vpop.xlane.xlu0 %1290 }
 0xaa2   :  { %6760 = vrcp.f32 %v1291_v23 }
 0xaa5   :  { %v1297_v24 = vpop.xlane.xlu1 %1296 }
 0xaa6   :  { %v1294_v25 = vpop.xlane.xlu0 %1293  ;;  %6762 = vrcp.f32 %v1297_v24 }
 0xaa7   :  { %6764 = vrcp.f32 %v1294_v25 }
 0xaa9   :  { %v1307_v30 = vpop.permute.xlu1 %1306 }
 0xaaa   :  { %v1309_v26 = vpop.permute.xlu0 %1308 }
 0xaab   :  { %v1318_v28 = vand.u32 %v1309_v26, %v7362_v4 }
 0xaad   :  { %6272 = vmatprep.subr.bf16.mxu0 %v1318_v28 }
 0xaae   :  { %6273 = vmatpush3.bf16.msra.mxu0 %v1318_v28 }
 0xaaf   :  { %6274 = vmatprep.subr.bf16.mxu0 %v1307_v30  ;;  %v6761_v32 = vpop.eup %6760 }
 0xab0   :  { %v1299_v36 = vmul.f32 %v6761_v32, %v6755_v54 }
 0xab2   :  { %6275 = vmatpush3.bf16.msra.mxu0 %v1307_v30 }
 0xab3   :  { %v6763_v33 = vpop.eup %6762  ;;  %6280 = vmatprep.subr.bf16.mxu0 %v7489_v31 }
 0xab4   :  { %v6765_v34 = vpop.eup %6764  ;;  %v1303_v35 = vmul.f32 %v6763_v33, %v6757_v58 }
 0xab5   :  { %v1301_v37 = vmul.f32 %v6765_v34, %v6759_v59 }
 0xab6   :  { %v1305_v39 = vpack.c.bf16 %v1303_v35, %v1303_v35 }
 0xab7   :  { %v1304_v41 = vpack.c.bf16 %v1301_v37, %v1299_v36 }
 0xab9   :  { %6276 = vmatprep.mubr.msk.bf16.mxu0 %vm574_vm6, %v1304_v41  ;;  %v7532_v41 = vld [vmem:[%s8479_s12] ss:$0 sm:$0xff] }
 0xaba   :  { %6277 = vmatmul.mubr.msk.bf16.vlgmr.msra.gmra.mxu0 %vm574_vm6, %v1305_v39 }
 0xabb   :  { %6281 = vmatpush3.bf16.msra.mxu0 %v7489_v31 }
 0xabc   :  { %6294 = vmatprep.subr.bf16.mxu0 %v1592_v43 }
 0xae0   :  { %v1535_v44 = vpop.xlane.xlu1 %1534 }
 0xae1   :  { %v1542_v45 = vsub.f32 %v1530_v16, %v1535_v44  ;;  %v957_v44 = vadd.f32 %v7478_v5, %v7410_v10  ;;  %v6986_v10 = vld [vmem:[#allocation2 + $0x8] sm:$0xff] }
 0xae3   :  { %v1545_v47 = vmul.f32 1.442695, %v1542_v45  ;;  %v7536_v45 = vld [vmem:[#allocation2 + $0x10] sm:$0xff] }
 0xae4   :  { %v1538_v48 = vpop.xlane.xlu0 %1537 }
 0xae5   :  { %6766 = vpow2.f32 %v1545_v47  ;;  %v1543_v49 = vsub.f32 %v1531_v19, %v1538_v48 }
 0xae7   :  { %v1547_v20 = vmul.f32 1.442695, %v1543_v49 }
 0xae8   :  { %v1541_v52 = vpop.xlane.xlu0 %1540 }
 0xae9   :  { %6768 = vpow2.f32 %v1547_v20  ;;  %v1544_v53 = vsub.f32 %v1532_v55, %v1541_v52  ;;  %v6985_v52 = vld [vmem:[#allocation2] sm:$0xff] }
 0xaeb   :  { %v1549_v54 = vmul.f32 1.442695, %v1544_v53 }
 0xaed   :  { %6770 = vpow2.f32 %v1549_v54 }
 0xaf2   :  { %v6767_v57 = vpop.eup %6766 }
 0xaf3   :  { %v1551_v58 = vsel %vm574_vm6, %v6767_v57, 0.0 }
 0xaf4   :  { %1552 = vadd.xlane.f32.xlu1 %v1551_v58 }
 0xaf6   :  { %v6769_v59 = vpop.eup %6768 }
 0xaf7   :  { %v1554_v60 = vsel %vm574_vm6, %v6769_v59, 0.0 }
 0xaf8   :  { %1555 = vadd.xlane.f32.xlu0 %v1554_v60 }
 0xafa   :  { %v6771_v46 = vpop.eup %6770 }
 0xafb   :  { %v1557_v3 = vsel %vm581_vm7, %v6771_v46, 0.0 }
 0xafc   :  { %1558 = vadd.xlane.f32.xlu1 %v1557_v3 }
 0xb0d   :  { %1648 = vrot.lane.b32.xlu1 %v7323_v27, %s7017_s25 }
 0xb0e   :  { %1650 = vrot.lane.b32.xlu0 %v7438_v62, %s7017_s25 }
 0xb11   :  { %1644 = vrot.lane.b32.xlu1 %v7323_v27, %s7018_s5 }
 0xb15   :  { %1646 = vrot.lane.b32.xlu1 %v7438_v62, %s7018_s5 }
 0xb17   :  { %v6262_v11 = vpop.f32.mrf.mxu0 }
 0xb18   :  { %v1199_v14 = vadd.f32 %v6262_v11, %v962_v8 }
 0xb19   :  { %v1183_v13 = vpop.f32.mrf.mxu0 }
 0xb1a   :  { %v1197_v15 = vadd.f32 %v1183_v13, %v954_v12 }
 0xb1b   :  { %v6263_v16 = vpop.f32.mrf.mxu0 }
 0xb1d   :  { %v1186_v51 = vpop.f32.mrf.mxu0 }
 0xb1e   :  { %v1198_v20 = vadd.f32 %v1186_v51, %v957_v44 }
 0xb7a   :  { %v6278_v17 = vpop.f32.mrf.mxu0 }
 0xb7b   :  { %v1369_v22 = vpack.c.bf16 %v6278_v17, %v6278_v17 }
 0xb7c   :  { %v1354_v63 = vpop.f32.mrf.mxu0 }
 0xb7d   :  { %v1553_v0 = vpop.xlane.xlu1 %1552 }
 0xb7e   :  { %v6279_v18 = vpop.f32.mrf.mxu0  ;;  %6772 = vrcp.f32 %v1553_v0 }
 0xb80   :  { %v1357_v19 = vpop.f32.mrf.mxu0 }
 0xb81   :  { %v1368_v55 = vpack.c.bf16 %v1357_v19, %v1354_v63  ;;  %v1556_v21 = vpop.xlane.xlu0 %1555 }
 0xb82   :  { %6774 = vrcp.f32 %v1556_v21 }
 0xb83   :  { %6282 = vmatprep.mubr.msk.bf16.mxu0 %vm510_vm4, %v1368_v55 }
 0xb84   :  { %6283 = vmatmul.mubr.msk.bf16.vlgmr.msra.gmra.mxu0 %vm510_vm4, %v1369_v22 }
 0xb85   :  { %6295 = vmatpush3.bf16.msra.mxu0 %v1592_v43  ;;  %v1559_v6 = vpop.xlane.xlu1 %1558  ;;  %v1651_v7 = vpop.permute.xlu0 %1650 }
 0xb86   :  { %6296 = vmatprep.subr.bf16.mxu0 %v7326_v29  ;;  %6776 = vrcp.f32 %v1559_v6  ;;  %v1662_v34 = vsel %vm510_vm4, %v1651_v7, 0 }
 0xb89   :  { %6297 = vmatpush3.bf16.msra.mxu0 %v7326_v29  ;;  %v1649_v25 = vpop.permute.xlu1 %1648 }
 0xb8a   :  { %6572 = vmatprep.subr.msk.bf16.mxu0 %vm510_vm4, %v1651_v7  ;;  %v1659_v35 = vsel %vm510_vm4, %v1649_v25, 0 }
 0xb8b   :  { %v6773_v50 = vpop.eup %6772 }
 0xb8c   :  { %v1561_v23 = vmul.f32 %v6773_v50, %v6767_v57 }
 0xb8d   :  { %v1645_v33 = vpop.permute.xlu1 %1644 }
 0xb8f   :  { %v6775_v2 = vpop.eup %6774 }
 0xb90   :  { %v1563_v24 = vmul.f32 %v6775_v2, %v6769_v59 }
 0xb91   :  { %v1647_v36 = vpop.permute.xlu1 %1646 }
 0xb92   :  { %v1566_v26 = vpack.c.bf16 %v1563_v24, %v1561_v23 }
 0xb93   :  { %v6777_v28 = vpop.eup %6776 }
 0xb94   :  { %6298 = vmatprep.mubr.msk.bf16.mxu0 %vm574_vm6, %v1566_v26  ;;  %v1565_v30 = vmul.f32 %v6777_v28, %v6771_v46 }
 0xb96   :  { %v1567_v32 = vpack.c.bf16 %v1565_v30, %v1565_v30 }
 0xb98   :  { %6299 = vmatmul.mubr.msk.bf16.vlgmr.msra.gmra.mxu0 %vm574_vm6, %v1567_v32 }
 0xb99   :  { %6303 = vmatpush3.bf16.xpose.msra.mxu0 %v1662_v34  ;;  %6306 = vmatprep.mubr.msk.bf16.mxu0 %vm510_vm4, %v1645_v33 }
 0xb9a   :  { %6573 = vmatprep.subr.msk.bf16.mxu0 %vm510_vm4, %v1649_v25 }
 0xba1   :  { %6305 = vmatpush3.bf16.xpose.msra.mxu0 %v1659_v35 }
 0xba2   :  { %6324 = vmatprep.subr.bf16.mxu0 %v7431_v61 }
 0xba8   :  { %6307 = vmatmul.mubr.msk.bf16.vlgmr.msra.gmra.mxu0 %vm510_vm4, %v1647_v36 }
 0xba9   :  { %6325 = vmatpush3.bf16.msra.mxu0 %v7431_v61 }
 0xc44   :  { %v6284_v37 = vpop.f32.mrf.mxu0 }
 0xc45   :  { %v1432_v39 = vadd.f32 %v6284_v37, %v1199_v14 }
 0xc46   :  { %v1416_v43 = vpop.f32.mrf.mxu0 }
 0xc47   :  { %v1435_v47 = vadd.f32 %v7536_v45, %v1432_v39  ;;  %v1430_v48 = vadd.f32 %v1416_v43, %v1197_v15 }
 0xc48   :  { %v6285_v49 = vpop.f32.mrf.mxu0 }
 0xc49   :  { %v1445_v61 = vadd.f32 %v7532_v41, %v1435_v47  ;;  %v1433_v53 = vadd.f32 %v6985_v52, %v1430_v48 }
 0xc4a   :  { %v1419_v54 = vpop.f32.mrf.mxu0 }
 0xc4b   :  { %1448 = vst.msk [vmem:[#allocation2 + $0x10] sm:$0x1] %vm248_vm2, %v1445_v61  ;;  %v1443_v57 = vadd.f32 %v7532_v41, %v1433_v53  ;;  %v1431_v58 = vadd.f32 %v1419_v54, %v1198_v20 }
 0xc4d   :  { %1446 = vst.msk [vmem:[#allocation2] sm:$0xff] %vm171_vm1, %v1443_v57  ;;  %v1434_v5 = vadd.f32 %v6986_v10, %v1431_v58 }
 0xc4f   :  { %v1444_v59 = vadd.f32 %v7532_v41, %v1434_v5 }
 0xc51   :  { %1447 = vst.msk [vmem:[#allocation2 + $0x8] sm:$0xff] %vm171_vm1, %v1444_v59 }
 0xc58   :  { %v6300_v60 = vpop.f32.mrf.mxu0 }
 0xc59   :  { %v1643_v12 = vpack.c.bf16 %v6300_v60, %v6300_v60 }
 0xc5a   :  { %v1628_v46 = vpop.f32.mrf.mxu0 }
 0xc5c   :  { %v6301_v3 = vpop.f32.mrf.mxu0 }
 0xc5e   :  { %v1631_v8 = vpop.f32.mrf.mxu0 }
 0xc5f   :  { %v1642_v11 = vpack.c.bf16 %v1631_v8, %v1628_v46 }
 0xc61   :  { %6326 = vmatprep.mubr.msk.bf16.mxu0 %vm510_vm4, %v1642_v11 }
 0xc62   :  { %6327 = vmatmul.mubr.msk.bf16.vlgmr.msra.gmra.mxu0 %vm510_vm4, %v1643_v12 }
 0xc68   :  { %v6308_v14 = vpop.f32.mrf.mxu0 }
 0xc69   :  { %v1714_v51 = vmul.f32 0.25, %v6308_v14 }
 0xc6a   :  { %v1698_v13 = vpop.f32.mrf.mxu0 }
 0xc6b   :  { %v1712_v15 = vmul.f32 0.25, %v1698_v13  ;;  %v1721_v18 = vsel %vm581_vm7, %v1714_v51, -inf }
 0xc6c   :  { %v6309_v16 = vpop.f32.mrf.mxu0 }
 0xc6d   :  { %v1715_v17 = vsel %vm574_vm6, %v1712_v15, -inf }
 0xc6e   :  { %1716 = vmax.xlane.f32.xlu0 %v1715_v17  ;;  %v1701_v63 = vpop.f32.mrf.mxu0 }
 0xc6f   :  { %v1713_v0 = vmul.f32 0.25, %v1701_v63 }
 0xc71   :  { %v1718_v19 = vsel %vm574_vm6, %v1713_v0, -inf }
 0xc72   :  { %1722 = vmax.xlane.f32.xlu0 %v1721_v18  ;;  %1719 = vmax.xlane.f32.xlu1 %v1718_v19 }
 0xcf7   :  { %v1717_v55 = vpop.xlane.xlu0 %1716 }
 0xcf8   :  { %v1724_v21 = vsub.f32 %v1712_v15, %v1717_v55 }
 0xcfa   :  { %v1727_v22 = vmul.f32 1.442695, %v1724_v21 }
 0xcfb   :  { %v1723_v6 = vpop.xlane.xlu0 %1722  ;;  %v1720_v7 = vpop.xlane.xlu1 %1719 }
 0xcfc   :  { %6778 = vpow2.f32 %v1727_v22  ;;  %v1726_v50 = vsub.f32 %v1714_v51, %v1723_v6  ;;  %v1725_v2 = vsub.f32 %v1713_v0, %v1720_v7 }
 0xcfe   :  { %v1731_v23 = vmul.f32 1.442695, %v1726_v50  ;;  %v1729_v24 = vmul.f32 1.442695, %v1725_v2 }
 0xd00   :  { %6780 = vpow2.f32 %v1731_v23 }
 0xd01   :  { %6782 = vpow2.f32 %v1729_v24 }
 0xd09   :  { %v6779_v25 = vpop.eup %6778 }
 0xd0a   :  { %v1733_v26 = vsel %vm574_vm6, %v6779_v25, 0.0 }
 0xd0b   :  { %1734 = vadd.xlane.f32.xlu0 %v1733_v26 }
 0xd0d   :  { %v6781_v28 = vpop.eup %6780 }
 0xd0e   :  { %v6783_v30 = vpop.eup %6782  ;;  %v1739_v32 = vsel %vm581_vm7, %v6781_v28, 0.0 }
 0xd0f   :  { %1740 = vadd.xlane.f32.xlu1 %v1739_v32  ;;  %v1736_v33 = vsel %vm574_vm6, %v6783_v30, 0.0 }
 0xd10   :  { %1737 = vadd.xlane.f32.xlu0 %v1736_v33 }
 0xd20   :  { %1750 = vrot.lane.b32.xlu1 %v7326_v29, %s7018_s5 }
 0xd22   :  { %v7555_v34 = vpop.f32.mrf.mxu0 }
 0xd24   :  { %1928 = vrot.lane.b32.xlu1 %v7438_v62, %s7020_s1  ;;  %v7559_v35 = vpop.f32.mrf.mxu0 }
 0xd26   :  { %1752 = vrot.lane.b32.xlu0 %v7493_v38, %s7018_s5  ;;  %v6329_v36 = vpop.f32.mrf.mxu0 }
 0xd28   :  { %1926 = vrot.lane.b32.xlu1 %v7323_v27, %s7020_s1 }
 0xd2a   :  { %1922 = vrot.lane.b32.xlu0 %v7323_v27, %s8500_s26 }
 0xd2c   :  { %1924 = vrot.lane.b32.xlu1 %v7438_v62, %s8500_s26 }
 0xd2e   :  { %2155 = vrot.lane.b32.xlu0 %v7438_v62, %s8498_s27 }
 0xd30   :  { %2153 = vrot.lane.b32.xlu1 %v7323_v27, %s8498_s27 }
 0xd32   :  { %2149 = vrot.lane.b32.xlu0 %v7323_v27, %s8496_s7 }
 0xd34   :  { %2151 = vrot.lane.b32.xlu1 %v7438_v62, %s8496_s7 }
 0xd94   :  { %v1735_v37 = vpop.xlane.xlu0 %1734 }
 0xd95   :  { %6784 = vrcp.f32 %v1735_v37 }
 0xd98   :  { %v1741_v39 = vpop.xlane.xlu1 %1740 }
 0xd99   :  { %v1738_v43 = vpop.xlane.xlu0 %1737  ;;  %6786 = vrcp.f32 %v1741_v39 }
 0xd9a   :  { %6788 = vrcp.f32 %v1738_v43 }
 0xd9c   :  { %v1751_v48 = vpop.permute.xlu1 %1750 }
 0xd9d   :  { %v1753_v44 = vpop.permute.xlu0 %1752 }
 0xd9e   :  { %v1762_v47 = vand.u32 %v1753_v44, %v7362_v4 }
 0xda0   :  { %6310 = vmatprep.subr.bf16.mxu1 %v1762_v47  ;;  %v1929_v57 = vpop.permute.xlu1 %1928 }
 0xda1   :  { %6311 = vmatpush3.bf16.msra.mxu1 %v1762_v47  ;;  %v1923_v3 = vpop.permute.xlu0 %1922  ;;  %v1940_v8 = vsel %vm510_vm4, %v1929_v57, 0 }
 0xda2   :  { %6312 = vmatprep.subr.bf16.mxu1 %v1751_v48  ;;  %v6785_v49 = vpop.eup %6784 }
 0xda3   :  { %v1743_v61 = vmul.f32 %v6785_v49, %v6779_v25 }
 0xda4   :  { %v1927_v11 = vpop.permute.xlu1 %1926 }
 0xda5   :  { %6313 = vmatpush3.bf16.msra.mxu1 %v1751_v48  ;;  %v2156_v12 = vpop.permute.xlu0 %2155 }
 0xda6   :  { %v6787_v20 = vpop.eup %6786  ;;  %6318 = vmatprep.subr.bf16.mxu1 %v7370_v9  ;;  %v2167_v15 = vsel %vm510_vm4, %v2156_v12, 0 }
 0xda7   :  { %v6789_v27 = vpop.eup %6788  ;;  %v1747_v62 = vmul.f32 %v6787_v20, %v6781_v28 }
 0xda8   :  { %v1745_v52 = vmul.f32 %v6789_v27, %v6783_v30  ;;  %v1925_v14 = vpop.permute.xlu1 %1924 }
 0xda9   :  { %v1749_v53 = vpack.c.bf16 %v1747_v62, %v1747_v62  ;;  %v2150_v13 = vpop.permute.xlu0 %2149 }
 0xdaa   :  { %v1748_v54 = vpack.c.bf16 %v1745_v52, %v1743_v61 }
 0xdac   :  { %6314 = vmatprep.mubr.msk.bf16.mxu1 %vm574_vm6, %v1748_v54  ;;  %v2154_v16 = vpop.permute.xlu1 %2153 }
 0xdad   :  { %6315 = vmatmul.mubr.msk.bf16.vlgmr.msra.gmra.mxu1 %vm574_vm6, %v1749_v53  ;;  %v2164_v51 = vsel %vm510_vm4, %v2154_v16, 0 }
 0xdae   :  { %6319 = vmatpush3.bf16.msra.mxu1 %v7370_v9  ;;  %v1937_v9 = vsel %vm510_vm4, %v1927_v11, 0 }
 0xdaf   :  { %6574 = vmatprep.subr.msk.bf16.mxu1 %vm510_vm4, %v1929_v57 }
 0xdb0   :  { %v2152_v17 = vpop.permute.xlu1 %2151 }
 0xe6d   :  { %v6316_v58 = vpop.f32.mrf.mxu1 }
 0xe6e   :  { %v1813_v46 = vpack.c.bf16 %v6316_v58, %v6316_v58 }
 0xe6f   :  { %v1798_v10 = vpop.f32.mrf.mxu1 }
 0xe71   :  { %v6317_v5 = vpop.f32.mrf.mxu1 }
 0xe73   :  { %v1801_v59 = vpop.f32.mrf.mxu1 }
 0xe74   :  { %v1812_v60 = vpack.c.bf16 %v1801_v59, %v1798_v10 }
 0xe76   :  { %6320 = vmatprep.mubr.msk.bf16.mxu1 %vm510_vm4, %v1812_v60 }
 0xe77   :  { %6321 = vmatmul.mubr.msk.bf16.vlgmr.msra.gmra.mxu1 %vm510_vm4, %v1813_v46 }
 0xe78   :  { %6331 = vmatpush3.bf16.xpose.msra.mxu1 %v1940_v8  ;;  %6334 = vmatprep.mubr.msk.bf16.mxu1 %vm510_vm4, %v1923_v3 }
 0xe79   :  { %6575 = vmatprep.subr.msk.bf16.mxu1 %vm510_vm4, %v1927_v11 }
 0xe80   :  { %6333 = vmatpush3.bf16.xpose.msra.mxu1 %v1937_v9 }
 0xe81   :  { %6576 = vmatprep.subr.msk.bf16.mxu1 %vm510_vm4, %v2156_v12 }
 0xe87   :  { %6335 = vmatmul.mubr.msk.bf16.vlgmr.msra.gmra.mxu1 %vm510_vm4, %v1925_v14 }
 0xe88   :  { %6353 = vmatpush3.bf16.xpose.msra.mxu1 %v2167_v15  ;;  %6356 = vmatprep.mubr.msk.bf16.mxu1 %vm510_vm4, %v2150_v13 }
 0xe89   :  { %6577 = vmatprep.subr.msk.bf16.mxu1 %vm510_vm4, %v2154_v16 }
 0xe90   :  { %6355 = vmatpush3.bf16.xpose.msra.mxu1 %v2164_v51 }
 0xe97   :  { %6357 = vmatmul.mubr.msk.bf16.vlgmr.msra.gmra.mxu1 %vm510_vm4, %v2152_v17 }
 0xe98   :  { %2602 = vmatprep.mubr.bf16.mxu1 %v7016_v56 }
 0xf37   :  { %v7597_v63 = vpop.f32.mrf.mxu1 }
 0xf39   :  { %v7599_v0 = vpop.f32.mrf.mxu1 }
 0xf3b   :  { %v6323_v18 = vpop.f32.mrf.mxu1 }
 0xf3d   :  { %v7601_v19 = vpop.f32.mrf.mxu1 }
 0xf47   :  { %v6336_v55 = vpop.f32.mrf.mxu1 }
 0xf48   :  { %v1992_v7 = vmul.f32 0.25, %v6336_v55 }
 0xf49   :  { %v1976_v21 = vpop.f32.mrf.mxu1 }
 0xf4a   :  { %v1990_v22 = vmul.f32 0.25, %v1976_v21  ;;  %v1999_v24 = vsel %vm581_vm7, %v1992_v7, -inf }
 0xf4b   :  { %v6337_v6 = vpop.f32.mrf.mxu1 }
 0xf4c   :  { %v1993_v50 = vsel %vm574_vm6, %v1990_v22, -inf }
 0xf4d   :  { %1994 = vmax.xlane.f32.xlu0 %v1993_v50  ;;  %v1979_v2 = vpop.f32.mrf.mxu1 }
 0xf4e   :  { %v1991_v23 = vmul.f32 0.25, %v1979_v2 }
 0xf50   :  { %v1996_v25 = vsel %vm574_vm6, %v1991_v23, -inf }
 0xf51   :  { %2000 = vmax.xlane.f32.xlu0 %v1999_v24  ;;  %1997 = vmax.xlane.f32.xlu1 %v1996_v25 }
 0xf57   :  { %v6358_v26 = vpop.f32.mrf.mxu1 }
 0xf58   :  { %v2219_v10 = vmul.f32 0.25, %v6358_v26 }
 0xf59   :  { %v2203_v28 = vpop.f32.mrf.mxu1 }
 0xf5a   :  { %v2217_v54 = vmul.f32 0.25, %v2203_v28  ;;  %v2226_v59 = vsel %vm581_vm7, %v2219_v10, -inf }
 0xf5b   :  { %v6359_v30 = vpop.f32.mrf.mxu1 }
 0xf5c   :  { %v2220_v58 = vsel %vm574_vm6, %v2217_v54, -inf }
 0xf5d   :  { %v2206_v53 = vpop.f32.mrf.mxu1 }
 0xf5e   :  { %v2218_v57 = vmul.f32 0.25, %v2206_v53 }
 0xf60   :  { %v2223_v5 = vsel %vm574_vm6, %v2218_v57, -inf }
 0xfd6   :  { %v1995_v32 = vpop.xlane.xlu0 %1994 }
 0xfd7   :  { %v2002_v33 = vsub.f32 %v1990_v22, %v1995_v32 }
 0xfd9   :  { %v2005_v36 = vmul.f32 1.442695, %v2002_v33  ;;  %v7628_v33 = vld [vmem:[#allocation2 + $0x8] sm:$0xff] }
 0xfda   :  { %v2001_v37 = vpop.xlane.xlu0 %2000  ;;  %v1998_v39 = vpop.xlane.xlu1 %1997 }
 0xfdb   :  { %6790 = vpow2.f32 %v2005_v36  ;;  %v2004_v43 = vsub.f32 %v1992_v7, %v2001_v37  ;;  %v2003_v44 = vsub.f32 %v1991_v23, %v1998_v39  ;;  %v2414_v36 = vsel %vm171_vm1, %v7628_v33, 0.0  ;;  %v7632_v37 = vld [vmem:[#allocation2] sm:$0xff] }
 0xfdc   :  { %v2411_v39 = vsel %vm171_vm1, %v7632_v37, 0.0 }
 0xfdd   :  { %v2009_v47 = vmul.f32 1.442695, %v2004_v43  ;;  %v2007_v48 = vmul.f32 1.442695, %v2003_v44  ;;  %v1911_v43 = vpop.f32.mrf.mxu0 }
 0xfdf   :  { %6792 = vpow2.f32 %v2009_v47 }
 0xfe0   :  { %6794 = vpow2.f32 %v2007_v48 }
 0xfe8   :  { %v6791_v49 = vpop.eup %6790 }
 0xfe9   :  { %v2011_v20 = vsel %vm574_vm6, %v6791_v49, 0.0 }
 0xfea   :  { %2012 = vadd.xlane.f32.xlu0 %v2011_v20 }
 0xfec   :  { %v6793_v27 = vpop.eup %6792 }
 0xfed   :  { %v6795_v62 = vpop.eup %6794  ;;  %v2017_v61 = vsel %vm581_vm7, %v6793_v27, 0.0 }
 0xfee   :  { %2018 = vadd.xlane.f32.xlu1 %v2017_v61  ;;  %v2014_v52 = vsel %vm574_vm6, %v6795_v62, 0.0 }
 0xfef   :  { %2015 = vadd.xlane.f32.xlu0 %v2014_v52 }
 0xfff   :  { %2028 = vrot.lane.b32.xlu1 %v7326_v29, %s8500_s26 }
0x1005   :  { %2030 = vrot.lane.b32.xlu0 %v7493_v38, %s8500_s26  ;;  %s8520_s26 = smov 80  }
0x1023   :  { %2221 = vmax.xlane.f32.xlu1 %v2220_v58 }
0x1024   :  { %2224 = vmax.xlane.f32.xlu0 %v2223_v5 }
0x1028   :  { %2227 = vmax.xlane.f32.xlu0 %v2226_v59 }
0x1073   :  { %v2013_v60 = vpop.xlane.xlu0 %2012 }
0x1074   :  { %6796 = vrcp.f32 %v2013_v60 }
0x1077   :  { %v2019_v46 = vpop.xlane.xlu1 %2018 }
0x1078   :  { %v2016_v3 = vpop.xlane.xlu0 %2015  ;;  %6798 = vrcp.f32 %v2019_v46 }
0x1079   :  { %6800 = vrcp.f32 %v2016_v3  ;;  %v1917_v3 = vadd.f32 %v7555_v34, %v7597_v63 }
0x107b   :  { %v2029_v9 = vpop.permute.xlu1 %2028 }
0x107c   :  { %v2031_v8 = vpop.permute.xlu0 %2030 }
0x107d   :  { %v2040_v11 = vand.u32 %v2031_v8, %v7362_v4 }
0x107f   :  { %6338 = vmatprep.subr.bf16.mxu0 %v2040_v11 }
0x1080   :  { %6339 = vmatpush3.bf16.msra.mxu0 %v2040_v11  ;;  %v1909_v11 = vadd.f32 %v7559_v35, %v7599_v0 }
0x1081   :  { %6340 = vmatprep.subr.bf16.mxu0 %v2029_v9  ;;  %v6797_v12 = vpop.eup %6796 }
0x1082   :  { %v2021_v16 = vmul.f32 %v6797_v12, %v6791_v49 }
0x1084   :  { %6341 = vmatpush3.bf16.msra.mxu0 %v2029_v9 }
0x1085   :  { %v6799_v14 = vpop.eup %6798  ;;  %6346 = vmatprep.subr.bf16.mxu0 %v7463_v40 }
0x1086   :  { %v6801_v13 = vpop.eup %6800  ;;  %v2025_v15 = vmul.f32 %v6799_v14, %v6793_v27 }
0x1087   :  { %v2023_v51 = vmul.f32 %v6801_v13, %v6795_v62 }
0x1088   :  { %v2027_v17 = vpack.c.bf16 %v2025_v15, %v2025_v15  ;;  %v1912_v15 = vadd.f32 %v1911_v43, %v7601_v19 }
0x1089   :  { %v2026_v18 = vpack.c.bf16 %v2023_v51, %v2021_v16 }
0x108b   :  { %6342 = vmatprep.mubr.msk.bf16.mxu0 %vm574_vm6, %v2026_v18 }
0x108c   :  { %6343 = vmatmul.mubr.msk.bf16.vlgmr.msra.gmra.mxu0 %vm574_vm6, %v2027_v17 }
0x108d   :  { %6347 = vmatpush3.bf16.msra.mxu0 %v7463_v40 }
0x10ac   :  { %v2222_v21 = vpop.xlane.xlu1 %2221 }
0x10ad   :  { %v2225_v55 = vpop.xlane.xlu0 %2224  ;;  %v2229_v7 = vsub.f32 %v2217_v54, %v2222_v21 }
0x10ae   :  { %v2230_v22 = vsub.f32 %v2218_v57, %v2225_v55 }
0x10af   :  { %v2232_v23 = vmul.f32 1.442695, %v2229_v7 }
0x10b0   :  { %v2234_v6 = vmul.f32 1.442695, %v2230_v22 }
0x10b1   :  { %v2228_v50 = vpop.xlane.xlu0 %2227 }
0x10b2   :  { %6802 = vpow2.f32 %v2234_v6  ;;  %v2231_v2 = vsub.f32 %v2219_v10, %v2228_v50 }
0x10b4   :  { %v2236_v24 = vmul.f32 1.442695, %v2231_v2 }
0x10b6   :  { %6804 = vpow2.f32 %v2236_v24 }
0x10b7   :  { %6806 = vpow2.f32 %v2232_v23 }
0x10bf   :  { %v6803_v25 = vpop.eup %6802 }
0x10c0   :  { %v2241_v26 = vsel %vm574_vm6, %v6803_v25, 0.0 }
0x10c1   :  { %2242 = vadd.xlane.f32.xlu0 %v2241_v26 }
0x10c3   :  { %v6805_v28 = vpop.eup %6804 }
0x10c4   :  { %v2244_v30 = vsel %vm581_vm7, %v6805_v28, 0.0  ;;  %v6807_v40 = vpop.eup %6806 }
0x10c5   :  { %2245 = vadd.xlane.f32.xlu1 %v2244_v30  ;;  %v2238_v32 = vsel %vm574_vm6, %v6807_v40, 0.0 }
0x10c9   :  { %2239 = vadd.xlane.f32.xlu1 %v2238_v32  ;;  %v6987_v32 = vld [vmem:[#allocation2 + $0x18] sm:$0xff] }
0x10d7   :  { %2257 = vrot.lane.b32.xlu0 %v7493_v38, %s8496_s7 }
0x10da   :  { %2255 = vrot.lane.b32.xlu1 %v7326_v29, %s8496_s7 }
0x10f6   :  { %2415 = vadd.xlane.f32.xlu0 %v2414_v36 }
0x10fe   :  { %2412 = vadd.xlane.f32.xlu1 %v2411_v39  ;;  %v6988_v39 = vld [vmem:[#allocation2 + $0x20] sm:$0x3] }
0x114a   :  { %v2243_v44 = vpop.xlane.xlu0 %2242 }
0x114c   :  { %v6344_v47 = vpop.f32.mrf.mxu0 }
0x114d   :  { %v2091_v52 = vpack.c.bf16 %v6344_v47, %v6344_v47 }
0x114e   :  { %v2258_v48 = vpop.permute.xlu0 %2257  ;;  %v2076_v38 = vpop.f32.mrf.mxu0 }
0x114f   :  { %v2267_v49 = vand.u32 %v2258_v48, %v7362_v4  ;;  %v2246_v29 = vpop.xlane.xlu1 %2245 }
0x1150   :  { %v6345_v20 = vpop.f32.mrf.mxu0  ;;  %6808 = vrcp.f32 %v2246_v29 }
0x1151   :  { %6360 = vmatprep.subr.bf16.mxu0 %v2267_v49  ;;  %6810 = vrcp.f32 %v2243_v44 }
0x1152   :  { %v2079_v27 = vpop.f32.mrf.mxu0 }
0x1153   :  { %v2090_v62 = vpack.c.bf16 %v2079_v27, %v2076_v38  ;;  %v2240_v61 = vpop.xlane.xlu1 %2239 }
0x1154   :  { %6812 = vrcp.f32 %v2240_v61 }
0x1155   :  { %6348 = vmatprep.mubr.msk.bf16.mxu0 %vm510_vm4, %v2090_v62 }
0x1156   :  { %6349 = vmatmul.mubr.msk.bf16.vlgmr.msra.gmra.mxu0 %vm510_vm4, %v2091_v52 }
0x1157   :  { %6361 = vmatpush3.bf16.msra.mxu0 %v2267_v49  ;;  %v2256_v53 = vpop.permute.xlu1 %2255 }
0x1158   :  { %6362 = vmatprep.subr.bf16.mxu0 %v2256_v53 }
0x115b   :  { %6363 = vmatpush3.bf16.msra.mxu0 %v2256_v53 }
0x115c   :  { %6368 = vmatprep.subr.bf16.mxu0 %v7489_v31 }
0x115d   :  { %v6809_v54 = vpop.eup %6808 }
0x115e   :  { %v6811_v57 = vpop.eup %6810  ;;  %v2252_v10 = vmul.f32 %v6809_v54, %v6805_v28  ;;  %v6626_v54 = vld [vmem:[%s8482_s15 + $0x34] ss:$8 sps:$4 sm:$0xff]  }
0x115f   :  { %v2250_v59 = vmul.f32 %v6811_v57, %v6803_v25  ;;  %v6624_v57 = vld [vmem:[%s8482_s15 + $0x30] ss:$8 sps:$4 sm:$0xff]   ;;  %2578 = vmatprep.subr.bf16.mxu1 %v6626_v54 }
0x1160   :  { %v2254_v46 = vpack.c.bf16 %v2252_v10, %v2252_v10  ;;  %2579 = vmatpush1.bf16.msra.mxu1 %v6624_v57  ;;  %v6627_v10 = vld [vmem:[%s8482_s15 + $0x20] ss:$8 sps:$4 sm:$0xff]  }
0x1161   :  { %v6813_v58 = vpop.eup %6812 }
0x1162   :  { %v2248_v5 = vmul.f32 %v6813_v58, %v6807_v40  ;;  %v6629_v58 = vld [vmem:[%s8482_s15 + $0x24] ss:$8 sps:$4 sm:$0xff]  }
0x1163   :  { %2580 = vmatprep.subr.bf16.mxu1 %v6629_v58 }
0x1164   :  { %v2253_v60 = vpack.c.bf16 %v2250_v59, %v2248_v5  ;;  %2581 = vmatpush1.bf16.msra.mxu1 %v6627_v10  ;;  %v6632_v5 = vld [vmem:[%s8482_s15 + $0x14] ss:$8 sps:$4 sm:$0xff]   ;;  %v6630_v59 = vld [vmem:[%s8482_s15 + $0x10] ss:$8 sps:$4 sm:$0xff]  }
0x1165   :  { %2582 = vmatprep.subr.bf16.mxu1 %v6632_v5 }
0x1166   :  { %6364 = vmatprep.mubr.msk.bf16.mxu0 %vm574_vm6, %v2253_v60  ;;  %v6635_v60 = vld [vmem:[%s8482_s15 + $0x4] ss:$8 sps:$4 sm:$0xff]  }
0x1167   :  { %6365 = vmatmul.mubr.msk.bf16.vlgmr.msra.gmra.mxu0 %vm574_vm6, %v2254_v46  ;;  %v6633_v46 = vld [vmem:[%s8482_s15] ss:$8 sps:$4 sm:$0xff]  }
0x1168   :  { %6369 = vmatpush3.bf16.msra.mxu0 %v7489_v31  ;;  %2583 = vmatpush1.bf16.msra.mxu1 %v6630_v59 }
0x1169   :  { %2584 = vmatprep.subr.bf16.mxu1 %v6635_v60 }
0x116c   :  { %2585 = vmatpush1.bf16.msra.mxu1 %v6633_v46 }
0x117f   :  { %v2416_v44 = vpop.xlane.xlu0 %2415 }
0x1180   :  { %v2427_v38 = vmul.f32 0.015625, %v2416_v44  ;;  %v6643_v44 = vld [vmem:[%s8484_s17 + $0x20] sm:$0xff]  }
0x1182   :  { %v2432_v27 = vsub.f32 %v7628_v33, %v2427_v38  ;;  %v6647_v38 = vld [vmem:[%s8484_s17 + $0x10] sm:$0xff]  }
0x1184   :  { %v2437_v52 = vmul.f32 %v2432_v27, %v2432_v27 }
0x1186   :  { %v2444_v53 = vsel %vm171_vm1, %v2437_v52, 0.0 }
0x1187   :  { %v2413_v23 = vpop.xlane.xlu1 %2412 }
0x1188   :  { %v2426_v28 = vmul.f32 0.015625, %v2413_v23 }
0x118a   :  { %v2431_v48 = vsub.f32 %v7632_v37, %v2426_v28  ;;  %v6636_v28 = vld [vmem:[%s8484_s17 + $0x78] sm:$0xff]  }
0x118b   :  { %6027 = vmatprep.subr.bf16.mxu0 %v6636_v28 }
0x118c   :  { %v2436_v20 = vmul.f32 %v2431_v48, %v2431_v48 }
0x118e   :  { %v2441_v62 = vsel %vm171_vm1, %v2436_v20, 0.0  ;;  %v6649_v20 = vld [vmem:[%s8484_s17 + $0x8] sm:$0xff]  }
0x1216   :  { %v6350_v8 = vpop.f32.mrf.mxu0 }
0x1217   :  { %v2148_v9 = vadd.f32 %v6350_v8, %v1917_v3 }
0x1218   :  { %v2132_v12 = vpop.f32.mrf.mxu0 }
0x1219   :  { %v2146_v14 = vadd.f32 %v2132_v12, %v1909_v11 }
0x121a   :  { %v6351_v13 = vpop.f32.mrf.mxu0 }
0x121c   :  { %v2135_v16 = vpop.f32.mrf.mxu0 }
0x121d   :  { %v2147_v51 = vadd.f32 %v2135_v16, %v1912_v15 }
0x1227   :  { %v6366_v17 = vpop.f32.mrf.mxu0 }
0x1228   :  { %v2318_v22 = vpack.c.bf16 %v6366_v17, %v6366_v17 }
0x1229   :  { %v2303_v18 = vpop.f32.mrf.mxu0 }
0x122b   :  { %v6367_v55 = vpop.f32.mrf.mxu0 }
0x122d   :  { %v2306_v21 = vpop.f32.mrf.mxu0 }
0x122e   :  { %v2317_v31 = vpack.c.bf16 %v2306_v21, %v2303_v18 }
0x1230   :  { %6370 = vmatprep.mubr.msk.bf16.mxu0 %vm510_vm4, %v2317_v31 }
0x1231   :  { %6371 = vmatmul.mubr.msk.bf16.vlgmr.msra.gmra.mxu0 %vm510_vm4, %v2318_v22 }
0x12f1   :  { %v6372_v34 = vpop.f32.mrf.mxu0 }
0x12f2   :  { %v2375_v6 = vadd.f32 %v6372_v34, %v2148_v9 }
0x12f3   :  { %v2359_v35 = vpop.f32.mrf.mxu0 }
0x12f4   :  { %v2373_v63 = vadd.f32 %v2359_v35, %v2146_v14  ;;  %v2382_v24 = vrot.slane %v2375_v6, 7  ;;  %v7714_v6 = vld [vmem:[%s8480_s13] ss:$0 sm:$0xff] }
0x12f5   :  { %v6373_v0 = vpop.f32.mrf.mxu0 }
0x12f6   :  { %v2379_v7 = vrot.slane %v2373_v63, 7 }
0x12f7   :  { %v2362_v50 = vpop.f32.mrf.mxu0 }
0x12f8   :  { %v2387_v19 = vadd.f32 %v7536_v45, %v2379_v7  ;;  %v2374_v2 = vadd.f32 %v2362_v50, %v2147_v51 }
0x12fa   :  { %v2397_v25 = vadd.f32 %v7532_v41, %v2387_v19  ;;  %v2380_v26 = vrot.slane %v2374_v2, 7  ;;  %v7720_v2 = vld [vmem:[%s8481_s14] ss:$0 sm:$0xff] }
0x12fc   :  { %2401 = vst.msk [vmem:[#allocation2 + $0x10] sm:$0xfe] %vm2400_vm9, %v2397_v25  ;;  %v2381_v30 = vsel %vm619_vm8, %v2379_v7, %v2380_v26  ;;  %v2383_v40 = vsel %vm619_vm8, %v2380_v26, %v2382_v24 }
0x12fd   :  { %v2388_v36 = vadd.f32 %v6987_v32, %v2381_v30  ;;  %v2389_v43 = vadd.f32 %v6988_v39, %v2383_v40  ;;  %v6637_v30 = vld [vmem:[%s8484_s17 + $0x38] sm:$0xff]   ;;  %v6638_v40 = vld [vmem:[%s8484_s17 + $0x70] sm:$0xff]   ;;  %v6641_v39 = vld [vmem:[%s8484_s17 + $0x28] sm:$0xff]  }
0x12fe   :  { %6028 = vmatpush3.bf16.msra.mxu0 %v6637_v30  ;;  %v6639_v32 = vld [vmem:[%s8484_s17 + $0x30] sm:$0xff]  }
0x12ff   :  { %v2398_v45 = vadd.f32 %v7532_v41, %v2388_v36  ;;  %v2399_v47 = vadd.f32 %v7532_v41, %v2389_v43  ;;  %6029 = vmatprep.subr.bf16.mxu0 %v6638_v40  ;;  %v6640_v36 = vld [vmem:[%s8484_s17 + $0x68] sm:$0xff]   ;;  %v6642_v43 = vld [vmem:[%s8484_s17 + $0x60] sm:$0xff]  }
0x1301   :  { %2402 = vst.msk [vmem:[#allocation2 + $0x18] sm:$0xff] %vm171_vm1, %v2398_v45  ;;  %v6644_v45 = vld [vmem:[%s8484_s17 + $0x58] sm:$0xff]  }
0x1302   :  { %2403 = vst.msk [vmem:[#allocation2 + $0x20] sm:$0x3] %vm285_vm3, %v2399_v47  ;;  %6030 = vmatpush3.bf16.msra.mxu0 %v6639_v32  ;;  %v6645_v47 = vld [vmem:[%s8484_s17 + $0x18] sm:$0xff]  }
0x1303   :  { %v7660_v49 = vld [vmem:[#allocation2 + $0x10] sm:$0xff]  ;;  %6031 = vmatprep.subr.bf16.mxu0 %v6640_v36 }
0x1304   :  { %v2417_v29 = vsel %vm171_vm1, %v7660_v49, 0.0 }
0x1305   :  { %2418 = vadd.xlane.f32.xlu0 %v2417_v29  ;;  %v6648_v29 = vld [vmem:[%s8484_s17 + $0x48] sm:$0xff]  }
0x1306   :  { %6032 = vmatpush3.bf16.msra.mxu0 %v6641_v39 }
0x1307   :  { %6033 = vmatprep.subr.bf16.mxu0 %v6642_v43 }
0x1308   :  { %v7666_v61 = vld [vmem:[#allocation2 + $0x18] sm:$0xff] }
0x1309   :  { %2442 = vadd.xlane.f32.xlu0 %v2441_v62  ;;  %v2420_v41 = vsel %vm171_vm1, %v7666_v61, 0.0  ;;  %v7704_v18 = vld [vmem:[#allocation2 + $0x20] sm:$0x3] }
0x130a   :  { %2421 = vadd.xlane.f32.xlu1 %v2420_v41  ;;  %v2423_v22 = vsel %vm285_vm3, %v7704_v18, 0.0  ;;  %6034 = vmatpush3.bf16.msra.mxu0 %v6643_v44  ;;  %v6651_v62 = vld [vmem:[%s8484_s17] sm:$0xff]  }
0x130b   :  { %6035 = vmatprep.subr.bf16.mxu0 %v6644_v45 }
0x130e   :  { %2445 = vadd.xlane.f32.xlu1 %v2444_v53  ;;  %6036 = vmatpush3.bf16.msra.mxu0 %v6645_v47 }
0x138e   :  { %v2419_v3 = vpop.xlane.xlu0 %2418 }
0x138f   :  { %v2428_v8 = vmul.f32 0.015625, %v2419_v3 }
0x1391   :  { %v7696_v11 = vsub.f32 %v7660_v49, %v2428_v8 }
0x1392   :  { %v2443_v9 = vpop.xlane.xlu0 %2442 }
0x1393   :  { %v2456_v12 = vmul.f32 0.015625, %v2443_v9  ;;  %v2422_v14 = vpop.xlane.xlu1 %2421  ;;  %v2438_v13 = vmul.f32 %v7696_v11, %v7696_v11 }
0x1394   :  { %v2429_v15 = vmul.f32 0.015625, %v2422_v14 }
0x1395   :  { %v2461_v16 = vadd.f32 1e-05, %v2456_v12  ;;  %v2447_v51 = vsel %vm171_vm1, %v2438_v13, 0.0 }
0x1396   :  { %v7702_v17 = vsub.f32 %v7666_v61, %v2429_v15  ;;  %2448 = vadd.xlane.f32.xlu0 %v2447_v51 }
0x1397   :  { %6814 = vrsqrt.f32 %v2461_v16  ;;  %v2446_v55 = vpop.xlane.xlu1 %2445 }
0x1398   :  { %v2457_v21 = vmul.f32 0.015625, %v2446_v55  ;;  %v2439_v31 = vmul.f32 %v7702_v17, %v7702_v17 }
0x139a   :  { %v2462_v34 = vadd.f32 1e-05, %v2457_v21  ;;  %2424 = vadd.xlane.f32.xlu0 %v2423_v22  ;;  %v2450_v35 = vsel %vm171_vm1, %v2439_v31, 0.0 }
0x139b   :  { %2451 = vadd.xlane.f32.xlu1 %v2450_v35 }
0x139c   :  { %6816 = vrsqrt.f32 %v2462_v34 }
0x13a4   :  { %v6815_v63 = vpop.eup %6814 }
0x13a5   :  { %v2471_v0 = vmul.f32 %v6815_v63, %v2431_v48  ;;  %v6646_v48 = vld [vmem:[%s8484_s17 + $0x50] sm:$0xff]  }
0x13a6   :  { %6037 = vmatprep.subr.bf16.mxu0 %v6646_v48 }
0x13a7   :  { %v2482_v19 = vmul.f32 %v7714_v6, %v2471_v0  ;;  %6038 = vmatpush3.bf16.msra.mxu0 %v6647_v38 }
0x13a8   :  { %6039 = vmatprep.subr.bf16.mxu0 %v6648_v29 }
0x13a9   :  { %v6817_v7 = vpop.eup %6816  ;;  %v2493_v24 = vadd.f32 %v7720_v2, %v2482_v19 }
0x13aa   :  { %v2472_v50 = vmul.f32 %v6817_v7, %v2432_v27  ;;  %v6650_v27 = vld [vmem:[%s8484_s17 + $0x40] sm:$0xff]  }
0x13ab   :  { %6040 = vmatpush3.bf16.msra.mxu0 %v6649_v20 }
0x13ac   :  { %v2483_v23 = vmul.f32 %v7714_v6, %v2472_v50  ;;  %6041 = vmatprep.subr.bf16.mxu0 %v6650_v27 }
0x13ae   :  { %v2494_v25 = vadd.f32 %v7720_v2, %v2483_v23 }
0x13af   :  { %6042 = vmatpush3.bf16.msra.mxu0 %v6651_v62 }
0x13b0   :  { %v2498_v26 = vpack.c.bf16 %v2494_v25, %v2493_v24 }
0x13b2   :  { %5744 = vmatmul.mubr.msk.bf16.vlgmr.msra.gmra.mxu1 %vm171_vm1, %v2498_v26 }
0x13b3   :  { %2612 = vmatprep.mubr.bf16.mxu1 %v7016_v56 }
0x141f   :  { %v2449_v41 = vpop.xlane.xlu0 %2448 }
0x1420   :  { %v2458_v52 = vmul.f32 0.015625, %v2449_v41 }
0x1422   :  { %v2463_v53 = vadd.f32 1e-05, %v2458_v52 }
0x1424   :  { %6818 = vrsqrt.f32 %v2463_v53  ;;  %v2452_v54 = vpop.xlane.xlu1 %2451 }
0x1425   :  { %v2459_v57 = vmul.f32 0.015625, %v2452_v54 }
0x1427   :  { %v2464_v58 = vadd.f32 1e-05, %v2459_v57 }
0x1429   :  { %6820 = vrsqrt.f32 %v2464_v58 }
0x1431   :  { %v6819_v10 = vpop.eup %6818 }
0x1432   :  { %v2473_v5 = vmul.f32 %v6819_v10, %v7696_v11  ;;  %v2509_v11 = vld [vmem:[%s8483_s16] sm:$0x3] }
0x1433   :  { %v7787_v14 = vrot.slane %v2509_v11, %v7275_v42  ;;  %v7790_v13 = vrot.slane %v2509_v11, %v7304_v1 }
0x1434   :  { %v2484_v46 = vmul.f32 %v7714_v6, %v2473_v5 }
0x1436   :  { %v6821_v59 = vpop.eup %6820  ;;  %v2495_v8 = vadd.f32 %v7720_v2, %v2484_v46 }
0x1437   :  { %v2474_v60 = vmul.f32 %v6821_v59, %v7702_v17 }
0x1439   :  { %v2485_v3 = vmul.f32 %v7714_v6, %v2474_v60 }
0x143b   :  { %v2496_v9 = vadd.f32 %v7720_v2, %v2485_v3 }
0x143d   :  { %v2499_v12 = vpack.c.bf16 %v2496_v9, %v2495_v8 }
0x143f   :  { %5745 = vmatmul.mubr.msk.bf16.gmra.mxu1 %vm171_vm1, %v2499_v12 }
0x1440   :  { %2622 = vmatprep.mubr.bf16.mxu1 %v7016_v56 }
0x1472   :  { %v2604_v15 = vpop.f32.mrf.mxu1 }
0x1473   :  { %v2605_v16 = vadd.f32 %v2604_v15, %v7787_v14 }
0x1474   :  { %v2606_v51 = vpop.f32.mrf.mxu1 }
0x1475   :  { %v2607_v17 = vadd.f32 %v2606_v51, %v7790_v13  ;;  %v2641_v55 = vmul.f32 0.70710677, %v2605_v16  ;;  %v2631_v36 = vmul.f32 0.5, %v2605_v16 }
0x1476   :  { %v2608_v21 = vpop.f32.mrf.mxu1 }
0x1477   :  { %v2642_v31 = vmul.f32 0.70710677, %v2607_v17  ;;  %v2609_v22 = vadd.f32 %v2608_v21, %v7787_v14  ;;  %v2632_v30 = vmul.f32 0.5, %v2607_v17 }
0x1478   :  { %v2610_v34 = vpop.f32.mrf.mxu1 }
0x1479   :  { %6822 = verf.f32 %v2642_v31  ;;  %v2643_v35 = vmul.f32 0.70710677, %v2609_v22  ;;  %v2611_v63 = vadd.f32 %v2610_v34, %v7790_v13  ;;  %v2633_v28 = vmul.f32 0.5, %v2609_v22 }
0x147a   :  { %6824 = verf.f32 %v2641_v55 }
0x147b   :  { %6826 = verf.f32 %v2643_v35  ;;  %v2644_v0 = vmul.f32 0.70710677, %v2611_v63  ;;  %v2634_v40 = vmul.f32 0.5, %v2611_v63  ;;  %v7803_v63 = vld [vmem:[%s8485_s18] ss:$0 sm:$0xff] }
0x147d   :  { %6828 = verf.f32 %v2644_v0 }
0x1486   :  { %v6823_v7 = vpop.eup %6822 }
0x1487   :  { %v6825_v50 = vpop.eup %6824  ;;  %v2662_v23 = vadd.f32 1.0, %v6823_v7 }
0x1488   :  { %v6827_v19 = vpop.eup %6826  ;;  %v2661_v26 = vadd.f32 1.0, %v6825_v50 }
0x1489   :  { %v2663_v24 = vadd.f32 1.0, %v6827_v19  ;;  %v2672_v43 = vmul.f32 %v2662_v23, %v2632_v30 }
0x148a   :  { %v6829_v25 = vpop.eup %6828  ;;  %v2671_v45 = vmul.f32 %v2661_v26, %v2631_v36 }
0x148b   :  { %v2664_v32 = vadd.f32 1.0, %v6829_v25  ;;  %v2673_v39 = vmul.f32 %v2663_v24, %v2633_v28 }
0x148d   :  { %v2674_v44 = vmul.f32 %v2664_v32, %v2634_v40  ;;  %v2681_v48 = vpack.c.bf16 %v2673_v39, %v2671_v45 }
0x148f   :  { %v2682_v47 = vpack.c.bf16 %v2674_v44, %v2672_v43 }
0x1491   :  { %2854 = vmatprep.mubr.bf16.mxu0 %v2682_v47  ;;  %v2425_v47 = vpop.xlane.xlu0 %2424 }
0x1492   :  { %2855 = vmatmul.mubr.bf16.vlgmr.msra.gmra.mxu0 %v2681_v48 }
0x14ff   :  { %v2614_v38 = vpop.f32.mrf.mxu1 }
0x1500   :  { %v2615_v29 = vadd.f32 %v2614_v38, %v7787_v14 }
0x1501   :  { %v2616_v20 = vpop.f32.mrf.mxu1 }
0x1502   :  { %v2617_v27 = vadd.f32 %v2616_v20, %v7790_v13  ;;  %v2645_v62 = vmul.f32 0.70710677, %v2615_v29  ;;  %v2635_v51 = vmul.f32 0.5, %v2615_v29  ;;  %v2430_v29 = vmul.f32 0.015625, %v2425_v47 }
0x1503   :  { %v2618_v41 = vpop.f32.mrf.mxu1 }
0x1504   :  { %v2646_v52 = vmul.f32 0.70710677, %v2617_v27  ;;  %v2619_v53 = vadd.f32 %v2618_v41, %v7787_v14  ;;  %v2636_v11 = vmul.f32 0.5, %v2617_v27 }
0x1505   :  { %v2620_v54 = vpop.f32.mrf.mxu1 }
0x1506   :  { %6830 = verf.f32 %v2646_v52  ;;  %v2647_v57 = vmul.f32 0.70710677, %v2619_v53  ;;  %v2621_v58 = vadd.f32 %v2620_v54, %v7790_v13  ;;  %v2637_v12 = vmul.f32 0.5, %v2619_v53 }
0x1507   :  { %6832 = verf.f32 %v2645_v62  ;;  %v7819_v62 = vsub.f32 %v7704_v18, %v2430_v29 }
0x1508   :  { %6834 = verf.f32 %v2647_v57  ;;  %v2648_v10 = vmul.f32 0.70710677, %v2621_v58  ;;  %v2638_v15 = vmul.f32 0.5, %v2621_v58 }
0x1509   :  { %v2440_v57 = vmul.f32 %v7819_v62, %v7819_v62 }
0x150a   :  { %6836 = verf.f32 %v2648_v10 }
0x1513   :  { %v6831_v5 = vpop.eup %6830 }
0x1514   :  { %v6833_v59 = vpop.eup %6832  ;;  %v2666_v46 = vadd.f32 1.0, %v6831_v5 }
0x1515   :  { %v6835_v60 = vpop.eup %6834  ;;  %v2665_v9 = vadd.f32 1.0, %v6833_v59 }
0x1516   :  { %v2667_v3 = vadd.f32 1.0, %v6835_v60  ;;  %v2676_v55 = vmul.f32 %v2666_v46, %v2636_v11  ;;  %v2453_v60 = vsel %vm285_vm3, %v2440_v57, 0.0  ;;  %v6652_v11 = vld [vmem:[%s8476_s9 + $0x70] ss:$8 sps:$4 sm:$0xff]  }
0x1517   :  { %v6837_v8 = vpop.eup %6836  ;;  %v2675_v31 = vmul.f32 %v2665_v9, %v2635_v51  ;;  %v6660_v51 = vld [vmem:[%s8476_s9 + $0x54] ss:$8 sps:$4 sm:$0xff]  }
0x1518   :  { %v2668_v16 = vadd.f32 1.0, %v6837_v8  ;;  %v2677_v17 = vmul.f32 %v2667_v3, %v2637_v12  ;;  %v6654_v12 = vld [vmem:[%s8476_s9 + $0x74] ss:$8 sps:$4 sm:$0xff]  }
0x1519   :  { %3066 = vmatprep.subr.bf16.mxu1 %v6654_v12 }
0x151a   :  { %v2678_v21 = vmul.f32 %v2668_v16, %v2638_v15  ;;  %v2683_v34 = vpack.c.bf16 %v2677_v17, %v2675_v31  ;;  %3067 = vmatpush1.bf16.msra.mxu1 %v6652_v11  ;;  %v6657_v15 = vld [vmem:[%s8476_s9 + $0x64] ss:$8 sps:$4 sm:$0xff]   ;;  %v6655_v16 = vld [vmem:[%s8476_s9 + $0x60] ss:$8 sps:$4 sm:$0xff]   ;;  %v6658_v17 = vld [vmem:[%s8476_s9 + $0x50] ss:$8 sps:$4 sm:$0xff]  }
0x151b   :  { %3068 = vmatprep.subr.bf16.mxu1 %v6657_v15 }
0x151c   :  { %v2684_v22 = vpack.c.bf16 %v2678_v21, %v2676_v55  ;;  %v6663_v55 = vld [vmem:[%s8476_s9 + $0x44] ss:$8 sps:$4 sm:$0xff]   ;;  %v6661_v21 = vld [vmem:[%s8476_s9 + $0x40] ss:$8 sps:$4 sm:$0xff]  }
0x151e   :  { %2862 = vmatprep.mubr.bf16.mxu0 %v2684_v22  ;;  %3069 = vmatpush1.bf16.msra.mxu1 %v6655_v16 }
0x151f   :  { %2863 = vmatmul.mubr.bf16.gmra.mxu0 %v2683_v34  ;;  %3070 = vmatprep.subr.bf16.mxu1 %v6660_v51 }
0x1522   :  { %3071 = vmatpush1.bf16.msra.mxu1 %v6658_v17 }
0x1523   :  { %3072 = vmatprep.subr.bf16.mxu1 %v6663_v55 }
0x1526   :  { %3073 = vmatpush1.bf16.msra.mxu1 %v6661_v21 }
0x1552   :  { %v6043_v35 = vpop.f32.mrf.mxu0 }
0x1554   :  { %v6044_v0 = vpop.f32.mrf.mxu0 }
0x1555   :  { %v6045_v7 = vadd.f32 %v6044_v0, %v6043_v35 }
0x1556   :  { %v6046_v50 = vpop.f32.mrf.mxu0 }
0x1557   :  { %v2857_v19 = vadd.f32 %v6045_v7, %v7803_v63 }
0x1558   :  { %v6047_v23 = vpop.f32.mrf.mxu0 }
0x1559   :  { %v2878_v24 = vadd.f32 %v2857_v19, %v7632_v37  ;;  %v6048_v25 = vadd.f32 %v6047_v23, %v6046_v50 }
0x155b   :  { %2883 = vst.msk [vmem:[#allocation2] sm:$0xff] %vm171_vm1, %v2878_v24  ;;  %v2860_v26 = vadd.f32 %v6048_v25, %v7803_v63 }
0x155d   :  { %v2879_v28 = vadd.f32 %v2860_v26, %v7628_v33 }
0x155f   :  { %2884 = vst.msk [vmem:[#allocation2 + $0x8] sm:$0xff] %vm171_vm1, %v2879_v28 }
0x1562   :  { %v2888_v30 = vld [vmem:[#allocation2] sm:$0xff] }
0x1563   :  { %v2897_v40 = vsel %vm171_vm1, %v2888_v30, 0.0 }
0x1564   :  { %2898 = vadd.xlane.f32.xlu1 %v2897_v40 }
0x1566   :  { %v2889_v32 = vld [vmem:[#allocation2 + $0x8] sm:$0xff] }
0x1567   :  { %v2900_v36 = vsel %vm171_vm1, %v2889_v32, 0.0 }
0x1568   :  { %2901 = vadd.xlane.f32.xlu0 %v2900_v36 }
0x15df   :  { %v6049_v39 = vpop.f32.mrf.mxu0 }
0x15e1   :  { %v6050_v43 = vpop.f32.mrf.mxu0 }
0x15e2   :  { %v6051_v37 = vadd.f32 %v6050_v43, %v6049_v39 }
0x15e3   :  { %v6052_v44 = vpop.f32.mrf.mxu0 }
0x15e4   :  { %v2865_v45 = vadd.f32 %v6051_v37, %v7803_v63 }
0x15e5   :  { %v6053_v48 = vpop.f32.mrf.mxu0 }
0x15e6   :  { %v2880_v33 = vadd.f32 %v2865_v45, %v7660_v49  ;;  %v6054_v38 = vadd.f32 %v6053_v48, %v6052_v44  ;;  %v7864_v48 = vld [vmem:[%s8517_s29 + $0x1] ss:$0 sm:$0xff] }
0x15e8   :  { %2885 = vst.msk [vmem:[#allocation2 + $0x10] sm:$0xff] %vm171_vm1, %v2880_v33  ;;  %v2868_v20 = vadd.f32 %v6054_v38, %v7803_v63 }
0x15ea   :  { %v2881_v27 = vadd.f32 %v2868_v20, %v7666_v61 }
0x15ec   :  { %2886 = vst.msk [vmem:[#allocation2 + $0x18] sm:$0xff] %vm171_vm1, %v2881_v27 }
0x15ed   :  { %v2899_v41 = vpop.xlane.xlu1 %2898 }
0x15ee   :  { %v2912_v52 = vmul.f32 0.015625, %v2899_v41 }
0x15ef   :  { %v2890_v53 = vld [vmem:[#allocation2 + $0x10] sm:$0xff] }
0x15f0   :  { %v7822_v54 = vsub.f32 %v2888_v30, %v2912_v52  ;;  %v2903_v49 = vsel %vm171_vm1, %v2890_v53, 0.0 }
0x15f1   :  { %v2902_v58 = vpop.xlane.xlu0 %2901  ;;  %2904 = vadd.xlane.f32.xlu1 %v2903_v49 }
0x15f2   :  { %v2913_v10 = vmul.f32 0.015625, %v2902_v58  ;;  %v2922_v46 = vmul.f32 %v7822_v54, %v7822_v54 }
0x15f3   :  { %v2891_v5 = vld [vmem:[#allocation2 + $0x18] sm:$0xff] }
0x15f4   :  { %v2918_v61 = vsub.f32 %v2889_v32, %v2913_v10  ;;  %v2906_v59 = vsel %vm171_vm1, %v2891_v5, 0.0  ;;  %v2927_v9 = vsel %vm171_vm1, %v2922_v46, 0.0 }
0x15f5   :  { %2907 = vadd.xlane.f32.xlu0 %v2906_v59  ;;  %2454 = vadd.xlane.f32.xlu1 %v2453_v60 }
0x15f6   :  { %v2923_v3 = vmul.f32 %v2918_v61, %v2918_v61 }
0x15f8   :  { %v2930_v8 = vsel %vm171_vm1, %v2923_v3, 0.0 }
0x15f9   :  { %2931 = vadd.xlane.f32.xlu1 %v2930_v8  ;;  %2928 = vadd.xlane.f32.xlu0 %v2927_v9 }
0x167a   :  { %v2905_v31 = vpop.xlane.xlu1 %2904 }
0x167b   :  { %v2914_v22 = vmul.f32 0.015625, %v2905_v31 }
0x167d   :  { %v2919_v34 = vsub.f32 %v2890_v53, %v2914_v22 }
0x167e   :  { %v2908_v35 = vpop.xlane.xlu0 %2907  ;;  %v2455_v0 = vpop.xlane.xlu1 %2454 }
0x167f   :  { %v2915_v7 = vmul.f32 0.015625, %v2908_v35  ;;  %v2460_v50 = vmul.f32 0.015625, %v2455_v0  ;;  %v2924_v19 = vmul.f32 %v2919_v34, %v2919_v34 }
0x1681   :  { %v2920_v23 = vsub.f32 %v2891_v5, %v2915_v7  ;;  %v2465_v24 = vadd.f32 1e-05, %v2460_v50  ;;  %v2933_v25 = vsel %vm171_vm1, %v2924_v19, 0.0 }
0x1682   :  { %v2929_v26 = vpop.xlane.xlu0 %2928  ;;  %2934 = vadd.xlane.f32.xlu0 %v2933_v25  ;;  %v2932_v28 = vpop.xlane.xlu1 %2931 }
0x1683   :  { %6838 = vrsqrt.f32 %v2465_v24  ;;  %v2942_v30 = vmul.f32 0.015625, %v2929_v26  ;;  %v2943_v40 = vmul.f32 0.015625, %v2932_v28  ;;  %v2925_v32 = vmul.f32 %v2920_v23, %v2920_v23 }
0x1685   :  { %v2947_v36 = vadd.f32 1e-05, %v2942_v30  ;;  %v2948_v39 = vadd.f32 1e-05, %v2943_v40  ;;  %v2936_v43 = vsel %vm171_vm1, %v2925_v32, 0.0 }
0x1686   :  { %2937 = vadd.xlane.f32.xlu1 %v2936_v43 }
0x1687   :  { %6840 = vrsqrt.f32 %v2947_v36 }
0x1688   :  { %6842 = vrsqrt.f32 %v2948_v39 }
0x1690   :  { %v6839_v37 = vpop.eup %6838 }
0x1691   :  { %v2475_v44 = vmul.f32 %v6839_v37, %v7819_v62 }
0x1693   :  { %v2486_v45 = vmul.f32 %v7714_v6, %v2475_v44  ;;  %v7873_v6 = vld [vmem:[%s8475_s8 + $0x1] ss:$0 sm:$0xff] }
0x1694   :  { %v6841_v47 = vpop.eup %6840 }
0x1695   :  { %v6843_v33 = vpop.eup %6842  ;;  %v2957_v38 = vmul.f32 %v6841_v47, %v7822_v54  ;;  %v2497_v29 = vadd.f32 %v7720_v2, %v2486_v45 }
0x1696   :  { %v2958_v20 = vmul.f32 %v6843_v33, %v2918_v61 }
0x1697   :  { %v2968_v27 = vmul.f32 %v7864_v48, %v2957_v38  ;;  %v2500_v41 = vpack.c.bf16 %v2497_v29, %v2497_v29 }
0x1698   :  { %v2969_v52 = vmul.f32 %v7864_v48, %v2958_v20 }
0x1699   :  { %5746 = vmatmul.mubr.msk.bf16.gmra.mxu1 %vm171_vm1, %v2500_v41  ;;  %v2979_v62 = vadd.f32 %v7873_v6, %v2968_v27 }
0x169a   :  { %3090 = vmatprep.mubr.bf16.mxu1 %v7016_v56  ;;  %v2980_v53 = vadd.f32 %v7873_v6, %v2969_v52 }
0x169c   :  { %v2984_v2 = vpack.c.bf16 %v2980_v53, %v2979_v62 }
0x16a1   :  { %5785 = vmatmul.mubr.msk.bf16.vlgmr.msra.gmra.mxu1 %vm171_vm1, %v2984_v2 }
0x16a2   :  { %3100 = vmatprep.mubr.bf16.mxu1 %v7016_v56 }
0x170b   :  { %v2935_v54 = vpop.xlane.xlu0 %2934 }
0x170c   :  { %v2944_v49 = vmul.f32 0.015625, %v2935_v54 }
0x170e   :  { %v2949_v57 = vadd.f32 1e-05, %v2944_v49 }
0x170f   :  { %v2938_v58 = vpop.xlane.xlu1 %2937 }
0x1710   :  { %6844 = vrsqrt.f32 %v2949_v57  ;;  %v2945_v10 = vmul.f32 0.015625, %v2938_v58 }
0x1712   :  { %v2950_v5 = vadd.f32 1e-05, %v2945_v10 }
0x1714   :  { %6846 = vrsqrt.f32 %v2950_v5 }
0x171d   :  { %v6845_v61 = vpop.eup %6844 }
0x171e   :  { %v2959_v59 = vmul.f32 %v6845_v61, %v2919_v34  ;;  %v5776_v34 = vld [vmem:[%s8477_s10 + $0x2] sm:$0x3]  ;;  %s8518_s10 = smov 96  }
0x171f   :  { %v7893_v0 = vrot.slane %v5776_v34, %v7275_v42  ;;  %v7904_v44 = vrot.slane %v5776_v34, %v7304_v1 }
0x1720   :  { %v2970_v3 = vmul.f32 %v7864_v48, %v2959_v59 }
0x1721   :  { %v6847_v60 = vpop.eup %6846 }
0x1722   :  { %v2960_v46 = vmul.f32 %v6847_v60, %v2920_v23  ;;  %v2981_v9 = vadd.f32 %v7873_v6, %v2970_v3 }
0x1724   :  { %v2971_v8 = vmul.f32 %v7864_v48, %v2960_v46 }
0x1726   :  { %v2982_v12 = vadd.f32 %v7873_v6, %v2971_v8 }
0x1728   :  { %v2985_v11 = vpack.c.bf16 %v2982_v12, %v2981_v9 }
0x172a   :  { %5786 = vmatmul.mubr.msk.bf16.gmra.mxu1 %vm171_vm1, %v2985_v11 }
0x172b   :  { %3110 = vmatprep.mubr.bf16.mxu1 %v7016_v56 }
0x1759   :  { %v2624_v15 = vpop.f32.mrf.mxu1 }
0x175a   :  { %v2625_v16 = vadd.f32 %v2624_v15, %v7787_v14 }
0x175b   :  { %v2626_v51 = vpop.f32.mrf.mxu1 }
0x175c   :  { %v2649_v17 = vmul.f32 0.70710677, %v2625_v16  ;;  %v2627_v55 = vadd.f32 %v2626_v51, %v7790_v13  ;;  %v2639_v26 = vmul.f32 0.5, %v2625_v16 }
0x175d   :  { %v2628_v21 = vpop.f32.mrf.mxu1 }
0x175e   :  { %6848 = verf.f32 %v2649_v17  ;;  %v2650_v31 = vmul.f32 0.70710677, %v2627_v55  ;;  %v2640_v28 = vmul.f32 0.5, %v2627_v55 }
0x175f   :  { %v2629_v22 = vpop.f32.mrf.mxu1 }
0x1760   :  { %6850 = verf.f32 %v2650_v31 }
0x1761   :  { %v3092_v35 = vpop.f32.mrf.mxu1 }
0x1762   :  { %v3093_v14 = vadd.f32 %v3092_v35, %v7893_v0 }
0x1763   :  { %v3094_v7 = vpop.f32.mrf.mxu1 }
0x1764   :  { %v3095_v52 = vadd.f32 %v3094_v7, %v7904_v44 }
0x1765   :  { %v3096_v50 = vpop.f32.mrf.mxu1 }
0x1766   :  { %v3097_v19 = vadd.f32 %v3096_v50, %v7893_v0 }
0x1767   :  { %v3098_v43 = vpop.f32.mrf.mxu1 }
0x1768   :  { %v7897_v13 = vpack.c.bf16 %v3097_v19, %v3093_v14  ;;  %v3099_v20 = vadd.f32 %v3098_v43, %v7904_v44 }
0x176a   :  { %3132 = vrot.lane.b32.xlu1 %v7897_v13, %s7019_s24  ;;  %v7927_v2 = vpack.c.bf16 %v3099_v20, %v3095_v52 }
0x176b   :  { %v6849_v23 = vpop.eup %6848 }
0x176c   :  { %v2669_v24 = vadd.f32 1.0, %v6849_v23 }
0x176d   :  { %v6851_v25 = vpop.eup %6850 }
0x176e   :  { %v2670_v30 = vadd.f32 1.0, %v6851_v25  ;;  %v2679_v40 = vmul.f32 %v2669_v24, %v2639_v26 }
0x1770   :  { %v2680_v32 = vmul.f32 %v2670_v30, %v2640_v28  ;;  %v2685_v39 = vpack.c.bf16 %v2679_v40, %v2679_v40 }
0x1772   :  { %v2686_v36 = vpack.c.bf16 %v2680_v32, %v2680_v32 }
0x1774   :  { %2870 = vmatprep.mubr.bf16.mxu0 %v2686_v36 }
0x1775   :  { %2871 = vmatmul.mubr.bf16.gmra.mxu0 %v2685_v39 }
0x1776   :  { %6378 = vmatprep.mubr.msk.bf16.mxu0 %vm510_vm4, %v7897_v13 }
0x17dc   :  { %v3133_v8 = vpop.permute.xlu1 %3132 }
0x17ea   :  { %v3102_v37 = vpop.f32.mrf.mxu1 }
0x17eb   :  { %v3103_v45 = vadd.f32 %v3102_v37, %v7893_v0 }
0x17ec   :  { %v3104_v47 = vpop.f32.mrf.mxu1 }
0x17ed   :  { %v7907_v33 = vpack.c.bf16 %v3103_v45, %v3103_v45  ;;  %v7910_v38 = vadd.f32 %v3104_v47, %v7904_v44 }
0x17ee   :  { %v3106_v29 = vpop.f32.mrf.mxu1 }
0x17ef   :  { %v7915_v27 = vpack.c.bf16 %v7910_v38, %v7910_v38  ;;  %v3107_v41 = vadd.f32 %v3106_v29, %v7893_v0  ;;  %3301 = vrot.lane.b32.xlu1 %v7907_v33, %s7017_s25  ;;  %3134 = vrot.lane.b32.xlu0 %v7907_v33, %s7019_s24 }
0x17f1   :  { %v7923_v62 = vpack.c.bf16 %v3107_v41, %v3103_v45  ;;  %v3243_v53 = vand.u32 %v7915_v27, %v7362_v4 }
0x17f3   :  { %6382 = vmatprep.subr.bf16.mxu1 %v3243_v53  ;;  %3299 = vrot.lane.b32.xlu1 %v7897_v13, %s7017_s25 }
0x17f4   :  { %3295 = vrot.lane.b32.xlu0 %v7897_v13, %s7018_s5  ;;  %6383 = vmatpush3.bf16.msra.mxu1 %v3243_v53 }
0x17f5   :  { %6384 = vmatprep.subr.bf16.mxu1 %v7927_v2 }
0x17f7   :  { %3297 = vrot.lane.b32.xlu1 %v7907_v33, %s7018_s5 }
0x17f8   :  { %6385 = vmatpush3.bf16.msra.mxu1 %v7927_v2 }
0x1835   :  { %v6055_v54 = vpop.f32.mrf.mxu0 }
0x1837   :  { %v6056_v49 = vpop.f32.mrf.mxu0 }
0x1838   :  { %v6057_v57 = vadd.f32 %v6056_v49, %v6055_v54 }
0x1839   :  { %v6058_v58 = vpop.f32.mrf.mxu0 }
0x183a   :  { %v2873_v10 = vadd.f32 %v6057_v57, %v7803_v63  ;;  %v3143_v63 = vsel %vm510_vm4, %v3133_v8, 0 }
0x183b   :  { %v6059_v5 = vpop.f32.mrf.mxu0 }
0x183c   :  { %v2882_v61 = vadd.f32 %v2873_v10, %v7704_v18 }
0x183e   :  { %2887 = vst.msk [vmem:[#allocation2 + $0x20] sm:$0x3] %vm285_vm3, %v2882_v61 }
0x1845   :  { %v2892_v59 = vld [vmem:[#allocation2 + $0x20] sm:$0x3] }
0x1846   :  { %v2909_v60 = vsel %vm285_vm3, %v2892_v59, 0.0 }
0x1847   :  { %2910 = vadd.xlane.f32.xlu0 %v2909_v60 }
0x1861   :  { %v3135_v46 = vpop.permute.xlu0 %3134  ;;  %v3302_v9 = vpop.permute.xlu1 %3301 }
0x1862   :  { %6578 = vmatprep.subr.msk.bf16.mxu0 %vm510_vm4, %v3135_v46  ;;  %v3146_v3 = vsel %vm510_vm4, %v3135_v46, 0  ;;  %v3313_v12 = vsel %vm510_vm4, %v3302_v9, 0 }
0x1863   :  { %6375 = vmatpush3.bf16.xpose.msra.mxu0 %v3146_v3 }
0x1864   :  { %6579 = vmatprep.subr.msk.bf16.mxu0 %vm510_vm4, %v3133_v8 }
0x1865   :  { %v3300_v11 = vpop.permute.xlu1 %3299 }
0x1866   :  { %v3296_v18 = vpop.permute.xlu0 %3295  ;;  %v3310_v15 = vsel %vm510_vm4, %v3300_v11, 0 }
0x1869   :  { %v3298_v16 = vpop.permute.xlu1 %3297 }
0x186b   :  { %6377 = vmatpush3.bf16.xpose.msra.mxu0 %v3143_v63 }
0x186c   :  { %6580 = vmatprep.subr.msk.bf16.mxu0 %vm510_vm4, %v3302_v9 }
0x1872   :  { %6379 = vmatmul.mubr.msk.bf16.vlgmr.msra.gmra.mxu0 %vm510_vm4, %v7907_v33 }
0x1873   :  { %6391 = vmatpush3.bf16.xpose.msra.mxu0 %v3313_v12  ;;  %6394 = vmatprep.mubr.msk.bf16.mxu0 %vm510_vm4, %v3296_v18 }
0x1874   :  { %6581 = vmatprep.subr.msk.bf16.mxu0 %vm510_vm4, %v3300_v11 }
0x187b   :  { %6393 = vmatpush3.bf16.xpose.msra.mxu0 %v3310_v15 }
0x1882   :  { %6395 = vmatmul.mubr.msk.bf16.vlgmr.msra.gmra.mxu0 %vm510_vm4, %v3298_v16 }
0x18d0   :  { %v2911_v14 = vpop.xlane.xlu0 %2910 }
0x18d1   :  { %v2916_v23 = vmul.f32 0.015625, %v2911_v14 }
0x18d3   :  { %v2921_v28 = vsub.f32 %v2892_v59, %v2916_v23 }
0x18d5   :  { %v2926_v37 = vmul.f32 %v2921_v28, %v2921_v28 }
0x18d7   :  { %v2939_v45 = vsel %vm285_vm3, %v2926_v37, 0.0 }
0x1932   :  { %v6380_v51 = vpop.f32.mrf.mxu0 }
0x1933   :  { %v3198_v35 = vmul.f32 0.25, %v6380_v51 }
0x1934   :  { %v3182_v17 = vpop.f32.mrf.mxu0 }
0x1935   :  { %v3196_v55 = vmul.f32 0.25, %v3182_v17  ;;  %v3205_v50 = vsel %vm581_vm7, %v3198_v35, -inf }
0x1936   :  { %v6381_v21 = vpop.f32.mrf.mxu0 }
0x1937   :  { %v3199_v31 = vsel %vm574_vm6, %v3196_v55, -inf }
0x1938   :  { %3200 = vmax.xlane.f32.xlu1 %v3199_v31  ;;  %v3185_v22 = vpop.f32.mrf.mxu0 }
0x1939   :  { %v3197_v34 = vmul.f32 0.25, %v3185_v22 }
0x193b   :  { %v3202_v7 = vsel %vm574_vm6, %v3197_v34, -inf }
0x193c   :  { %3203 = vmax.xlane.f32.xlu0 %v3202_v7 }
0x1940   :  { %3206 = vmax.xlane.f32.xlu0 %v3205_v50 }
0x1942   :  { %v6396_v19 = vpop.f32.mrf.mxu0 }
0x1943   :  { %v3365_v30 = vmul.f32 0.25, %v6396_v19 }
0x1944   :  { %v3349_v24 = vpop.f32.mrf.mxu0 }
0x1945   :  { %v3363_v25 = vmul.f32 0.25, %v3349_v24  ;;  %v3372_v39 = vsel %vm581_vm7, %v3365_v30, -inf }
0x1946   :  { %v6397_v26 = vpop.f32.mrf.mxu0 }
0x1947   :  { %v3366_v40 = vsel %vm574_vm6, %v3363_v25, -inf }
0x1948   :  { %3367 = vmax.xlane.f32.xlu0 %v3366_v40  ;;  %v3352_v32 = vpop.f32.mrf.mxu0 }
0x1949   :  { %v3364_v36 = vmul.f32 0.25, %v3352_v32 }
0x194b   :  { %v3369_v43 = vsel %vm574_vm6, %v3364_v36, -inf }
0x194c   :  { %3373 = vmax.xlane.f32.xlu0 %v3372_v39  ;;  %3370 = vmax.xlane.f32.xlu1 %v3369_v43 }
0x1950   :  { %2940 = vadd.xlane.f32.xlu1 %v2939_v45 }
0x19c1   :  { %v3201_v47 = vpop.xlane.xlu1 %3200 }
0x19c2   :  { %v3208_v41 = vsub.f32 %v3196_v55, %v3201_v47 }
0x19c4   :  { %v3211_v49 = vmul.f32 1.442695, %v3208_v41 }
0x19c5   :  { %v3204_v29 = vpop.xlane.xlu0 %3203 }
0x19c6   :  { %v3209_v20 = vsub.f32 %v3197_v34, %v3204_v29  ;;  %v7999_v29 = vld [vmem:[%s8478_s11 + $0x28] sm:$0xff]  }
0x19c8   :  { %v3213_v52 = vmul.f32 1.442695, %v3209_v20 }
0x19c9   :  { %v3207_v53 = vpop.xlane.xlu0 %3206 }
0x19ca   :  { %6852 = vpow2.f32 %v3213_v52  ;;  %v3210_v54 = vsub.f32 %v3198_v35, %v3207_v53 }
0x19cc   :  { %v3215_v57 = vmul.f32 1.442695, %v3210_v54 }
0x19ce   :  { %6854 = vpow2.f32 %v3215_v57 }
0x19cf   :  { %6856 = vpow2.f32 %v3211_v49 }
0x19d1   :  { %v3368_v58 = vpop.xlane.xlu0 %3367 }
0x19d2   :  { %v3375_v10 = vsub.f32 %v3363_v25, %v3368_v58 }
0x19d4   :  { %v3378_v3 = vmul.f32 1.442695, %v3375_v10 }
0x19d5   :  { %v3374_v5 = vpop.xlane.xlu0 %3373  ;;  %v3371_v61 = vpop.xlane.xlu1 %3370 }
0x19d6   :  { %v3377_v59 = vsub.f32 %v3365_v30, %v3374_v5  ;;  %v3376_v60 = vsub.f32 %v3364_v36, %v3371_v61  ;;  %v3108_v5 = vpop.f32.mrf.mxu1 }
0x19d7   :  { %v7960_v46 = vpop.eup %6852  ;;  %v3109_v61 = vadd.f32 %v3108_v5, %v7904_v44 }
0x19d8   :  { %v3382_v8 = vmul.f32 1.442695, %v3377_v59  ;;  %v3380_v63 = vmul.f32 1.442695, %v3376_v60  ;;  %v3220_v9 = vsel %vm574_vm6, %v7960_v46, 0.0  ;;  %v4075_v60 = vshll.u32 %v7923_v62, 16 }
0x19d9   :  { %3221 = vadd.xlane.f32.xlu1 %v3220_v9  ;;  %v2941_v18 = vpop.xlane.xlu1 %2940  ;;  %v4188_v59 = vpack.c.bf16 %v3109_v61, %v7910_v38 }
0x19da   :  { %6858 = vpow2.f32 %v3382_v8  ;;  %v2946_v12 = vmul.f32 0.015625, %v2941_v18  ;;  %v4077_v9 = vrot.slane %v4075_v60, 1 }
0x19db   :  { %v6855_v11 = vpop.eup %6854  ;;  %6860 = vpow2.f32 %v3380_v63 }
0x19dc   :  { %6862 = vpow2.f32 %v3378_v3  ;;  %v2951_v15 = vadd.f32 1e-05, %v2946_v12  ;;  %v3223_v16 = vsel %vm581_vm7, %v6855_v11, 0.0  ;;  %v6857_v51 = vpop.eup %6856  ;;  %v4193_v3 = vshll.u32 %v4188_v59, 16 }
0x19dd   :  { %3224 = vadd.xlane.f32.xlu0 %v3223_v16  ;;  %v3217_v17 = vsel %vm574_vm6, %v6857_v51, 0.0 }
0x19de   :  { %6864 = vrsqrt.f32 %v2951_v15  ;;  %v4073_v15 = vshrl.u32 %v7923_v62, 16  ;;  %v4195_v16 = vrot.slane %v4193_v3, 1  ;;  %v8027_v62 = vld [vmem:[%s8478_s11 + $0x20] sm:$0xff]  }
0x19df   :  { %6412 = vmatprep.subr.bf16.mxu0 %v8027_v62 }
0x19e0   :  { %6413 = vmatpush3.bf16.msra.mxu0 %v8027_v62 }
0x19e1   :  { %3218 = vadd.xlane.f32.xlu0 %v3217_v17 }
0x19e7   :  { %v6859_v55 = vpop.eup %6858 }
0x19e8   :  { %v6861_v21 = vpop.eup %6860  ;;  %v3390_v31 = vsel %vm581_vm7, %v6859_v55, 0.0 }
0x19e9   :  { %v6863_v22 = vpop.eup %6862  ;;  %3391 = vadd.xlane.f32.xlu1 %v3390_v31  ;;  %v3387_v34 = vsel %vm574_vm6, %v6861_v21, 0.0 }
0x19ea   :  { %3388 = vadd.xlane.f32.xlu0 %v3387_v34  ;;  %v3384_v7 = vsel %vm574_vm6, %v6863_v22, 0.0 }
0x19eb   :  { %v6865_v35 = vpop.eup %6864 }
0x19ec   :  { %v2961_v50 = vmul.f32 %v6865_v35, %v2921_v28 }
0x19ed   :  { %3385 = vadd.xlane.f32.xlu1 %v3384_v7 }
0x19ee   :  { %v2972_v14 = vmul.f32 %v7864_v48, %v2961_v50 }
0x19f0   :  { %v2983_v19 = vadd.f32 %v7873_v6, %v2972_v14 }
0x19f2   :  { %v2986_v23 = vpack.c.bf16 %v2983_v19, %v2983_v19 }
0x19f4   :  { %5787 = vmatmul.mubr.msk.bf16.gmra.mxu1 %vm171_vm1, %v2986_v23 }
0x19fe   :  { %3403 = vrot.lane.b32.xlu1 %v7927_v2, %s7018_s5 }
0x1a00   :  { %3405 = vrot.lane.b32.xlu0 %v7915_v27, %s7018_s5 }
0x1a02   :  { %3593 = vrot.lane.b32.xlu1 %v7907_v33, %s7020_s1 }
0x1a04   :  { %3587 = vrot.lane.b32.xlu0 %v7897_v13, %s8518_s10 }
0x1a06   :  { %3591 = vrot.lane.b32.xlu1 %v7897_v13, %s7020_s1 }
0x1a08   :  { %3826 = vrot.lane.b32.xlu0 %v7907_v33, %s8519_s6 }
0x1a0a   :  { %3589 = vrot.lane.b32.xlu1 %v7907_v33, %s8518_s10 }
0x1a0c   :  { %3820 = vrot.lane.b32.xlu0 %v7897_v13, %s8520_s26 }
0x1a0e   :  { %3824 = vrot.lane.b32.xlu1 %v7897_v13, %s8519_s6 }
0x1a12   :  { %3822 = vrot.lane.b32.xlu1 %v7907_v33, %s8520_s26 }
0x1a62   :  { %v3222_v48 = vpop.xlane.xlu1 %3221 }
0x1a66   :  { %v3225_v6 = vpop.xlane.xlu0 %3224 }
0x1a67   :  { %6866 = vrcp.f32 %v3225_v6 }
0x1a68   :  { %6868 = vrcp.f32 %v3222_v48 }
0x1a6a   :  { %v3219_v24 = vpop.xlane.xlu0 %3218 }
0x1a6b   :  { %6870 = vrcp.f32 %v3219_v24 }
0x1a72   :  { %v3392_v25 = vpop.xlane.xlu1 %3391 }
0x1a73   :  { %v3389_v26 = vpop.xlane.xlu0 %3388  ;;  %6872 = vrcp.f32 %v3392_v25 }
0x1a74   :  { %v6867_v28 = vpop.eup %6866  ;;  %6874 = vrcp.f32 %v3389_v26 }
0x1a75   :  { %v6869_v30 = vpop.eup %6868  ;;  %v3231_v13 = vmul.f32 %v6867_v28, %v6855_v11 }
0x1a76   :  { %v3386_v40 = vpop.xlane.xlu1 %3385  ;;  %v3229_v43 = vmul.f32 %v6869_v30, %v7960_v46 }
0x1a77   :  { %v3406_v32 = vpop.permute.xlu0 %3405  ;;  %6876 = vrcp.f32 %v3386_v40  ;;  %v3233_v45 = vpack.c.bf16 %v3231_v13, %v3231_v13 }
0x1a78   :  { %v6871_v36 = vpop.eup %6870  ;;  %v3415_v39 = vand.u32 %v3406_v32, %v7362_v4 }
0x1a79   :  { %v3227_v33 = vmul.f32 %v6871_v36, %v6857_v51 }
0x1a7a   :  { %6398 = vmatprep.subr.bf16.mxu1 %v3415_v39  ;;  %v3404_v47 = vpop.permute.xlu1 %3403 }
0x1a7b   :  { %v3232_v37 = vpack.c.bf16 %v3229_v43, %v3227_v33  ;;  %v3588_v40 = vpop.permute.xlu0 %3587 }
0x1a7d   :  { %6386 = vmatprep.mubr.msk.bf16.mxu1 %vm574_vm6, %v3232_v37 }
0x1a7e   :  { %6387 = vmatmul.mubr.msk.bf16.vlgmr.msra.gmra.mxu1 %vm574_vm6, %v3233_v45  ;;  %v3594_v10 = vpop.permute.xlu1 %3593 }
0x1a7f   :  { %6399 = vmatpush3.bf16.msra.mxu1 %v3415_v39  ;;  %v3605_v32 = vsel %vm510_vm4, %v3594_v10, 0  ;;  %v3827_v39 = vpop.permute.xlu0 %3826 }
0x1a80   :  { %6400 = vmatprep.subr.bf16.mxu1 %v3404_v47  ;;  %v6873_v20 = vpop.eup %6872  ;;  %v3838_v43 = vsel %vm510_vm4, %v3827_v39, 0 }
0x1a81   :  { %v6875_v41 = vpop.eup %6874  ;;  %v3398_v53 = vmul.f32 %v6873_v20, %v6859_v55  ;;  %v4078_v55 = vor.u32 %v4077_v9, %v4073_v15 }
0x1a82   :  { %v3396_v49 = vmul.f32 %v6875_v41, %v6861_v21  ;;  %v4191_v21 = vshrl.u32 %v4188_v59, 16  ;;  %v3592_v36 = vpop.permute.xlu1 %3591 }
0x1a83   :  { %6401 = vmatpush3.bf16.msra.mxu1 %v3404_v47  ;;  %v3400_v58 = vpack.c.bf16 %v3398_v53, %v3398_v53  ;;  %v3602_v13 = vsel %vm510_vm4, %v3592_v36, 0  ;;  %v3821_v37 = vpop.permute.xlu0 %3820 }
0x1a84   :  { %v6877_v52 = vpop.eup %6876  ;;  %6406 = vmatprep.subr.bf16.mxu1 %v7999_v29 }
0x1a85   :  { %v3394_v54 = vmul.f32 %v6877_v52, %v6863_v22  ;;  %v4196_v22 = vor.u32 %v4195_v16, %v4191_v21 }
0x1a86   :  { %v3590_v33 = vpop.permute.xlu1 %3589 }
0x1a87   :  { %v3399_v57 = vpack.c.bf16 %v3396_v49, %v3394_v54 }
0x1a89   :  { %6402 = vmatprep.mubr.msk.bf16.mxu1 %vm574_vm6, %v3399_v57 }
0x1a8a   :  { %6403 = vmatmul.mubr.msk.bf16.vlgmr.msra.gmra.mxu1 %vm574_vm6, %v3400_v58  ;;  %v3825_v45 = vpop.permute.xlu1 %3824 }
0x1a8b   :  { %6407 = vmatpush3.bf16.msra.mxu1 %v7999_v29  ;;  %v3835_v47 = vsel %vm510_vm4, %v3825_v45, 0 }
0x1a8c   :  { %6582 = vmatprep.subr.msk.bf16.mxu1 %vm510_vm4, %v3594_v10 }
0x1a8e   :  { %v3823_v20 = vpop.permute.xlu1 %3822 }
0x1ab4   :  { %v3112_v46 = vpop.f32.mrf.mxu1 }
0x1ab5   :  { %v3113_v8 = vadd.f32 %v3112_v46, %v7893_v0 }
0x1ab6   :  { %v3114_v63 = vpop.f32.mrf.mxu1 }
0x1ab7   :  { %v8010_v18 = vpack.c.bf16 %v3113_v8, %v3113_v8  ;;  %v3115_v12 = vadd.f32 %v3114_v63, %v7904_v44 }
0x1ab8   :  { %v3116_v11 = vpop.f32.mrf.mxu1 }
0x1ab9   :  { %v4080_v51 = vshll.u32 %v8010_v18, 16  ;;  %v8015_v17 = vpack.c.bf16 %v3115_v12, %v3115_v12 }
0x1aba   :  { %v3117_v38 = vpop.f32.mrf.mxu1 }
0x1abb   :  { %v4082_v31 = vrot.slane %v4080_v51, 1  ;;  %v4198_v0 = vshll.u32 %v8015_v17, 16 }
0x1abd   :  { %v8019_v34 = vsel %vm1451_vm5, %v4078_v55, %v4082_v31  ;;  %v4200_v35 = vrot.slane %v4198_v0, 1 }
0x1abf   :  { %v8022_v44 = vsel %vm1451_vm5, %v4196_v22, %v4200_v35 }
0x1b3e   :  { %v6388_v7 = vpop.f32.mrf.mxu1 }
0x1b3f   :  { %v3294_v48 = vpack.c.bf16 %v6388_v7, %v6388_v7 }
0x1b40   :  { %v3279_v50 = vpop.f32.mrf.mxu1 }
0x1b42   :  { %v6389_v14 = vpop.f32.mrf.mxu1 }
0x1b44   :  { %v3282_v19 = vpop.f32.mrf.mxu1 }
0x1b45   :  { %v3293_v23 = vpack.c.bf16 %v3282_v19, %v3279_v50 }
0x1b47   :  { %6414 = vmatprep.mubr.msk.bf16.mxu0 %vm510_vm4, %v3293_v23 }
0x1b48   :  { %6415 = vmatmul.mubr.msk.bf16.vlgmr.msra.gmra.mxu0 %vm510_vm4, %v3294_v48 }
0x1b4a   :  { %v6404_v6 = vpop.f32.mrf.mxu1 }
0x1b4b   :  { %v3466_v30 = vpack.c.bf16 %v6404_v6, %v6404_v6 }
0x1b4c   :  { %v3451_v24 = vpop.f32.mrf.mxu1 }
0x1b4e   :  { %v6405_v25 = vpop.f32.mrf.mxu1 }
0x1b4f   :  { %v8063_v25 = vshrl.u32 %v8010_v18, 16 }
0x1b50   :  { %v3454_v26 = vpop.f32.mrf.mxu1 }
0x1b51   :  { %v3465_v28 = vpack.c.bf16 %v3454_v26, %v3451_v24 }
0x1b53   :  { %6408 = vmatprep.mubr.msk.bf16.mxu1 %vm510_vm4, %v3465_v28 }
0x1b54   :  { %6409 = vmatmul.mubr.msk.bf16.vlgmr.msra.gmra.mxu1 %vm510_vm4, %v3466_v30 }
0x1b55   :  { %6419 = vmatpush3.bf16.xpose.msra.mxu1 %v3605_v32  ;;  %6422 = vmatprep.mubr.msk.bf16.mxu1 %vm510_vm4, %v3588_v40 }
0x1b56   :  { %6583 = vmatprep.subr.msk.bf16.mxu1 %vm510_vm4, %v3592_v36 }
0x1b5d   :  { %6421 = vmatpush3.bf16.xpose.msra.mxu1 %v3602_v13 }
0x1b5e   :  { %6584 = vmatprep.subr.msk.bf16.mxu1 %vm510_vm4, %v3827_v39 }
0x1b64   :  { %6423 = vmatmul.mubr.msk.bf16.vlgmr.msra.gmra.mxu1 %vm510_vm4, %v3590_v33 }
0x1b65   :  { %6441 = vmatpush3.bf16.xpose.msra.mxu1 %v3838_v43  ;;  %6444 = vmatprep.mubr.msk.bf16.mxu1 %vm510_vm4, %v3821_v37 }
0x1b66   :  { %6585 = vmatprep.subr.msk.bf16.mxu1 %vm510_vm4, %v3825_v45 }
0x1b6d   :  { %6443 = vmatpush3.bf16.xpose.msra.mxu1 %v3835_v47 }
0x1b74   :  { %6445 = vmatmul.mubr.msk.bf16.vlgmr.msra.gmra.mxu1 %vm510_vm4, %v3823_v20 }
0x1b75   :  { %6466 = vmatprep.mubr.msk.bf16.mxu1 %vm510_vm4, %v8019_v34 }
0x1c08   :  { %v6416_v41 = vpop.f32.mrf.mxu0 }
0x1c0a   :  { %v3573_v52 = vpop.f32.mrf.mxu0 }
0x1c0c   :  { %v6417_v53 = vpop.f32.mrf.mxu0 }
0x1c14   :  { %v6410_v54 = vpop.f32.mrf.mxu1 }
0x1c15   :  { %v8048_v49 = vadd.f32 %v6416_v41, %v6410_v54 }
0x1c16   :  { %v3513_v57 = vpop.f32.mrf.mxu1 }
0x1c17   :  { %v8050_v58 = vadd.f32 %v3573_v52, %v3513_v57 }
0x1c18   :  { %v6411_v10 = vpop.f32.mrf.mxu1 }
0x1c1a   :  { %v8052_v5 = vpop.f32.mrf.mxu1 }
0x1c24   :  { %v6424_v61 = vpop.f32.mrf.mxu1 }
0x1c25   :  { %v3657_v3 = vmul.f32 0.25, %v6424_v61 }
0x1c26   :  { %v3641_v59 = vpop.f32.mrf.mxu1 }
0x1c27   :  { %v3655_v60 = vmul.f32 0.25, %v3641_v59  ;;  %v3664_v12 = vsel %vm581_vm7, %v3657_v3, -inf }
0x1c28   :  { %v6425_v46 = vpop.f32.mrf.mxu1 }
0x1c29   :  { %v3658_v8 = vsel %vm574_vm6, %v3655_v60, -inf }
0x1c2a   :  { %3659 = vmax.xlane.f32.xlu0 %v3658_v8  ;;  %v3644_v63 = vpop.f32.mrf.mxu1 }
0x1c2b   :  { %v3656_v9 = vmul.f32 0.25, %v3644_v63 }
0x1c2d   :  { %v3661_v11 = vsel %vm574_vm6, %v3656_v9, -inf }
0x1c2e   :  { %3665 = vmax.xlane.f32.xlu0 %v3664_v12  ;;  %3662 = vmax.xlane.f32.xlu1 %v3661_v11 }
0x1c34   :  { %v6446_v15 = vpop.f32.mrf.mxu1 }
0x1c35   :  { %v3890_v28 = vmul.f32 0.25, %v6446_v15 }
0x1c36   :  { %v3874_v16 = vpop.f32.mrf.mxu1 }
0x1c37   :  { %v3888_v26 = vmul.f32 0.25, %v3874_v16  ;;  %v3897_v36 = vsel %vm581_vm7, %v3890_v28, -inf }
0x1c38   :  { %v6447_v51 = vpop.f32.mrf.mxu1 }
0x1c39   :  { %v3891_v40 = vsel %vm574_vm6, %v3888_v26, -inf }
0x1c3a   :  { %v3877_v30 = vpop.f32.mrf.mxu1 }
0x1c3b   :  { %v3889_v32 = vmul.f32 0.25, %v3877_v30 }
0x1c3d   :  { %v3894_v18 = vsel %vm574_vm6, %v3889_v32, -inf }
0x1cb3   :  { %v3660_v38 = vpop.xlane.xlu0 %3659 }
0x1cb4   :  { %v3667_v55 = vsub.f32 %v3655_v60, %v3660_v38 }
0x1cb6   :  { %v3670_v21 = vmul.f32 1.442695, %v3667_v55 }
0x1cb7   :  { %v3666_v31 = vpop.xlane.xlu0 %3665  ;;  %v3663_v0 = vpop.xlane.xlu1 %3662 }
0x1cb8   :  { %6878 = vpow2.f32 %v3670_v21  ;;  %v3669_v22 = vsub.f32 %v3657_v3, %v3666_v31  ;;  %v3668_v35 = vsub.f32 %v3656_v9, %v3663_v0 }
0x1cba   :  { %v3674_v7 = vmul.f32 1.442695, %v3669_v22  ;;  %v3672_v50 = vmul.f32 1.442695, %v3668_v35  ;;  %v8089_v35 = vld [vmem:[%s8478_s11 + $0x30] sm:$0xff]  }
0x1cbc   :  { %6880 = vpow2.f32 %v3674_v7  ;;  %v8097_v7 = vpop.f32.mrf.mxu0 }
0x1cbd   :  { %6882 = vpow2.f32 %v3672_v50 }
0x1cc5   :  { %v6879_v14 = vpop.eup %6878 }
0x1cc6   :  { %v3676_v19 = vsel %vm574_vm6, %v6879_v14, 0.0 }
0x1cc7   :  { %3677 = vadd.xlane.f32.xlu0 %v3676_v19 }
0x1cc9   :  { %v6881_v23 = vpop.eup %6880 }
0x1cca   :  { %v6883_v48 = vpop.eup %6882  ;;  %v3682_v6 = vsel %vm581_vm7, %v6881_v23, 0.0 }
0x1ccb   :  { %3683 = vadd.xlane.f32.xlu1 %v3682_v6  ;;  %v3679_v24 = vsel %vm574_vm6, %v6883_v48, 0.0 }
0x1ccc   :  { %3680 = vadd.xlane.f32.xlu0 %v3679_v24 }
0x1cdc   :  { %3693 = vrot.lane.b32.xlu1 %v7927_v2, %s8518_s10 }
0x1ce0   :  { %4088 = vrot.lane.b32.xlu1 %v8063_v25, %s7019_s24 }
0x1ce2   :  { %3695 = vrot.lane.b32.xlu0 %v7915_v27, %s8518_s10 }
0x1ce4   :  { %4086 = vrot.lane.b32.xlu1 %v8019_v34, %s7019_s24 }
0x1d01   :  { %3892 = vmax.xlane.f32.xlu0 %v3891_v40 }
0x1d05   :  { %3898 = vmax.xlane.f32.xlu0 %v3897_v36 }
0x1d08   :  { %3895 = vmax.xlane.f32.xlu1 %v3894_v18 }
0x1d50   :  { %v3678_v13 = vpop.xlane.xlu0 %3677 }
0x1d51   :  { %6884 = vrcp.f32 %v3678_v13 }
0x1d54   :  { %v3684_v39 = vpop.xlane.xlu1 %3683 }
0x1d55   :  { %v3681_v33 = vpop.xlane.xlu0 %3680  ;;  %6886 = vrcp.f32 %v3684_v39 }
0x1d56   :  { %6888 = vrcp.f32 %v3681_v33 }
0x1d58   :  { %v3694_v43 = vpop.permute.xlu1 %3693 }
0x1d59   :  { %v3696_v37 = vpop.permute.xlu0 %3695 }
0x1d5a   :  { %v3705_v45 = vand.u32 %v3696_v37, %v7362_v4 }
0x1d5c   :  { %6426 = vmatprep.subr.bf16.mxu0 %v3705_v45  ;;  %v4089_v47 = vpop.permute.xlu1 %4088 }
0x1d5d   :  { %6427 = vmatpush3.bf16.msra.mxu0 %v3705_v45  ;;  %v4100_v20 = vsel %vm510_vm4, %v4089_v47, 0  ;;  %6586 = vmatprep.subr.msk.bf16.mxu1 %vm510_vm4, %v4089_v47  ;;  %v8107_v45 = vld [vmem:[%s8478_s11 + $0x38] sm:$0xff]  }
0x1d5e   :  { %6428 = vmatprep.subr.bf16.mxu0 %v3694_v43  ;;  %6463 = vmatpush3.bf16.xpose.msra.mxu1 %v4100_v20  ;;  %v6885_v52 = vpop.eup %6884 }
0x1d5f   :  { %v3686_v10 = vmul.f32 %v6885_v52, %v6879_v14 }
0x1d60   :  { %v4087_v41 = vpop.permute.xlu1 %4086 }
0x1d61   :  { %6429 = vmatpush3.bf16.msra.mxu0 %v3694_v43  ;;  %6587 = vmatprep.subr.msk.bf16.mxu1 %vm510_vm4, %v4087_v41  ;;  %v4097_v59 = vsel %vm510_vm4, %v4087_v41, 0 }
0x1d62   :  { %v6887_v53 = vpop.eup %6886  ;;  %6434 = vmatprep.subr.bf16.mxu0 %v8089_v35 }
0x1d63   :  { %v6889_v54 = vpop.eup %6888  ;;  %v3690_v57 = vmul.f32 %v6887_v53, %v6881_v23 }
0x1d64   :  { %v3688_v61 = vmul.f32 %v6889_v54, %v6883_v48 }
0x1d65   :  { %v3692_v60 = vpack.c.bf16 %v3690_v57, %v3690_v57 }
0x1d66   :  { %6465 = vmatpush3.bf16.xpose.msra.mxu1 %v4097_v59  ;;  %v3691_v46 = vpack.c.bf16 %v3688_v61, %v3686_v10  ;;  %v8112_v10 = vshrl.u32 %v8015_v17, 16 }
0x1d68   :  { %6430 = vmatprep.mubr.msk.bf16.mxu0 %vm574_vm6, %v3691_v46 }
0x1d69   :  { %6431 = vmatmul.mubr.msk.bf16.vlgmr.msra.gmra.mxu0 %vm574_vm6, %v3692_v60  ;;  %v4212_v60 = vand.u32 %v8112_v10, %v7362_v4 }
0x1d6a   :  { %6435 = vmatpush3.bf16.msra.mxu0 %v8089_v35 }
0x1d6d   :  { %6467 = vmatmul.mubr.msk.bf16.vlgmr.msra.gmra.mxu1 %vm510_vm4, %v8063_v25 }
0x1d8a   :  { %v3893_v3 = vpop.xlane.xlu0 %3892 }
0x1d8b   :  { %v3900_v8 = vsub.f32 %v3888_v26, %v3893_v3 }
0x1d8d   :  { %v3903_v63 = vmul.f32 1.442695, %v3900_v8 }
0x1d8e   :  { %v3899_v9 = vpop.xlane.xlu0 %3898 }
0x1d8f   :  { %6890 = vpow2.f32 %v3903_v63  ;;  %v3902_v12 = vsub.f32 %v3890_v28, %v3899_v9 }
0x1d91   :  { %v3907_v11 = vmul.f32 1.442695, %v3902_v12  ;;  %v3896_v15 = vpop.xlane.xlu1 %3895 }
0x1d92   :  { %v3901_v16 = vsub.f32 %v3889_v32, %v3896_v15 }
0x1d93   :  { %6892 = vpow2.f32 %v3907_v11 }
0x1d94   :  { %v3905_v51 = vmul.f32 1.442695, %v3901_v16 }
0x1d96   :  { %6894 = vpow2.f32 %v3905_v51 }
0x1d9c   :  { %v6891_v38 = vpop.eup %6890 }
0x1d9d   :  { %v3909_v55 = vsel %vm574_vm6, %v6891_v38, 0.0 }
0x1d9e   :  { %3910 = vadd.xlane.f32.xlu0 %v3909_v55 }
0x1da0   :  { %v6893_v21 = vpop.eup %6892 }
0x1da1   :  { %v3915_v31 = vsel %vm581_vm7, %v6893_v21, 0.0 }
0x1da2   :  { %3916 = vadd.xlane.f32.xlu1 %v3915_v31 }
0x1da3   :  { %v6895_v0 = vpop.eup %6894 }
0x1da4   :  { %v3912_v22 = vsel %vm574_vm6, %v6895_v0, 0.0 }
0x1da5   :  { %3913 = vadd.xlane.f32.xlu0 %v3912_v22 }
0x1db3   :  { %3926 = vrot.lane.b32.xlu1 %v7927_v2, %s8520_s26 }
0x1dbb   :  { %3928 = vrot.lane.b32.xlu0 %v7915_v27, %s8520_s26 }
0x1e27   :  { %v3911_v14 = vpop.xlane.xlu0 %3910 }
0x1e29   :  { %v6432_v50 = vpop.f32.mrf.mxu0 }
0x1e2a   :  { %v3756_v40 = vpack.c.bf16 %v6432_v50, %v6432_v50 }
0x1e2b   :  { %v3741_v19 = vpop.f32.mrf.mxu0  ;;  %v3917_v23 = vpop.xlane.xlu1 %3916 }
0x1e2c   :  { %6896 = vrcp.f32 %v3917_v23  ;;  %v3577_v23 = vadd.f32 %v8097_v7, %v8052_v5 }
0x1e2d   :  { %6898 = vrcp.f32 %v3911_v14  ;;  %v6433_v48 = vpop.f32.mrf.mxu0  ;;  %v6468_v6 = vpop.f32.mrf.mxu1 }
0x1e2e   :  { %v3914_v24 = vpop.xlane.xlu0 %3913  ;;  %v4152_v43 = vmul.f32 0.25, %v6468_v6 }
0x1e2f   :  { %v3744_v26 = vpop.f32.mrf.mxu0  ;;  %6900 = vrcp.f32 %v3914_v24  ;;  %v4136_v30 = vpop.f32.mrf.mxu1 }
0x1e30   :  { %v3755_v28 = vpack.c.bf16 %v3744_v26, %v3741_v19  ;;  %v4150_v2 = vmul.f32 0.25, %v4136_v30  ;;  %v3927_v33 = vpop.permute.xlu1 %3926  ;;  %v4159_v41 = vsel %vm581_vm7, %v4152_v43, -inf }
0x1e31   :  { %v6469_v27 = vpop.f32.mrf.mxu1 }
0x1e32   :  { %6436 = vmatprep.mubr.msk.bf16.mxu0 %vm510_vm4, %v3755_v28  ;;  %v3929_v32 = vpop.permute.xlu0 %3928  ;;  %v4153_v18 = vsel %vm574_vm6, %v4150_v2, -inf }
0x1e33   :  { %6437 = vmatmul.mubr.msk.bf16.vlgmr.msra.gmra.mxu0 %vm510_vm4, %v3756_v40  ;;  %v3938_v36 = vand.u32 %v3929_v32, %v7362_v4  ;;  %4154 = vmax.xlane.f32.xlu1 %v4153_v18  ;;  %v4139_v13 = vpop.f32.mrf.mxu1 }
0x1e34   :  { %v4151_v39 = vmul.f32 0.25, %v4139_v13 }
0x1e35   :  { %6448 = vmatprep.subr.bf16.mxu0 %v3938_v36 }
0x1e36   :  { %6449 = vmatpush3.bf16.msra.mxu0 %v3938_v36  ;;  %v4156_v37 = vsel %vm574_vm6, %v4151_v39, -inf }
0x1e37   :  { %6450 = vmatprep.subr.bf16.mxu0 %v3927_v33  ;;  %4157 = vmax.xlane.f32.xlu0 %v4156_v37 }
0x1e39   :  { %v6897_v47 = vpop.eup %6896 }
0x1e3a   :  { %v6899_v20 = vpop.eup %6898  ;;  %6451 = vmatpush3.bf16.msra.mxu0 %v3927_v33  ;;  %v3923_v53 = vmul.f32 %v6897_v47, %v6893_v21 }
0x1e3b   :  { %6456 = vmatprep.subr.bf16.mxu0 %v8107_v45  ;;  %4160 = vmax.xlane.f32.xlu0 %v4159_v41  ;;  %v3919_v54 = vmul.f32 %v6899_v20, %v6891_v38 }
0x1e3c   :  { %v6901_v52 = vpop.eup %6900  ;;  %v3925_v59 = vpack.c.bf16 %v3923_v53, %v3923_v53 }
0x1e3d   :  { %v3921_v57 = vmul.f32 %v6901_v52, %v6895_v0 }
0x1e3f   :  { %v3924_v61 = vpack.c.bf16 %v3921_v57, %v3919_v54  ;;  %v8151_v57 = vld [vmem:[%s8479_s12 + $0x1] ss:$0 sm:$0xff] }
0x1e41   :  { %6452 = vmatprep.mubr.msk.bf16.mxu0 %vm574_vm6, %v3924_v61 }
0x1e42   :  { %6453 = vmatmul.mubr.msk.bf16.vlgmr.msra.gmra.mxu0 %vm574_vm6, %v3925_v59  ;;  %v8153_v59 = vld [vmem:[#allocation2 + $0x10] sm:$0xff] }
0x1e43   :  { %6457 = vmatpush3.bf16.msra.mxu0 %v8107_v45 }
0x1e44   :  { %6470 = vmatprep.subr.bf16.mxu0 %v4212_v60 }
0x1ebc   :  { %v4155_v46 = vpop.xlane.xlu1 %4154 }
0x1ebd   :  { %v4162_v3 = vsub.f32 %v4150_v2, %v4155_v46 }
0x1ebf   :  { %v4165_v8 = vmul.f32 1.442695, %v4162_v3 }
0x1ec0   :  { %v4158_v63 = vpop.xlane.xlu0 %4157 }
0x1ec1   :  { %6902 = vpow2.f32 %v4165_v8  ;;  %v4163_v9 = vsub.f32 %v4151_v39, %v4158_v63  ;;  %v6990_v63 = vld [vmem:[#allocation2] sm:$0xff] }
0x1ec3   :  { %v4167_v17 = vmul.f32 1.442695, %v4163_v9 }
0x1ec4   :  { %v4161_v12 = vpop.xlane.xlu0 %4160 }
0x1ec5   :  { %6904 = vpow2.f32 %v4167_v17  ;;  %v4164_v11 = vsub.f32 %v4152_v43, %v4161_v12 }
0x1ec7   :  { %v4169_v15 = vmul.f32 1.442695, %v4164_v11  ;;  %v6991_v11 = vld [vmem:[#allocation2 + $0x8] sm:$0xff] }
0x1ec9   :  { %6906 = vpow2.f32 %v4169_v15 }
0x1ece   :  { %v6903_v16 = vpop.eup %6902 }
0x1ecf   :  { %v4171_v51 = vsel %vm574_vm6, %v6903_v16, 0.0 }
0x1ed0   :  { %4172 = vadd.xlane.f32.xlu1 %v4171_v51 }
0x1ed2   :  { %v6905_v38 = vpop.eup %6904 }
0x1ed3   :  { %v4174_v55 = vsel %vm574_vm6, %v6905_v38, 0.0 }
0x1ed4   :  { %4175 = vadd.xlane.f32.xlu0 %v4174_v55 }
0x1ed6   :  { %v6907_v21 = vpop.eup %6906 }
0x1ed7   :  { %v4177_v31 = vsel %vm581_vm7, %v6907_v21, 0.0 }
0x1ed8   :  { %4178 = vadd.xlane.f32.xlu1 %v4177_v31 }
0x1ee9   :  { %4268 = vrot.lane.b32.xlu1 %v8019_v34, %s7017_s25 }
0x1eea   :  { %4270 = vrot.lane.b32.xlu0 %v8063_v25, %s7017_s25 }
0x1eed   :  { %4264 = vrot.lane.b32.xlu1 %v8019_v34, %s7018_s5 }
0x1ef1   :  { %4266 = vrot.lane.b32.xlu1 %v8063_v25, %s7018_s5 }
0x1ef3   :  { %v6438_v0 = vpop.f32.mrf.mxu0 }
0x1ef4   :  { %v3819_v22 = vadd.f32 %v6438_v0, %v8048_v49 }
0x1ef5   :  { %v3803_v50 = vpop.f32.mrf.mxu0 }
0x1ef6   :  { %v3817_v14 = vadd.f32 %v3803_v50, %v8050_v58 }
0x1ef7   :  { %v6439_v19 = vpop.f32.mrf.mxu0 }
0x1ef9   :  { %v3806_v48 = vpop.f32.mrf.mxu0 }
0x1efa   :  { %v3818_v6 = vadd.f32 %v3806_v48, %v3577_v23 }
0x1f02   :  { %v6454_v24 = vpop.f32.mrf.mxu0 }
0x1f03   :  { %v3989_v2 = vpack.c.bf16 %v6454_v24, %v6454_v24 }
0x1f04   :  { %v3974_v26 = vpop.f32.mrf.mxu0 }
0x1f06   :  { %v6455_v28 = vpop.f32.mrf.mxu0 }
0x1f08   :  { %v3977_v30 = vpop.f32.mrf.mxu0 }
0x1f09   :  { %v3988_v40 = vpack.c.bf16 %v3977_v30, %v3974_v26 }
0x1f0b   :  { %6458 = vmatprep.mubr.msk.bf16.mxu0 %vm510_vm4, %v3988_v40 }
0x1f0c   :  { %6459 = vmatmul.mubr.msk.bf16.vlgmr.msra.gmra.mxu0 %vm510_vm4, %v3989_v2 }
0x1f0d   :  { %6471 = vmatpush3.bf16.msra.mxu0 %v4212_v60 }
0x1f0e   :  { %6472 = vmatprep.subr.bf16.mxu0 %v8022_v44 }
0x1f11   :  { %6473 = vmatpush3.bf16.msra.mxu0 %v8022_v44 }
0x1f59   :  { %v4173_v49 = vpop.xlane.xlu1 %4172 }
0x1f5a   :  { %6908 = vrcp.f32 %v4173_v49 }
0x1f5d   :  { %v4176_v58 = vpop.xlane.xlu0 %4175 }
0x1f5e   :  { %6910 = vrcp.f32 %v4176_v58 }
0x1f61   :  { %v4271_v5 = vpop.permute.xlu0 %4270  ;;  %v4179_v7 = vpop.xlane.xlu1 %4178 }
0x1f62   :  { %6912 = vrcp.f32 %v4179_v7  ;;  %6588 = vmatprep.subr.msk.bf16.mxu0 %vm510_vm4, %v4271_v5  ;;  %v4282_v47 = vsel %vm510_vm4, %v4271_v5, 0 }
0x1f65   :  { %v4269_v13 = vpop.permute.xlu1 %4268 }
0x1f66   :  { %v4279_v41 = vsel %vm510_vm4, %v4269_v13, 0 }
0x1f67   :  { %v6909_v27 = vpop.eup %6908 }
0x1f68   :  { %v4181_v36 = vmul.f32 %v6909_v27, %v6903_v16 }
0x1f69   :  { %v4265_v20 = vpop.permute.xlu1 %4264 }
0x1f6b   :  { %v6911_v32 = vpop.eup %6910 }
0x1f6c   :  { %v4183_v18 = vmul.f32 %v6911_v32, %v6905_v38 }
0x1f6d   :  { %v4267_v52 = vpop.permute.xlu1 %4266 }
0x1f6e   :  { %v4186_v39 = vpack.c.bf16 %v4183_v18, %v4181_v36 }
0x1f6f   :  { %v6913_v33 = vpop.eup %6912 }
0x1f70   :  { %6474 = vmatprep.mubr.msk.bf16.mxu0 %vm574_vm6, %v4186_v39  ;;  %v4185_v43 = vmul.f32 %v6913_v33, %v6907_v21 }
0x1f72   :  { %v4187_v37 = vpack.c.bf16 %v4185_v43, %v4185_v43 }
0x1f74   :  { %6475 = vmatmul.mubr.msk.bf16.vlgmr.msra.gmra.mxu0 %vm574_vm6, %v4187_v37 }
0x1f75   :  { %6479 = vmatpush3.bf16.xpose.msra.mxu0 %v4282_v47  ;;  %6482 = vmatprep.mubr.msk.bf16.mxu0 %vm510_vm4, %v4265_v20 }
0x1f76   :  { %6589 = vmatprep.subr.msk.bf16.mxu0 %vm510_vm4, %v4269_v13 }
0x1f7d   :  { %6481 = vmatpush3.bf16.xpose.msra.mxu0 %v4279_v41 }
0x1f7e   :  { %6500 = vmatprep.subr.bf16.mxu0 %v8027_v62 }
0x1f84   :  { %6483 = vmatmul.mubr.msk.bf16.vlgmr.msra.gmra.mxu0 %vm510_vm4, %v4267_v52 }
0x1f85   :  { %6501 = vmatpush3.bf16.msra.mxu0 %v8027_v62 }
0x1fcc   :  { %v6460_v53 = vpop.f32.mrf.mxu0 }
0x1fcd   :  { %v4052_v54 = vadd.f32 %v6460_v53, %v3819_v22 }
0x1fce   :  { %v4036_v61 = vpop.f32.mrf.mxu0 }
0x1fcf   :  { %v4055_v60 = vadd.f32 %v8153_v59, %v4052_v54  ;;  %v4050_v46 = vadd.f32 %v4036_v61, %v3817_v14 }
0x1fd0   :  { %v6461_v3 = vpop.f32.mrf.mxu0 }
0x1fd1   :  { %v4066_v8 = vadd.f32 %v8151_v57, %v4055_v60  ;;  %v4053_v9 = vadd.f32 %v6990_v63, %v4050_v46 }
0x1fd2   :  { %v4039_v17 = vpop.f32.mrf.mxu0 }
0x1fd3   :  { %4069 = vst.msk [vmem:[#allocation2 + $0x10] sm:$0x1] %vm248_vm2, %v4066_v8  ;;  %v4064_v62 = vadd.f32 %v8151_v57, %v4053_v9  ;;  %v4051_v12 = vadd.f32 %v4039_v17, %v3818_v6 }
0x1fd5   :  { %4067 = vst.msk [vmem:[#allocation2] sm:$0xff] %vm171_vm1, %v4064_v62  ;;  %v4054_v15 = vadd.f32 %v6991_v11, %v4051_v12 }
0x1fd7   :  { %v4065_v16 = vadd.f32 %v8151_v57, %v4054_v15 }
0x1fd9   :  { %4068 = vst.msk [vmem:[#allocation2 + $0x8] sm:$0xff] %vm171_vm1, %v4065_v16 }
0x2034   :  { %v6476_v51 = vpop.f32.mrf.mxu0 }
0x2035   :  { %v4263_v0 = vpack.c.bf16 %v6476_v51, %v6476_v51 }
0x2036   :  { %v4248_v38 = vpop.f32.mrf.mxu0 }
0x2038   :  { %v6477_v55 = vpop.f32.mrf.mxu0 }
0x203a   :  { %v4251_v21 = vpop.f32.mrf.mxu0 }
0x203b   :  { %v4262_v31 = vpack.c.bf16 %v4251_v21, %v4248_v38 }
0x203d   :  { %6502 = vmatprep.mubr.msk.bf16.mxu0 %vm510_vm4, %v4262_v31 }
0x203e   :  { %6503 = vmatmul.mubr.msk.bf16.vlgmr.msra.gmra.mxu0 %vm510_vm4, %v4263_v0 }
0x2044   :  { %v6484_v22 = vpop.f32.mrf.mxu0 }
0x2045   :  { %v4334_v23 = vmul.f32 0.25, %v6484_v22 }
0x2046   :  { %v4318_v50 = vpop.f32.mrf.mxu0 }
0x2047   :  { %v4332_v14 = vmul.f32 0.25, %v4318_v50  ;;  %v4341_v26 = vsel %vm581_vm7, %v4334_v23, -inf }
0x2048   :  { %v6485_v19 = vpop.f32.mrf.mxu0 }
0x2049   :  { %v4335_v48 = vsel %vm574_vm6, %v4332_v14, -inf }
0x204a   :  { %4336 = vmax.xlane.f32.xlu0 %v4335_v48  ;;  %v4321_v6 = vpop.f32.mrf.mxu0 }
0x204b   :  { %v4333_v24 = vmul.f32 0.25, %v4321_v6 }
0x204d   :  { %v4338_v28 = vsel %vm574_vm6, %v4333_v24, -inf }
0x204e   :  { %4342 = vmax.xlane.f32.xlu0 %v4341_v26  ;;  %4339 = vmax.xlane.f32.xlu1 %v4338_v28 }
0x20d3   :  { %v4337_v30 = vpop.xlane.xlu0 %4336 }
0x20d4   :  { %v4344_v40 = vsub.f32 %v4332_v14, %v4337_v30 }
0x20d6   :  { %v4347_v2 = vmul.f32 1.442695, %v4344_v40 }
0x20d7   :  { %v4343_v49 = vpop.xlane.xlu0 %4342  ;;  %v4340_v58 = vpop.xlane.xlu1 %4339 }
0x20d8   :  { %6914 = vpow2.f32 %v4347_v2  ;;  %v4346_v5 = vsub.f32 %v4334_v23, %v4343_v49  ;;  %v4345_v7 = vsub.f32 %v4333_v24, %v4340_v58 }
0x20da   :  { %v4351_v27 = vmul.f32 1.442695, %v4346_v5  ;;  %v4349_v32 = vmul.f32 1.442695, %v4345_v7 }
0x20dc   :  { %6916 = vpow2.f32 %v4351_v27 }
0x20dd   :  { %6918 = vpow2.f32 %v4349_v32 }
0x20e5   :  { %v6915_v36 = vpop.eup %6914 }
0x20e6   :  { %v4353_v18 = vsel %vm574_vm6, %v6915_v36, 0.0 }
0x20e7   :  { %4354 = vadd.xlane.f32.xlu0 %v4353_v18 }
0x20e9   :  { %v6917_v13 = vpop.eup %6916 }
0x20ea   :  { %v6919_v39 = vpop.eup %6918  ;;  %v4359_v33 = vsel %vm581_vm7, %v6917_v13, 0.0 }
0x20eb   :  { %4360 = vadd.xlane.f32.xlu1 %v4359_v33  ;;  %v4356_v43 = vsel %vm574_vm6, %v6919_v39, 0.0 }
0x20ec   :  { %4357 = vadd.xlane.f32.xlu0 %v4356_v43 }
0x20fc   :  { %4370 = vrot.lane.b32.xlu1 %v8022_v44, %s7018_s5 }
0x20fe   :  { %v8172_v37 = vpop.f32.mrf.mxu0 }
0x2100   :  { %4548 = vrot.lane.b32.xlu1 %v8063_v25, %s7020_s1  ;;  %v8176_v47 = vpop.f32.mrf.mxu0 }
0x2102   :  { %4372 = vrot.lane.b32.xlu0 %v8112_v10, %s7018_s5  ;;  %v6505_v20 = vpop.f32.mrf.mxu0 }
0x2104   :  { %4546 = vrot.lane.b32.xlu1 %v8019_v34, %s7020_s1 }
0x2106   :  { %4542 = vrot.lane.b32.xlu0 %v8019_v34, %s8518_s10 }
0x2108   :  { %4544 = vrot.lane.b32.xlu1 %v8063_v25, %s8518_s10 }
0x210a   :  { %4775 = vrot.lane.b32.xlu0 %v8063_v25, %s8519_s6 }
0x210c   :  { %4773 = vrot.lane.b32.xlu1 %v8019_v34, %s8519_s6 }
0x210e   :  { %4769 = vrot.lane.b32.xlu0 %v8019_v34, %s8520_s26 }
0x2110   :  { %4771 = vrot.lane.b32.xlu1 %v8063_v25, %s8520_s26 }
0x2170   :  { %v4355_v41 = vpop.xlane.xlu0 %4354 }
0x2171   :  { %6920 = vrcp.f32 %v4355_v41 }
0x2174   :  { %v4361_v52 = vpop.xlane.xlu1 %4360 }
0x2175   :  { %v4358_v53 = vpop.xlane.xlu0 %4357  ;;  %6922 = vrcp.f32 %v4361_v52 }
0x2176   :  { %6924 = vrcp.f32 %v4358_v53 }
0x2178   :  { %v4371_v60 = vpop.permute.xlu1 %4370 }
0x2179   :  { %v4373_v54 = vpop.permute.xlu0 %4372 }
0x217a   :  { %v4382_v61 = vand.u32 %v4373_v54, %v7362_v4 }
0x217c   :  { %6486 = vmatprep.subr.bf16.mxu1 %v4382_v61  ;;  %v4549_v62 = vpop.permute.xlu1 %4548 }
0x217d   :  { %6487 = vmatpush3.bf16.msra.mxu1 %v4382_v61  ;;  %v4543_v55 = vpop.permute.xlu0 %4542  ;;  %v4560_v21 = vsel %vm510_vm4, %v4549_v62, 0 }
0x217e   :  { %6488 = vmatprep.subr.bf16.mxu1 %v4371_v60  ;;  %v6921_v46 = vpop.eup %6920 }
0x217f   :  { %v4363_v8 = vmul.f32 %v6921_v46, %v6915_v36 }
0x2180   :  { %v4547_v31 = vpop.permute.xlu1 %4546 }
0x2181   :  { %6489 = vmatpush3.bf16.msra.mxu1 %v4371_v60  ;;  %v4776_v0 = vpop.permute.xlu0 %4775 }
0x2182   :  { %v6923_v3 = vpop.eup %6922  ;;  %6494 = vmatprep.subr.bf16.mxu1 %v7999_v29  ;;  %v4787_v50 = vsel %vm510_vm4, %v4776_v0, 0 }
0x2183   :  { %v6925_v34 = vpop.eup %6924  ;;  %v4367_v25 = vmul.f32 %v6923_v3, %v6917_v13 }
0x2184   :  { %v4365_v63 = vmul.f32 %v6925_v34, %v6919_v39  ;;  %v4545_v22 = vpop.permute.xlu1 %4544 }
0x2185   :  { %v4369_v9 = vpack.c.bf16 %v4367_v25, %v4367_v25  ;;  %v4770_v14 = vpop.permute.xlu0 %4769 }
0x2186   :  { %v4368_v17 = vpack.c.bf16 %v4365_v63, %v4363_v8 }
0x2188   :  { %6490 = vmatprep.mubr.msk.bf16.mxu1 %vm574_vm6, %v4368_v17  ;;  %v4774_v19 = vpop.permute.xlu1 %4773 }
0x2189   :  { %6491 = vmatmul.mubr.msk.bf16.vlgmr.msra.gmra.mxu1 %vm574_vm6, %v4369_v9  ;;  %v4784_v23 = vsel %vm510_vm4, %v4774_v19, 0 }
0x218a   :  { %6495 = vmatpush3.bf16.msra.mxu1 %v7999_v29  ;;  %v4557_v29 = vsel %vm510_vm4, %v4547_v31, 0 }
0x218b   :  { %6590 = vmatprep.subr.msk.bf16.mxu1 %vm510_vm4, %v4549_v62 }
0x218c   :  { %v4772_v48 = vpop.permute.xlu1 %4771 }
0x2249   :  { %v6492_v12 = vpop.f32.mrf.mxu1 }
0x224a   :  { %v4433_v38 = vpack.c.bf16 %v6492_v12, %v6492_v12 }
0x224b   :  { %v4418_v11 = vpop.f32.mrf.mxu1 }
0x224d   :  { %v6493_v15 = vpop.f32.mrf.mxu1 }
0x224f   :  { %v4421_v16 = vpop.f32.mrf.mxu1 }
0x2250   :  { %v4432_v51 = vpack.c.bf16 %v4421_v16, %v4418_v11 }
0x2252   :  { %6496 = vmatprep.mubr.msk.bf16.mxu1 %vm510_vm4, %v4432_v51 }
0x2253   :  { %6497 = vmatmul.mubr.msk.bf16.vlgmr.msra.gmra.mxu1 %vm510_vm4, %v4433_v38 }
0x2254   :  { %6507 = vmatpush3.bf16.xpose.msra.mxu1 %v4560_v21  ;;  %6510 = vmatprep.mubr.msk.bf16.mxu1 %vm510_vm4, %v4543_v55 }
0x2255   :  { %6591 = vmatprep.subr.msk.bf16.mxu1 %vm510_vm4, %v4547_v31 }
0x225c   :  { %6509 = vmatpush3.bf16.xpose.msra.mxu1 %v4557_v29 }
0x225d   :  { %6592 = vmatprep.subr.msk.bf16.mxu1 %vm510_vm4, %v4776_v0 }
0x2263   :  { %6511 = vmatmul.mubr.msk.bf16.vlgmr.msra.gmra.mxu1 %vm510_vm4, %v4545_v22 }
0x2264   :  { %6529 = vmatpush3.bf16.xpose.msra.mxu1 %v4787_v50  ;;  %6532 = vmatprep.mubr.msk.bf16.mxu1 %vm510_vm4, %v4770_v14 }
0x2265   :  { %6593 = vmatprep.subr.msk.bf16.mxu1 %vm510_vm4, %v4774_v19 }
0x226c   :  { %6531 = vmatpush3.bf16.xpose.msra.mxu1 %v4784_v23 }
0x2273   :  { %6533 = vmatmul.mubr.msk.bf16.vlgmr.msra.gmra.mxu1 %vm510_vm4, %v4772_v48 }
0x2274   :  { %5225 = vmatprep.mubr.bf16.mxu1 %v7016_v56 }
0x2313   :  { %v8214_v6 = vpop.f32.mrf.mxu1 }
0x2315   :  { %v8216_v24 = vpop.f32.mrf.mxu1 }
0x2317   :  { %v6499_v26 = vpop.f32.mrf.mxu1 }
0x2319   :  { %v8218_v28 = vpop.f32.mrf.mxu1 }
0x2323   :  { %v6512_v30 = vpop.f32.mrf.mxu1 }
0x2324   :  { %v4612_v58 = vmul.f32 0.25, %v6512_v30 }
0x2325   :  { %v4596_v40 = vpop.f32.mrf.mxu1 }
0x2326   :  { %v4610_v2 = vmul.f32 0.25, %v4596_v40  ;;  %v4619_v32 = vsel %vm581_vm7, %v4612_v58, -inf }
0x2327   :  { %v6513_v49 = vpop.f32.mrf.mxu1 }
0x2328   :  { %v4613_v5 = vsel %vm574_vm6, %v4610_v2, -inf }
0x2329   :  { %4614 = vmax.xlane.f32.xlu0 %v4613_v5  ;;  %v4599_v7 = vpop.f32.mrf.mxu1 }
0x232a   :  { %v4611_v27 = vmul.f32 0.25, %v4599_v7 }
0x232c   :  { %v4616_v36 = vsel %vm574_vm6, %v4611_v27, -inf }
0x232d   :  { %4620 = vmax.xlane.f32.xlu0 %v4619_v32  ;;  %4617 = vmax.xlane.f32.xlu1 %v4616_v36 }
0x2333   :  { %v6534_v18 = vpop.f32.mrf.mxu1 }
0x2334   :  { %v4839_v11 = vmul.f32 0.25, %v6534_v18 }
0x2335   :  { %v4823_v13 = vpop.f32.mrf.mxu1 }
0x2336   :  { %v4837_v17 = vmul.f32 0.25, %v4823_v13  ;;  %v4846_v16 = vsel %vm581_vm7, %v4839_v11, -inf }
0x2337   :  { %v6535_v39 = vpop.f32.mrf.mxu1 }
0x2338   :  { %v4840_v12 = vsel %vm574_vm6, %v4837_v17, -inf }
0x2339   :  { %v4826_v9 = vpop.f32.mrf.mxu1 }
0x233a   :  { %v4838_v62 = vmul.f32 0.25, %v4826_v9 }
0x233c   :  { %v4843_v15 = vsel %vm574_vm6, %v4838_v62, -inf }
0x23b2   :  { %v4615_v33 = vpop.xlane.xlu0 %4614 }
0x23b3   :  { %v4622_v43 = vsub.f32 %v4610_v2, %v4615_v33 }
0x23b5   :  { %v4625_v20 = vmul.f32 1.442695, %v4622_v43  ;;  %v8245_v43 = vld [vmem:[#allocation2 + $0x8] sm:$0xff] }
0x23b6   :  { %v4621_v41 = vpop.xlane.xlu0 %4620  ;;  %v4618_v52 = vpop.xlane.xlu1 %4617 }
0x23b7   :  { %6926 = vpow2.f32 %v4625_v20  ;;  %v4624_v53 = vsub.f32 %v4612_v58, %v4621_v41  ;;  %v4623_v54 = vsub.f32 %v4611_v27, %v4618_v52  ;;  %v5035_v20 = vsel %vm171_vm1, %v8245_v43, 0.0  ;;  %v8249_v41 = vld [vmem:[#allocation2] sm:$0xff] }
0x23b8   :  { %v5032_v52 = vsel %vm171_vm1, %v8249_v41, 0.0 }
0x23b9   :  { %v4629_v61 = vmul.f32 1.442695, %v4624_v53  ;;  %v4627_v60 = vmul.f32 1.442695, %v4623_v54  ;;  %v4531_v53 = vpop.f32.mrf.mxu0 }
0x23bb   :  { %6928 = vpow2.f32 %v4629_v61 }
0x23bc   :  { %6930 = vpow2.f32 %v4627_v60 }
0x23c4   :  { %v6927_v46 = vpop.eup %6926 }
0x23c5   :  { %v4631_v3 = vsel %vm574_vm6, %v6927_v46, 0.0 }
0x23c6   :  { %4632 = vadd.xlane.f32.xlu0 %v4631_v3 }
0x23c8   :  { %v6929_v34 = vpop.eup %6928 }
0x23c9   :  { %v6931_v25 = vpop.eup %6930  ;;  %v4637_v8 = vsel %vm581_vm7, %v6929_v34, 0.0 }
0x23ca   :  { %4638 = vadd.xlane.f32.xlu1 %v4637_v8  ;;  %v4634_v63 = vsel %vm574_vm6, %v6931_v25, 0.0 }
0x23cb   :  { %4635 = vadd.xlane.f32.xlu0 %v4634_v63 }
0x23db   :  { %4648 = vrot.lane.b32.xlu1 %v8022_v44, %s8518_s10 }
0x23e1   :  { %4650 = vrot.lane.b32.xlu0 %v8112_v10, %s8518_s10 }
0x23ff   :  { %4841 = vmax.xlane.f32.xlu1 %v4840_v12 }
0x2400   :  { %4844 = vmax.xlane.f32.xlu0 %v4843_v15 }
0x2404   :  { %4847 = vmax.xlane.f32.xlu0 %v4846_v16 }
0x244f   :  { %v4633_v51 = vpop.xlane.xlu0 %4632 }
0x2450   :  { %6932 = vrcp.f32 %v4633_v51 }
0x2453   :  { %v4639_v38 = vpop.xlane.xlu1 %4638 }
0x2454   :  { %v4636_v55 = vpop.xlane.xlu0 %4635  ;;  %6934 = vrcp.f32 %v4639_v38  ;;  %v4537_v38 = vadd.f32 %v8172_v37, %v8214_v6 }
0x2455   :  { %6936 = vrcp.f32 %v4636_v55 }
0x2457   :  { %v4649_v29 = vpop.permute.xlu1 %4648 }
0x2458   :  { %v4651_v21 = vpop.permute.xlu0 %4650 }
0x2459   :  { %v4660_v31 = vand.u32 %v4651_v21, %v7362_v4  ;;  %v4529_v21 = vadd.f32 %v8176_v47, %v8216_v24 }
0x245b   :  { %6514 = vmatprep.subr.bf16.mxu0 %v4660_v31 }
0x245c   :  { %6515 = vmatpush3.bf16.msra.mxu0 %v4660_v31 }
0x245d   :  { %6516 = vmatprep.subr.bf16.mxu0 %v4649_v29  ;;  %v6933_v0 = vpop.eup %6932 }
0x245e   :  { %v4641_v19 = vmul.f32 %v6933_v0, %v6927_v46 }
0x2460   :  { %6517 = vmatpush3.bf16.msra.mxu0 %v4649_v29 }
0x2461   :  { %v6935_v22 = vpop.eup %6934  ;;  %6522 = vmatprep.subr.bf16.mxu0 %v8089_v35 }
0x2462   :  { %v6937_v50 = vpop.eup %6936  ;;  %v4645_v14 = vmul.f32 %v6935_v22, %v6929_v34 }
0x2463   :  { %v4643_v23 = vmul.f32 %v6937_v50, %v6931_v25  ;;  %v4532_v50 = vadd.f32 %v4531_v53, %v8218_v28 }
0x2464   :  { %v4647_v48 = vpack.c.bf16 %v4645_v14, %v4645_v14 }
0x2465   :  { %v4646_v26 = vpack.c.bf16 %v4643_v23, %v4641_v19 }
0x2467   :  { %6518 = vmatprep.mubr.msk.bf16.mxu0 %vm574_vm6, %v4646_v26 }
0x2468   :  { %6519 = vmatmul.mubr.msk.bf16.vlgmr.msra.gmra.mxu0 %vm574_vm6, %v4647_v48 }
0x2469   :  { %6523 = vmatpush3.bf16.msra.mxu0 %v8089_v35 }
0x2488   :  { %v4842_v40 = vpop.xlane.xlu1 %4841 }
0x2489   :  { %v4845_v30 = vpop.xlane.xlu0 %4844  ;;  %v4849_v58 = vsub.f32 %v4837_v17, %v4842_v40 }
0x248a   :  { %v4850_v2 = vsub.f32 %v4838_v62, %v4845_v30 }
0x248b   :  { %v4852_v27 = vmul.f32 1.442695, %v4849_v58 }
0x248c   :  { %v4854_v49 = vmul.f32 1.442695, %v4850_v2 }
0x248d   :  { %v4848_v5 = vpop.xlane.xlu0 %4847 }
0x248e   :  { %6938 = vpow2.f32 %v4854_v49  ;;  %v4851_v7 = vsub.f32 %v4839_v11, %v4848_v5 }
0x2490   :  { %v4856_v32 = vmul.f32 1.442695, %v4851_v7 }
0x2492   :  { %6940 = vpow2.f32 %v4856_v32 }
0x2493   :  { %6942 = vpow2.f32 %v4852_v27 }
0x249b   :  { %v6939_v36 = vpop.eup %6938 }
0x249c   :  { %v4861_v18 = vsel %vm574_vm6, %v6939_v36, 0.0 }
0x249d   :  { %4862 = vadd.xlane.f32.xlu0 %v4861_v18 }
0x249f   :  { %v6941_v13 = vpop.eup %6940 }
0x24a0   :  { %v4864_v39 = vsel %vm581_vm7, %v6941_v13, 0.0  ;;  %v6943_v35 = vpop.eup %6942 }
0x24a1   :  { %4865 = vadd.xlane.f32.xlu1 %v4864_v39  ;;  %v4858_v33 = vsel %vm574_vm6, %v6943_v35, 0.0 }
0x24a5   :  { %4859 = vadd.xlane.f32.xlu1 %v4858_v33 }
0x24b3   :  { %4877 = vrot.lane.b32.xlu0 %v8112_v10, %s8520_s26 }
0x24b6   :  { %4875 = vrot.lane.b32.xlu1 %v8022_v44, %s8520_s26 }
0x24d2   :  { %5036 = vadd.xlane.f32.xlu0 %v5035_v20  ;;  %v6993_v20 = vld [vmem:[#allocation2 + $0x20] sm:$0x3] }
0x24da   :  { %5033 = vadd.xlane.f32.xlu1 %v5032_v52 }
0x2526   :  { %v4863_v54 = vpop.xlane.xlu0 %4862 }
0x2528   :  { %v6520_v61 = vpop.f32.mrf.mxu0 }
0x2529   :  { %v4711_v63 = vpack.c.bf16 %v6520_v61, %v6520_v61 }
0x252a   :  { %v4878_v60 = vpop.permute.xlu0 %4877  ;;  %v4696_v10 = vpop.f32.mrf.mxu0 }
0x252b   :  { %v4887_v46 = vand.u32 %v4878_v60, %v7362_v4  ;;  %v4866_v44 = vpop.xlane.xlu1 %4865 }
0x252c   :  { %v6521_v3 = vpop.f32.mrf.mxu0  ;;  %6944 = vrcp.f32 %v4866_v44 }
0x252d   :  { %6536 = vmatprep.subr.bf16.mxu0 %v4887_v46  ;;  %6946 = vrcp.f32 %v4863_v54 }
0x252e   :  { %v4699_v34 = vpop.f32.mrf.mxu0 }
0x252f   :  { %v4710_v25 = vpack.c.bf16 %v4699_v34, %v4696_v10  ;;  %v4860_v8 = vpop.xlane.xlu1 %4859 }
0x2530   :  { %6948 = vrcp.f32 %v4860_v8 }
0x2531   :  { %6524 = vmatprep.mubr.msk.bf16.mxu0 %vm510_vm4, %v4710_v25 }
0x2532   :  { %6525 = vmatmul.mubr.msk.bf16.vlgmr.msra.gmra.mxu0 %vm510_vm4, %v4711_v63 }
0x2533   :  { %6537 = vmatpush3.bf16.msra.mxu0 %v4887_v46  ;;  %v4876_v9 = vpop.permute.xlu1 %4875 }
0x2534   :  { %6538 = vmatprep.subr.bf16.mxu0 %v4876_v9 }
0x2537   :  { %6539 = vmatpush3.bf16.msra.mxu0 %v4876_v9  ;;  %v6670_v9 = vld [vmem:[%s8482_s15 + $0x74] ss:$8 sps:$4 sm:$0xff]  }
0x2538   :  { %6544 = vmatprep.subr.bf16.mxu0 %v8107_v45  ;;  %5201 = vmatprep.subr.bf16.mxu1 %v6670_v9 }
0x2539   :  { %v6945_v4 = vpop.eup %6944 }
0x253a   :  { %v6947_v17 = vpop.eup %6946  ;;  %v4872_v12 = vmul.f32 %v6945_v4, %v6941_v13  ;;  %v6668_v4 = vld [vmem:[%s8482_s15 + $0x70] ss:$8 sps:$4 sm:$0xff]  }
0x253b   :  { %v4870_v15 = vmul.f32 %v6947_v17, %v6939_v36  ;;  %5202 = vmatpush1.bf16.msra.mxu1 %v6668_v4  ;;  %v6673_v17 = vld [vmem:[%s8482_s15 + $0x64] ss:$8 sps:$4 sm:$0xff]  }
0x253c   :  { %v4874_v51 = vpack.c.bf16 %v4872_v12, %v4872_v12  ;;  %5203 = vmatprep.subr.bf16.mxu1 %v6673_v17  ;;  %v6676_v12 = vld [vmem:[%s8482_s15 + $0x54] ss:$8 sps:$4 sm:$0xff]  }
0x253d   :  { %v6949_v62 = vpop.eup %6948 }
0x253e   :  { %v4868_v11 = vmul.f32 %v6949_v62, %v6943_v35  ;;  %v6992_v35 = vld [vmem:[#allocation2 + $0x18] sm:$0xff]  ;;  %v6671_v62 = vld [vmem:[%s8482_s15 + $0x60] ss:$8 sps:$4 sm:$0xff]  }
0x253f   :  { %5204 = vmatpush1.bf16.msra.mxu1 %v6671_v62 }
0x2540   :  { %v4873_v16 = vpack.c.bf16 %v4870_v15, %v4868_v11  ;;  %v6674_v11 = vld [vmem:[%s8482_s15 + $0x50] ss:$8 sps:$4 sm:$0xff]   ;;  %5205 = vmatprep.subr.bf16.mxu1 %v6676_v12  ;;  %v6677_v15 = vld [vmem:[%s8482_s15 + $0x40] ss:$8 sps:$4 sm:$0xff]  }
0x2542   :  { %6540 = vmatprep.mubr.msk.bf16.mxu0 %vm574_vm6, %v4873_v16  ;;  %v6679_v16 = vld [vmem:[%s8482_s15 + $0x44] ss:$8 sps:$4 sm:$0xff]  }
0x2543   :  { %6541 = vmatmul.mubr.msk.bf16.vlgmr.msra.gmra.mxu0 %vm574_vm6, %v4874_v51  ;;  %5206 = vmatpush1.bf16.msra.mxu1 %v6674_v11 }
0x2544   :  { %6545 = vmatpush3.bf16.msra.mxu0 %v8107_v45  ;;  %5207 = vmatprep.subr.bf16.mxu1 %v6679_v16 }
0x2547   :  { %5208 = vmatpush1.bf16.msra.mxu1 %v6677_v15 }
0x255b   :  { %v5037_v53 = vpop.xlane.xlu0 %5036 }
0x255c   :  { %v5048_v60 = vmul.f32 0.015625, %v5037_v53  ;;  %v6688_v53 = vld [vmem:[%s8484_s17 + $0xd8] sm:$0xff]  }
0x255e   :  { %v5053_v3 = vsub.f32 %v8245_v43, %v5048_v60  ;;  %v6692_v60 = vld [vmem:[%s8484_s17 + $0xc8] sm:$0xff]  }
0x2560   :  { %v5058_v8 = vmul.f32 %v5053_v3, %v5053_v3 }
0x2562   :  { %v5065_v63 = vsel %vm171_vm1, %v5058_v8, 0.0 }
0x2563   :  { %v5034_v7 = vpop.xlane.xlu1 %5033 }
0x2564   :  { %v5047_v18 = vmul.f32 0.015625, %v5034_v7 }
0x2566   :  { %v5052_v61 = vsub.f32 %v8249_v41, %v5047_v18  ;;  %v6681_v18 = vld [vmem:[%s8484_s17 + $0xb8] sm:$0xff]  }
0x2568   :  { %v5057_v44 = vmul.f32 %v5052_v61, %v5052_v61 }
0x256a   :  { %v5062_v34 = vsel %vm171_vm1, %v5057_v44, 0.0  ;;  %v6694_v44 = vld [vmem:[%s8484_s17 + $0xc0] sm:$0xff]  }
0x25f2   :  { %v6526_v55 = vpop.f32.mrf.mxu0 }
0x25f3   :  { %v4768_v31 = vadd.f32 %v6526_v55, %v4537_v38 }
0x25f4   :  { %v4752_v29 = vpop.f32.mrf.mxu0 }
0x25f5   :  { %v4766_v0 = vadd.f32 %v4752_v29, %v4529_v21 }
0x25f6   :  { %v6527_v22 = vpop.f32.mrf.mxu0 }
0x25f8   :  { %v4755_v14 = vpop.f32.mrf.mxu0 }
0x25f9   :  { %v4767_v19 = vadd.f32 %v4755_v14, %v4532_v50 }
0x2603   :  { %v6542_v23 = vpop.f32.mrf.mxu0 }
0x2604   :  { %v4938_v40 = vpack.c.bf16 %v6542_v23, %v6542_v23 }
0x2605   :  { %v4923_v48 = vpop.f32.mrf.mxu0 }
0x2607   :  { %v6543_v26 = vpop.f32.mrf.mxu0 }
0x2609   :  { %v4926_v30 = vpop.f32.mrf.mxu0 }
0x260a   :  { %v4937_v45 = vpack.c.bf16 %v4926_v30, %v4923_v48 }
0x260c   :  { %6546 = vmatprep.mubr.msk.bf16.mxu0 %vm510_vm4, %v4937_v45 }
0x260d   :  { %6547 = vmatmul.mubr.msk.bf16.vlgmr.msra.gmra.mxu0 %vm510_vm4, %v4938_v40 }
0x26cd   :  { %v6548_v37 = vpop.f32.mrf.mxu0 }
0x26ce   :  { %v4995_v2 = vadd.f32 %v6548_v37, %v4768_v31 }
0x26cf   :  { %v4979_v47 = vpop.f32.mrf.mxu0 }
0x26d0   :  { %v4993_v6 = vadd.f32 %v4979_v47, %v4766_v0  ;;  %v5002_v27 = vrot.slane %v4995_v2, 7 }
0x26d1   :  { %v6549_v24 = vpop.f32.mrf.mxu0 }
0x26d2   :  { %v4999_v49 = vrot.slane %v4993_v6, 7  ;;  %v8331_v24 = vld [vmem:[%s8480_s13 + $0x1] ss:$0 sm:$0xff] }
0x26d3   :  { %v4982_v58 = vpop.f32.mrf.mxu0 }
0x26d4   :  { %v5007_v28 = vadd.f32 %v8153_v59, %v4999_v49  ;;  %v4994_v5 = vadd.f32 %v4982_v58, %v4767_v19 }
0x26d6   :  { %v5017_v32 = vadd.f32 %v8151_v57, %v5007_v28  ;;  %v5000_v36 = vrot.slane %v4994_v5, 7  ;;  %v8337_v28 = vld [vmem:[%s8481_s14 + $0x1] ss:$0 sm:$0xff] }
0x26d8   :  { %5020 = vst.msk [vmem:[#allocation2 + $0x10] sm:$0xfe] %vm2400_vm9, %v5017_v32  ;;  %v5001_v13 = vsel %vm619_vm8, %v4999_v49, %v5000_v36  ;;  %v5003_v39 = vsel %vm619_vm8, %v5000_v36, %v5002_v27  ;;  %v6680_v36 = vld [vmem:[%s8484_s17 + $0xf8] sm:$0xff]  }
0x26d9   :  { %v5008_v33 = vadd.f32 %v6992_v35, %v5001_v13  ;;  %v5009_v52 = vadd.f32 %v6993_v20, %v5003_v39  ;;  %6149 = vmatprep.subr.bf16.mxu0 %v6680_v36  ;;  %v6682_v13 = vld [vmem:[%s8484_s17 + $0xf0] sm:$0xff]   ;;  %v6684_v35 = vld [vmem:[%s8484_s17 + $0xe8] sm:$0xff]   ;;  %v6686_v20 = vld [vmem:[%s8484_s17 + $0xe0] sm:$0xff]  }
0x26da   :  { %6150 = vmatpush3.bf16.msra.mxu0 %v6681_v18  ;;  %v6683_v39 = vld [vmem:[%s8484_s17 + $0xb0] sm:$0xff]  }
0x26db   :  { %v5018_v59 = vadd.f32 %v8151_v57, %v5008_v33  ;;  %v5019_v54 = vadd.f32 %v8151_v57, %v5009_v52  ;;  %6151 = vmatprep.subr.bf16.mxu0 %v6682_v13  ;;  %v6685_v33 = vld [vmem:[%s8484_s17 + $0xa8] sm:$0xff]   ;;  %v6687_v52 = vld [vmem:[%s8484_s17 + $0xa0] sm:$0xff]  }
0x26dd   :  { %5021 = vst.msk [vmem:[#allocation2 + $0x18] sm:$0xff] %vm171_vm1, %v5018_v59  ;;  %v6689_v59 = vld [vmem:[%s8484_s17 + $0x98] sm:$0xff]  }
0x26de   :  { %5022 = vst.msk [vmem:[#allocation2 + $0x20] sm:$0x3] %vm285_vm3, %v5019_v54  ;;  %6152 = vmatpush3.bf16.msra.mxu0 %v6683_v39  ;;  %v6690_v54 = vld [vmem:[%s8484_s17 + $0xd0] sm:$0xff]  }
0x26df   :  { %v8277_v10 = vld [vmem:[#allocation2 + $0x10] sm:$0xff]  ;;  %6153 = vmatprep.subr.bf16.mxu0 %v6684_v35 }
0x26e0   :  { %v5038_v46 = vsel %vm171_vm1, %v8277_v10, 0.0 }
0x26e1   :  { %5039 = vadd.xlane.f32.xlu0 %v5038_v46  ;;  %v6693_v46 = vld [vmem:[%s8484_s17 + $0x88] sm:$0xff]  }
0x26e2   :  { %6154 = vmatpush3.bf16.msra.mxu0 %v6685_v33 }
0x26e3   :  { %6155 = vmatprep.subr.bf16.mxu0 %v6686_v20 }
0x26e4   :  { %v8283_v25 = vld [vmem:[#allocation2 + $0x18] sm:$0xff] }
0x26e5   :  { %5063 = vadd.xlane.f32.xlu0 %v5062_v34  ;;  %v5041_v57 = vsel %vm171_vm1, %v8283_v25, 0.0  ;;  %v8321_v23 = vld [vmem:[#allocation2 + $0x20] sm:$0x3] }
0x26e6   :  { %5042 = vadd.xlane.f32.xlu1 %v5041_v57  ;;  %v5044_v45 = vsel %vm285_vm3, %v8321_v23, 0.0  ;;  %6156 = vmatpush3.bf16.msra.mxu0 %v6687_v52 }
0x26e7   :  { %6157 = vmatprep.subr.bf16.mxu0 %v6688_v53 }
0x26ea   :  { %5066 = vadd.xlane.f32.xlu1 %v5065_v63  ;;  %6158 = vmatpush3.bf16.msra.mxu0 %v6689_v59 }
0x26eb   :  { %6159 = vmatprep.subr.bf16.mxu0 %v6690_v54 }
0x276a   :  { %v5040_v51 = vpop.xlane.xlu0 %5039 }
0x276b   :  { %v5049_v38 = vmul.f32 0.015625, %v5040_v51 }
0x276d   :  { %v8313_v55 = vsub.f32 %v8277_v10, %v5049_v38 }
0x276e   :  { %v5064_v21 = vpop.xlane.xlu0 %5063 }
0x276f   :  { %v5077_v31 = vmul.f32 0.015625, %v5064_v21  ;;  %v5043_v29 = vpop.xlane.xlu1 %5042  ;;  %v5059_v0 = vmul.f32 %v8313_v55, %v8313_v55 }
0x2770   :  { %v5050_v22 = vmul.f32 0.015625, %v5043_v29 }
0x2771   :  { %v5082_v50 = vadd.f32 1e-05, %v5077_v31  ;;  %v5068_v14 = vsel %vm171_vm1, %v5059_v0, 0.0 }
0x2772   :  { %v8319_v19 = vsub.f32 %v8283_v25, %v5050_v22  ;;  %5069 = vadd.xlane.f32.xlu0 %v5068_v14 }
0x2773   :  { %6950 = vrsqrt.f32 %v5082_v50  ;;  %v5067_v48 = vpop.xlane.xlu1 %5066 }
0x2774   :  { %v5078_v26 = vmul.f32 0.015625, %v5067_v48  ;;  %v5060_v30 = vmul.f32 %v8319_v19, %v8319_v19 }
0x2776   :  { %v5083_v40 = vadd.f32 1e-05, %v5078_v26  ;;  %5045 = vadd.xlane.f32.xlu0 %v5044_v45  ;;  %v5071_v37 = vsel %vm171_vm1, %v5060_v30, 0.0 }
0x2777   :  { %5072 = vadd.xlane.f32.xlu1 %v5071_v37 }
0x2778   :  { %6952 = vrsqrt.f32 %v5083_v40 }
0x2780   :  { %v6951_v47 = vpop.eup %6950 }
0x2781   :  { %v5092_v6 = vmul.f32 %v6951_v47, %v5052_v61  ;;  %v6691_v61 = vld [vmem:[%s8484_s17 + $0x90] sm:$0xff]  }
0x2782   :  { %6160 = vmatpush3.bf16.msra.mxu0 %v6691_v61 }
0x2783   :  { %v5103_v49 = vmul.f32 %v8331_v24, %v5092_v6  ;;  %6161 = vmatprep.subr.bf16.mxu0 %v6692_v60 }
0x2785   :  { %v6953_v2 = vpop.eup %6952  ;;  %v5114_v7 = vadd.f32 %v8337_v28, %v5103_v49 }
0x2786   :  { %v5093_v58 = vmul.f32 %v6953_v2, %v5053_v3  ;;  %6162 = vmatpush3.bf16.msra.mxu0 %v6693_v46  ;;  %v6695_v3 = vld [vmem:[%s8484_s17 + $0x80] sm:$0xff]  }
0x2787   :  { %6163 = vmatprep.subr.bf16.mxu0 %v6694_v44 }
0x2788   :  { %v5104_v5 = vmul.f32 %v8331_v24, %v5093_v58 }
0x278a   :  { %v5115_v27 = vadd.f32 %v8337_v28, %v5104_v5  ;;  %6164 = vmatpush3.bf16.msra.mxu0 %v6695_v3 }
0x278c   :  { %v5119_v32 = vpack.c.bf16 %v5115_v27, %v5114_v7 }
0x278e   :  { %5873 = vmatmul.mubr.msk.bf16.vlgmr.msra.gmra.mxu1 %vm171_vm1, %v5119_v32 }
0x278f   :  { %5235 = vmatprep.mubr.bf16.mxu1 %v7016_v56 }
0x27fb   :  { %v5070_v34 = vpop.xlane.xlu0 %5069 }
0x27fc   :  { %v5079_v57 = vmul.f32 0.015625, %v5070_v34 }
0x27fe   :  { %v5084_v8 = vadd.f32 1e-05, %v5079_v57 }
0x27ff   :  { %v5046_v63 = vpop.xlane.xlu0 %5045 }
0x2800   :  { %6954 = vrsqrt.f32 %v5084_v8  ;;  %v5051_v9 = vmul.f32 0.015625, %v5046_v63  ;;  %v5073_v4 = vpop.xlane.xlu1 %5072 }
0x2801   :  { %v5080_v17 = vmul.f32 0.015625, %v5073_v4 }
0x2802   :  { %v5056_v62 = vsub.f32 %v8321_v23, %v5051_v9 }
0x2803   :  { %v5085_v12 = vadd.f32 1e-05, %v5080_v17 }
0x2804   :  { %v5061_v11 = vmul.f32 %v5056_v62, %v5056_v62 }
0x2805   :  { %6956 = vrsqrt.f32 %v5085_v12 }
0x2806   :  { %v5074_v15 = vsel %vm285_vm3, %v5061_v11, 0.0 }
0x2807   :  { %5075 = vadd.xlane.f32.xlu1 %v5074_v15 }
0x280d   :  { %v6955_v16 = vpop.eup %6954 }
0x280e   :  { %v5094_v51 = vmul.f32 %v6955_v16, %v8313_v55  ;;  %v5864_v55 = vld [vmem:[%s8483_s16 + $0x2] sm:$0x3] }
0x280f   :  { %v8406_v14 = vrot.slane %v5864_v55, %v7275_v42 }
0x2810   :  { %v5105_v31 = vmul.f32 %v8331_v24, %v5094_v51 }
0x2812   :  { %v6957_v38 = vpop.eup %6956  ;;  %v5116_v0 = vadd.f32 %v8337_v28, %v5105_v31 }
0x2813   :  { %v5095_v21 = vmul.f32 %v6957_v38, %v8319_v19  ;;  %v8409_v19 = vrot.slane %v5864_v55, %v7304_v1 }
0x2815   :  { %v5106_v29 = vmul.f32 %v8331_v24, %v5095_v21 }
0x2817   :  { %v5117_v22 = vadd.f32 %v8337_v28, %v5106_v29 }
0x2819   :  { %v5120_v50 = vpack.c.bf16 %v5117_v22, %v5116_v0 }
0x281b   :  { %5874 = vmatmul.mubr.msk.bf16.gmra.mxu1 %vm171_vm1, %v5120_v50 }
0x281c   :  { %5245 = vmatprep.mubr.bf16.mxu1 %v7016_v56 }
0x284e   :  { %v5227_v48 = vpop.f32.mrf.mxu1 }
0x284f   :  { %v5228_v26 = vadd.f32 %v5227_v48, %v8406_v14 }
0x2850   :  { %v5229_v30 = vpop.f32.mrf.mxu1 }
0x2851   :  { %v5230_v45 = vadd.f32 %v5229_v30, %v8409_v19  ;;  %v5264_v40 = vmul.f32 0.70710677, %v5228_v26  ;;  %v5254_v33 = vmul.f32 0.5, %v5228_v26 }
0x2852   :  { %v5231_v37 = vpop.f32.mrf.mxu1 }
0x2853   :  { %v5265_v47 = vmul.f32 0.70710677, %v5230_v45  ;;  %v5232_v56 = vadd.f32 %v5231_v37, %v8406_v14  ;;  %v5255_v13 = vmul.f32 0.5, %v5230_v45 }
0x2854   :  { %v5233_v6 = vpop.f32.mrf.mxu1 }
0x2855   :  { %6958 = verf.f32 %v5265_v47  ;;  %v5266_v2 = vmul.f32 0.70710677, %v5232_v56  ;;  %v5234_v42 = vadd.f32 %v5233_v6, %v8409_v19  ;;  %v5256_v18 = vmul.f32 0.5, %v5232_v56 }
0x2856   :  { %6960 = verf.f32 %v5264_v40 }
0x2857   :  { %6962 = verf.f32 %v5266_v2  ;;  %v5267_v1 = vmul.f32 0.70710677, %v5234_v42  ;;  %v5257_v39 = vmul.f32 0.5, %v5234_v42 }
0x2859   :  { %6964 = verf.f32 %v5267_v1 }
0x2862   :  { %v6959_v49 = vpop.eup %6958 }
0x2863   :  { %v6961_v58 = vpop.eup %6960  ;;  %v5285_v7 = vadd.f32 1.0, %v6959_v49  ;;  %v5909_v49 = vld [vmem:[%s8485_s18 + $0x1] ss:$0 sm:$0xff] }
0x2864   :  { %v6963_v5 = vpop.eup %6962  ;;  %v5284_v36 = vadd.f32 1.0, %v6961_v58 }
0x2865   :  { %v5286_v27 = vadd.f32 1.0, %v6963_v5  ;;  %v5295_v52 = vmul.f32 %v5285_v7, %v5255_v13 }
0x2866   :  { %v6965_v32 = vpop.eup %6964  ;;  %v5294_v59 = vmul.f32 %v5284_v36, %v5254_v33 }
0x2867   :  { %v5287_v35 = vadd.f32 1.0, %v6965_v32  ;;  %v5296_v20 = vmul.f32 %v5286_v27, %v5256_v18 }
0x2869   :  { %v5297_v53 = vmul.f32 %v5287_v35, %v5257_v39  ;;  %v5304_v61 = vpack.c.bf16 %v5296_v20, %v5294_v59 }
0x286b   :  { %v5305_v54 = vpack.c.bf16 %v5297_v53, %v5295_v52 }
0x286d   :  { %5479 = vmatprep.mubr.bf16.mxu0 %v5305_v54 }
0x286e   :  { %5480 = vmatmul.mubr.bf16.vlgmr.msra.gmra.mxu0 %v5304_v61 }
0x2890   :  { %v5076_v60 = vpop.xlane.xlu1 %5075 }
0x2891   :  { %v5081_v46 = vmul.f32 0.015625, %v5076_v60 }
0x2893   :  { %v5086_v44 = vadd.f32 1e-05, %v5081_v46 }
0x2895   :  { %6966 = vrsqrt.f32 %v5086_v44 }
0x28a2   :  { %v6967_v3 = vpop.eup %6966 }
0x28a3   :  { %v5096_v34 = vmul.f32 %v6967_v3, %v5056_v62 }
0x28a5   :  { %v5107_v57 = vmul.f32 %v8331_v24, %v5096_v34 }
0x28a7   :  { %v5118_v8 = vadd.f32 %v8337_v28, %v5107_v57 }
0x28a9   :  { %v5121_v63 = vpack.c.bf16 %v5118_v8, %v5118_v8 }
0x28ab   :  { %5875 = vmatmul.mubr.msk.bf16.gmra.mxu1 %vm171_vm1, %v5121_v63 }
0x28db   :  { %v5237_v9 = vpop.f32.mrf.mxu1 }
0x28dc   :  { %v5238_v4 = vadd.f32 %v5237_v9, %v8406_v14 }
0x28dd   :  { %v5239_v17 = vpop.f32.mrf.mxu1 }
0x28de   :  { %v5240_v12 = vadd.f32 %v5239_v17, %v8409_v19  ;;  %v5268_v11 = vmul.f32 0.70710677, %v5238_v4  ;;  %v5258_v40 = vmul.f32 0.5, %v5238_v4 }
0x28df   :  { %v5241_v15 = vpop.f32.mrf.mxu1 }
0x28e0   :  { %v5269_v16 = vmul.f32 0.70710677, %v5240_v12  ;;  %v5242_v51 = vadd.f32 %v5241_v15, %v8406_v14  ;;  %v5259_v26 = vmul.f32 0.5, %v5240_v12 }
0x28e1   :  { %v5243_v38 = vpop.f32.mrf.mxu1 }
0x28e2   :  { %6968 = verf.f32 %v5269_v16  ;;  %v5270_v62 = vmul.f32 0.70710677, %v5242_v51  ;;  %v5244_v24 = vadd.f32 %v5243_v38, %v8409_v19  ;;  %v5260_v48 = vmul.f32 0.5, %v5242_v51 }
0x28e3   :  { %6970 = verf.f32 %v5268_v11 }
0x28e4   :  { %6972 = verf.f32 %v5270_v62  ;;  %v5271_v28 = vmul.f32 0.70710677, %v5244_v24  ;;  %v5261_v30 = vmul.f32 0.5, %v5244_v24 }
0x28e6   :  { %6974 = verf.f32 %v5271_v28 }
0x28ef   :  { %v6969_v21 = vpop.eup %6968 }
0x28f0   :  { %v6971_v31 = vpop.eup %6970  ;;  %v5289_v0 = vadd.f32 1.0, %v6969_v21 }
0x28f1   :  { %v6973_v29 = vpop.eup %6972  ;;  %v5288_v55 = vadd.f32 1.0, %v6971_v31 }
0x28f2   :  { %v5290_v22 = vadd.f32 1.0, %v6973_v29  ;;  %v5299_v47 = vmul.f32 %v5289_v0, %v5259_v26 }
0x28f3   :  { %v6975_v50 = vpop.eup %6974  ;;  %v5298_v6 = vmul.f32 %v5288_v55, %v5258_v40 }
0x28f4   :  { %v5291_v45 = vadd.f32 1.0, %v6975_v50  ;;  %v5300_v37 = vmul.f32 %v5290_v22, %v5260_v48 }
0x28f6   :  { %v5301_v56 = vmul.f32 %v5291_v45, %v5261_v30  ;;  %v5306_v42 = vpack.c.bf16 %v5300_v37, %v5298_v6  ;;  %v6696_v6 = vld [vmem:[%s8488_s21 + $0x18] sm:$0xff]  }
0x28f8   :  { %v5307_v2 = vpack.c.bf16 %v5301_v56, %v5299_v47 }
0x28fa   :  { %5487 = vmatprep.mubr.bf16.mxu0 %v5307_v2  ;;  %v7024_v2 = vmov 0.0  }
0x28fb   :  { %5488 = vmatmul.mubr.bf16.gmra.mxu0 %v5306_v42  ;;  %6550 = vmatprep.subr.bf16.mxu1 %v7024_v2  ;;  %v6698_v42 = vld [vmem:[%s8488_s21 + $0x8] sm:$0xff]  }
0x28fc   :  { %6551 = vmatpush3.bf16.msra.mxu1 %v6696_v6  ;;  %6558 = vmatprep.mubr.msk.bf16.mxu1 %vm7025_vm10, %v7024_v2 }
0x28fd   :  { %6552 = vmatprep.subr.bf16.mxu1 %v7024_v2 }
0x292e   :  { %v6165_v1 = vpop.f32.mrf.mxu0 }
0x2930   :  { %v6166_v58 = vpop.f32.mrf.mxu0 }
0x2931   :  { %v6167_v5 = vadd.f32 %v6166_v58, %v6165_v1  ;;  %v6699_v1 = vld [vmem:[%s8488_s21] sm:$0xff]  }
0x2932   :  { %v6168_v7 = vpop.f32.mrf.mxu0 }
0x2933   :  { %v5482_v27 = vadd.f32 %v6167_v5, %v5909_v49 }
0x2934   :  { %v6169_v32 = vpop.f32.mrf.mxu0 }
0x2935   :  { %v5503_v36 = vadd.f32 %v5482_v27, %v8249_v41  ;;  %v6170_v18 = vadd.f32 %v6169_v32, %v6168_v7 }
0x2937   :  { %5508 = vst.msk [vmem:[#allocation2] sm:$0xff] %vm171_vm1, %v5503_v36  ;;  %v5485_v13 = vadd.f32 %v6170_v18, %v5909_v49 }
0x2939   :  { %v5504_v39 = vadd.f32 %v5485_v13, %v8245_v43  ;;  %v5926_v13 = vld [vmem:[%s8486_s19] ss:$0 sm:$0xff]  ;;  %s7026_s19 = smov [#allocation3]  }
0x293a   :  { %s5651_s13 = sshll.u32 %s7026_s19, 4  ;;  %s5652_s13 = int_to_ptr.vmem [resolvable:$true] %s5651_s13 }
0x293b   :  { %5509 = vst.msk [vmem:[#allocation2 + $0x8] sm:$0xff] %vm171_vm1, %v5504_v39  ;;  %p6999_p1 = scmp.lt.s32.totalorder %s5652_s13, %s5652_s13 }
0x293e   :  { %v5513_v35 = vld [vmem:[#allocation2] sm:$0xff] }
0x293f   :  { %v5517_v33 = vsel %vm171_vm1, %v5513_v35, 0.0 }
0x2940   :  { %5518 = vadd.xlane.f32.xlu0 %v5517_v33 }
0x296b   :  { %v5247_v20 = vpop.f32.mrf.mxu1 }
0x296c   :  { %v5248_v52 = vadd.f32 %v5247_v20, %v8406_v14  ;;  %v5927_v20 = vld [vmem:[%s8487_s20] ss:$0 sm:$0xff]  ;;  %s6994_s20 = scalar_lea.vmem %s5652_s13, 32 }
0x296d   :  { %v5249_v53 = vpop.f32.mrf.mxu1  ;;  %p6995_p0 = scmp.ne.s32.totalorder %s5652_s13, %s6994_s20  ;;  %p7000_p2 = scmp.lt.s32.totalorder %s6994_s20, %s6994_s20 }
0x296e   :  { %v5272_v59 = vmul.f32 0.70710677, %v5248_v52  ;;  %v5250_v54 = vadd.f32 %v5249_v53, %v8409_v19  ;;  %v5262_v3 = vmul.f32 0.5, %v5248_v52 }
0x296f   :  { %v5251_v41 = vpop.f32.mrf.mxu1  ;;  %p7001_p3 = por %p7000_p2, %p6999_p1 }
0x2970   :  { %6976 = verf.f32 %v5272_v59  ;;  %v5273_v61 = vmul.f32 0.70710677, %v5250_v54  ;;  %v5263_v34 = vmul.f32 0.5, %v5250_v54 }
0x2971   :  { %v5252_v60 = vpop.f32.mrf.mxu1  ;;  %p7002_p4 = pnand %p7001_p3, %p6995_p0 }
0x2972   :  { %6978 = verf.f32 %v5273_v61  ;;  %v5928_v61 = vld [vmem:[%s8489_s22] ss:$0 sm:$0xff] }
0x297d   :  { %v6977_v46 = vpop.eup %6976 }
0x297e   :  { %v5292_v43 = vadd.f32 1.0, %v6977_v46 }
0x297f   :  { %v6979_v44 = vpop.eup %6978 }
0x2980   :  { %v5293_v57 = vadd.f32 1.0, %v6979_v44  ;;  %v5302_v8 = vmul.f32 %v5292_v43, %v5262_v3 }
0x2982   :  { %v5303_v63 = vmul.f32 %v5293_v57, %v5263_v34  ;;  %v5308_v4 = vpack.c.bf16 %v5302_v8, %v5302_v8 }
0x2984   :  { %v5309_v9 = vpack.c.bf16 %v5303_v63, %v5303_v63 }
0x2986   :  { %5495 = vmatprep.mubr.bf16.mxu0 %v5309_v9 }
0x2987   :  { %5496 = vmatmul.mubr.bf16.gmra.mxu0 %v5308_v4 }
0x29bb   :  { %v6171_v14 = vpop.f32.mrf.mxu0 }
0x29bd   :  { %v6172_v17 = vpop.f32.mrf.mxu0 }
0x29be   :  { %v6173_v19 = vadd.f32 %v6172_v17, %v6171_v14 }
0x29bf   :  { %v6174_v12 = vpop.f32.mrf.mxu0 }
0x29c0   :  { %v5490_v11 = vadd.f32 %v6173_v19, %v5909_v49 }
0x29c1   :  { %v6175_v15 = vpop.f32.mrf.mxu0 }
0x29c2   :  { %v5505_v16 = vadd.f32 %v5490_v11, %v8277_v10  ;;  %v6176_v51 = vadd.f32 %v6175_v15, %v6174_v12 }
0x29c4   :  { %5510 = vst.msk [vmem:[#allocation2 + $0x10] sm:$0xff] %vm171_vm1, %v5505_v16  ;;  %v5493_v38 = vadd.f32 %v6176_v51, %v5909_v49 }
0x29c6   :  { %v5506_v62 = vadd.f32 %v5493_v38, %v8283_v25 }
0x29c8   :  { %5511 = vst.msk [vmem:[#allocation2 + $0x18] sm:$0xff] %vm171_vm1, %v5506_v62 }
0x29c9   :  { %v5519_v24 = vpop.xlane.xlu0 %5518 }
0x29ca   :  { %v5523_v28 = vmul.f32 0.015625, %v5519_v24 }
0x29cb   :  { %v5514_v21 = vld [vmem:[#allocation2 + $0x10] sm:$0xff] }
0x29cc   :  { %v5525_v31 = vsub.f32 %v5513_v35, %v5523_v28  ;;  %v5520_v29 = vsel %vm171_vm1, %v5514_v21, 0.0 }
0x29cd   :  { %5521 = vadd.xlane.f32.xlu1 %v5520_v29 }
0x29ce   :  { %v5527_v0 = vmul.f32 %v5525_v31, %v5525_v31 }
0x29d0   :  { %v5529_v22 = vsel %vm171_vm1, %v5527_v0, 0.0 }
0x29d1   :  { %5530 = vadd.xlane.f32.xlu0 %v5529_v22 }
0x2a47   :  { %v6177_v10 = vpop.f32.mrf.mxu0 }
0x2a49   :  { %v6178_v50 = vpop.f32.mrf.mxu0 }
0x2a4a   :  { %v6179_v55 = vadd.f32 %v6178_v50, %v6177_v10 }
0x2a4b   :  { %v6180_v48 = vpop.f32.mrf.mxu0 }
0x2a4c   :  { %v5498_v26 = vadd.f32 %v6179_v55, %v5909_v49 }
0x2a4d   :  { %v6181_v30 = vpop.f32.mrf.mxu0 }
0x2a4e   :  { %v5507_v25 = vadd.f32 %v5498_v26, %v8321_v23  ;;  %v6697_v23 = vld [vmem:[%s8488_s21 + $0x10] sm:$0xff]  }
0x2a4f   :  { %6553 = vmatpush3.bf16.msra.mxu1 %v6697_v23 }
0x2a50   :  { %5512 = vst.msk [vmem:[#allocation2 + $0x20] sm:$0x3] %vm285_vm3, %v5507_v25  ;;  %6554 = vmatprep.subr.bf16.mxu1 %v7024_v2 }
0x2a53   :  { %6555 = vmatpush3.bf16.msra.mxu1 %v6698_v42 }
0x2a54   :  { %6556 = vmatprep.subr.bf16.mxu1 %v7024_v2 }
0x2a56   :  { %v5522_v45 = vpop.xlane.xlu1 %5521 }
0x2a57   :  { %v5524_v40 = vmul.f32 0.015625, %v5522_v45  ;;  %6557 = vmatpush3.bf16.msra.mxu1 %v6699_v1 }
0x2a59   :  { %v5526_v37 = vsub.f32 %v5514_v21, %v5524_v40 }
0x2a5a   :  { %v5531_v49 = vpop.xlane.xlu0 %5530 }
0x2a5b   :  { %v5528_v47 = vmul.f32 %v5526_v37, %v5526_v37  ;;  %v5535_v58 = vmul.f32 0.015625, %v5531_v49 }
0x2a5d   :  { %v5532_v56 = vsel %vm171_vm1, %v5528_v47, 0.0  ;;  %v5537_v5 = vadd.f32 1e-05, %v5535_v58 }
0x2a5e   :  { %5533 = vadd.xlane.f32.xlu1 %v5532_v56 }
0x2a5f   :  { %6980 = vrsqrt.f32 %v5537_v5 }
0x2a6c   :  { %v6981_v36 = vpop.eup %6980 }
0x2a6d   :  { %v5541_v18 = vmul.f32 %v6981_v36, %v5525_v31 }
0x2a6f   :  { %v5549_v35 = vmul.f32 %v5926_v13, %v5541_v18 }
0x2a71   :  { %v5557_v53 = vadd.f32 %v5927_v20, %v5549_v35 }
0x2ae7   :  { %v5534_v7 = vpop.xlane.xlu1 %5533 }
0x2ae8   :  { %v5536_v27 = vmul.f32 0.015625, %v5534_v7 }
0x2aea   :  { %v5538_v32 = vadd.f32 1e-05, %v5536_v27 }
0x2aec   :  { %6982 = vrsqrt.f32 %v5538_v32 }
0x2af9   :  { %v6983_v39 = vpop.eup %6982 }
0x2afa   :  { %v5542_v33 = vmul.f32 %v6983_v39, %v5526_v37 }
0x2afc   :  { %v5550_v52 = vmul.f32 %v5926_v13, %v5542_v33 }
0x2afe   :  { %v5558_v59 = vadd.f32 %v5927_v20, %v5550_v52 }
0x2b00   :  { %v5559_v54 = vsel %vm619_vm8, %v5557_v53, %v5558_v59 }
0x2b01   :  { %v5560_v41 = vpack.c.bf16 %v5559_v54, %v5559_v54 }
0x2b03   :  { %6559 = vmatmul.mubr.msk.bf16.vlgmr.msra.gmra.mxu1 %vm171_vm1, %v5560_v41 }
0x2bc3   :  { %v5637_v60 = vpop.f32.mrf.mxu1 }
0x2bc4   :  { %v5638_v46 = vadd.f32 %v5928_v61, %v5637_v60 }
0x2bc5   :  { %v6560_v43 = vpop.f32.mrf.mxu1 }
0x2bc6   :  { %5644 = vst.msk [vmem:[#allocation3] sm:$0x3] %vm5643_vm11, %v5638_v46 }
0x2bc7   :  { %v5640_v44 = vpop.f32.mrf.mxu1 }
0x2bc8   :  { %7005 = shalt.err (!%p7002_p4)
}
0x2bc9   :  { %5654 = dma.vmem_to_hbm [thread:$0]  %s5652_s13, 32, %s8490_s23, [#allocation4]   ;;  %v6561_v3 = vpop.f32.mrf.mxu1 }
0x2bca   :  { %7014 = dma.done.wait [#allocation4], 32  }
0x2bcb   :  { %7015 = vsyncadd [#allocation4], 4294967264 }
0x2bcc   :  { %5658 = vsyncpa [#allocation4], 1 }

</bundles_post_ra>
